<compile_context>
chip_gen: v6e
topology: v6e:2x2x1
jax: 0.10.0
libtpu: 0.0.40
codegen_flags: <defaults>
</compile_context>

<pallas_src>
import jax
import jax.numpy as jnp
from jax.experimental import pallas as pl
from jax.experimental.pallas import tpu as pltpu


def _discriminator_kernel(x_ref,
                          w1_ref, b1_ref,
                          w2_ref, b2_ref,
                          w3_ref, b3_ref,
                          w4_ref, b4_ref,
                          o_ref):
    x = x_ref[...]                                      # (5, TB) f32, batch on lanes
    w1 = w1_ref[...]                                    # (128, 5) f32

    # Layer 1: Linear(5 -> 128) + ReLU   (Dropout(0.2) == identity in eval).
    # K=5 is far too small for the MXU -> 5 unrolled broadcast-FMAs on the VPU
    # (VALU slots are otherwise idle while the MXU runs layers 2/3).
    h1 = w1[:, 0:1] * x[0:1, :]
    for k in range(1, 5):
        h1 = h1 + w1[:, k:k + 1] * x[k:k + 1, :]
    h1 = jnp.maximum(h1 + b1_ref[...], 0.0)             # (128, TB)

    # Layer 2: Linear(128 -> 1024) + Tanh (Dropout(0.3) == identity in eval).
    # bf16 MXU operands, f32 accumulation; tanh kept in f32 (portable to v5e).
    h2 = jnp.dot(w2_ref[...], h1.astype(jnp.bfloat16),
                 preferred_element_type=jnp.float32) + b2_ref[...]
    h2 = jnp.tanh(h2)                                   # (1024, TB)

    # Layer 3: Linear(1024 -> 256) + ReLU.  bf16 MXU operands, f32 accumulation.
    h3 = jnp.dot(w3_ref[...], h2.astype(jnp.bfloat16),
                 preferred_element_type=jnp.float32) + b3_ref[...]
    h3 = jnp.maximum(h3, 0.0)                           # (256, TB)

    # Layer 4: Linear(256 -> 1) + Sigmoid.  N=1 would waste an MXU pass, so use
    # a VPU multiply + sublane reduction; the result is a lane-dense (1, TB) row.
    z = jnp.sum(w4_ref[...] * h3, axis=0, keepdims=True) + b4_ref[...]   # (1, TB)
    o_ref[...] = pl.reciprocal(1.0 + jnp.exp(-z), approx=True).astype(o_ref.dtype)


def _round_up(n, m):
    return (n + m - 1) // m * m


def discriminator_forward(x, params, *, block_b=1024):
    """x: (B, 5) float32.  params: dict in PyTorch (out_features, in_features)
    layout with (out_features, 1) biases.  Returns (B, 1) float32."""
    assert block_b % 128 == 0, "block_b must be a multiple of 128 (lane width)"
    B = x.shape[0]
    TB = min(block_b, _round_up(B, 128))
    B_pad = _round_up(B, TB)
    n_tiles = B_pad // TB

    # Feature-major input: (5, B_pad) with the batch along lanes; zero-pad tail.
    xt = jnp.pad(x.astype(jnp.float32).T, ((0, 0), (0, B_pad - B)))

    w1 = params["w1"].astype(jnp.float32)               # (128, 5)
    b1 = params["b1"].astype(jnp.float32)               # (128, 1)
    w2 = params["w2"].astype(jnp.bfloat16)              # (1024, 128)  bf16 MXU operand
    b2 = params["b2"].astype(jnp.float32)               # (1024, 1)
    w3 = params["w3"].astype(jnp.bfloat16)              # (256, 1024)  bf16 MXU operand
    b3 = params["b3"].astype(jnp.float32)               # (256, 1)
    w4 = params["w4"].astype(jnp.float32).T             # (256, 1)
    b4 = params["b4"].astype(jnp.float32)               # (1, 1)

    def resident(shape):
        # Constant index_map -> weight/bias stays VMEM-resident, no re-DMA.
        return pl.BlockSpec(shape, lambda i: (0, 0))

    flops = 2 * B_pad * (5 * 128 + 128 * 1024 + 1024 * 256 + 256 * 1)
    bytes_accessed = (
        B_pad * 5 * 4 + B_pad * 4                        # x in, out
        + (128 * 5 + 128 + 1024 + 256 + 256 + 1) * 4     # f32 weights / biases
        + (1024 * 128 + 256 * 1024) * 2)                 # bf16 weights

    out = pl.pallas_call(
        _discriminator_kernel,
        out_shape=jax.ShapeDtypeStruct((1, B_pad), jnp.float32),
        grid_spec=pltpu.PrefetchScalarGridSpec(
            num_scalar_prefetch=0,
            grid=(n_tiles,),
            in_specs=[
                pl.BlockSpec((5, TB), lambda i: (0, i)),  # streamed x tile
                resident((128, 5)), resident((128, 1)),
                resident((1024, 128)), resident((1024, 1)),
                resident((256, 1024)), resident((256, 1)),
                resident((256, 1)), resident((1, 1)),
            ],
            out_specs=pl.BlockSpec((1, TB), lambda i: (0, i)),
        ),
        compiler_params=pltpu.CompilerParams(
            dimension_semantics=("parallel",)),
        cost_estimate=pl.CostEstimate(
            flops=flops,
            transcendentals=B_pad * (1024 + 2),
            bytes_accessed=bytes_accessed),
    )(xt, w1, b1, w2, b2, w3, b3, w4, b4)

    return out[0, :B].reshape(B, 1)


def init_params(key):
    """nn.Linear default init: U[-1/sqrt(fan_in), +1/sqrt(fan_in)].
    Weights in PyTorch (out_features, in_features) layout; biases (out_features, 1)."""
    dims = [(5, 128), (128, 1024), (1024, 256), (256, 1)]
    params = {}
    for i, (fan_in, fan_out) in enumerate(dims, start=1):
        key, kw, kb = jax.random.split(key, 3)
        bound = 1.0 / (fan_in ** 0.5)
        params[f"w{i}"] = jax.random.uniform(
            kw, (fan_out, fan_in), jnp.float32, minval=-bound, maxval=bound)
        params[f"b{i}"] = jax.random.uniform(
            kb, (fan_out, 1), jnp.float32, minval=-bound, maxval=bound)
    return params


def reference_forward(x, params):
    """Plain-JAX (f32) reference of the same eval-mode forward pass."""
    h = jnp.maximum(x @ params["w1"].T + params["b1"].T, 0.0)
    h = jnp.tanh(h @ params["w2"].T + params["b2"].T)
    h = jnp.maximum(h @ params["w3"].T + params["b3"].T, 0.0)
    z = h @ params["w4"].T + params["b4"].T
    return jax.nn.sigmoid(z)


if __name__ == "__main__":
    key = jax.random.PRNGKey(0)
    key, kx = jax.random.split(key)
    params = init_params(key)

    # Multi-tile case: B=200 with 128-wide batch tiles -> grid=(2,) plus padding.
    batch = 200
    x = jax.random.normal(kx, (batch, 5), dtype=jnp.float32)
    out = jax.block_until_ready(discriminator_forward(x, params, block_b=128))
    ref = reference_forward(x, params)
    assert out.shape == (batch, 1), out.shape
    # bf16 MXU inputs + approx reciprocal -> compare with a looser tolerance.
    assert jnp.allclose(out, ref, atol=2e-2, rtol=2e-2), (
        float(jnp.max(jnp.abs(out - ref))))

    # Tiny single-tile case with the default (production) block size.
    x_small = x[:8]
    out_small = jax.block_until_ready(discriminator_forward(x_small, params))
    ref_small = reference_forward(x_small, params)
    assert out_small.shape == (8, 1), out_small.shape
    assert jnp.allclose(out_small, ref_small, atol=2e-2, rtol=2e-2), (
        float(jnp.max(jnp.abs(out_small - ref_small))))

    print("KERNEL_OK")
</pallas_src>

<mosaic_0001>
module attributes {stable_mosaic.version = 11 : i64} {
  func.func @_discriminator_kernel(%arg0: i32, %arg1: memref<5x128xf32, #tpu.memory_space<vmem>>, %arg2: memref<128x5xf32, #tpu.memory_space<vmem>>, %arg3: memref<128x1xf32, #tpu.memory_space<vmem>>, %arg4: memref<1024x128xbf16, #tpu.memory_space<vmem>>, %arg5: memref<1024x1xf32, #tpu.memory_space<vmem>>, %arg6: memref<256x1024xbf16, #tpu.memory_space<vmem>>, %arg7: memref<256x1xf32, #tpu.memory_space<vmem>>, %arg8: memref<256x1xf32, #tpu.memory_space<vmem>>, %arg9: memref<1x1xf32, #tpu.memory_space<vmem>>, %arg10: memref<1x128xf32, #tpu.memory_space<vmem>>) attributes {dimension_semantics = [#tpu.dimension_semantics<parallel>], iteration_bounds = array<i64: 2>, scalar_prefetch = 0 : i64, scratch_operands = 0 : i64, tpu.core_type = #tpu.core_type<tc>, window_params = [{transform_indices = @transform_0, window_bounds = array<i64: 5, 128>}, {pipeline_mode = #tpu.pipeline_mode<synchronous>, transform_indices = @transform_1, window_bounds = array<i64: 128, 5>}, {pipeline_mode = #tpu.pipeline_mode<synchronous>, transform_indices = @transform_2, window_bounds = array<i64: 128, 1>}, {pipeline_mode = #tpu.pipeline_mode<synchronous>, transform_indices = @transform_3, window_bounds = array<i64: 1024, 128>}, {pipeline_mode = #tpu.pipeline_mode<synchronous>, transform_indices = @transform_4, window_bounds = array<i64: 1024, 1>}, {pipeline_mode = #tpu.pipeline_mode<synchronous>, transform_indices = @transform_5, window_bounds = array<i64: 256, 1024>}, {pipeline_mode = #tpu.pipeline_mode<synchronous>, transform_indices = @transform_6, window_bounds = array<i64: 256, 1>}, {pipeline_mode = #tpu.pipeline_mode<synchronous>, transform_indices = @transform_7, window_bounds = array<i64: 256, 1>}, {pipeline_mode = #tpu.pipeline_mode<synchronous>, transform_indices = @transform_8, window_bounds = array<i64: 1, 1>}, {transform_indices = @transform_9, window_bounds = array<i64: 1, 128>}]} {
    %c0 = arith.constant 0 : index
    %c0_0 = arith.constant 0 : index
    %0 = vector.load %arg1[%c0, %c0_0] : memref<5x128xf32, #tpu.memory_space<vmem>>, vector<5x128xf32>
    %c0_1 = arith.constant 0 : index
    %c0_2 = arith.constant 0 : index
    %1 = vector.load %arg2[%c0_1, %c0_2] : memref<128x5xf32, #tpu.memory_space<vmem>>, vector<128x5xf32>
    %2 = vector.extract_strided_slice %1 {offsets = [0, 0], sizes = [128, 1], strides = [1, 1]} : vector<128x5xf32> to vector<128x1xf32>
    %3 = vector.extract_strided_slice %0 {offsets = [0, 0], sizes = [1, 128], strides = [1, 1]} : vector<5x128xf32> to vector<1x128xf32>
    %4 = vector.broadcast %2 : vector<128x1xf32> to vector<128x128xf32>
    %5 = vector.broadcast %3 : vector<1x128xf32> to vector<128x128xf32>
    %6 = arith.mulf %4, %5 : vector<128x128xf32>
    %7 = vector.extract_strided_slice %1 {offsets = [0, 1], sizes = [128, 1], strides = [1, 1]} : vector<128x5xf32> to vector<128x1xf32>
    %8 = vector.extract_strided_slice %0 {offsets = [1, 0], sizes = [1, 128], strides = [1, 1]} : vector<5x128xf32> to vector<1x128xf32>
    %9 = vector.broadcast %7 : vector<128x1xf32> to vector<128x128xf32>
    %10 = vector.broadcast %8 : vector<1x128xf32> to vector<128x128xf32>
    %11 = arith.mulf %9, %10 : vector<128x128xf32>
    %12 = arith.addf %6, %11 : vector<128x128xf32>
    %13 = vector.extract_strided_slice %1 {offsets = [0, 2], sizes = [128, 1], strides = [1, 1]} : vector<128x5xf32> to vector<128x1xf32>
    %14 = vector.extract_strided_slice %0 {offsets = [2, 0], sizes = [1, 128], strides = [1, 1]} : vector<5x128xf32> to vector<1x128xf32>
    %15 = vector.broadcast %13 : vector<128x1xf32> to vector<128x128xf32>
    %16 = vector.broadcast %14 : vector<1x128xf32> to vector<128x128xf32>
    %17 = arith.mulf %15, %16 : vector<128x128xf32>
    %18 = arith.addf %12, %17 : vector<128x128xf32>
    %19 = vector.extract_strided_slice %1 {offsets = [0, 3], sizes = [128, 1], strides = [1, 1]} : vector<128x5xf32> to vector<128x1xf32>
    %20 = vector.extract_strided_slice %0 {offsets = [3, 0], sizes = [1, 128], strides = [1, 1]} : vector<5x128xf32> to vector<1x128xf32>
    %21 = vector.broadcast %19 : vector<128x1xf32> to vector<128x128xf32>
    %22 = vector.broadcast %20 : vector<1x128xf32> to vector<128x128xf32>
    %23 = arith.mulf %21, %22 : vector<128x128xf32>
    %24 = arith.addf %18, %23 : vector<128x128xf32>
    %25 = vector.extract_strided_slice %1 {offsets = [0, 4], sizes = [128, 1], strides = [1, 1]} : vector<128x5xf32> to vector<128x1xf32>
    %26 = vector.extract_strided_slice %0 {offsets = [4, 0], sizes = [1, 128], strides = [1, 1]} : vector<5x128xf32> to vector<1x128xf32>
    %27 = vector.broadcast %25 : vector<128x1xf32> to vector<128x128xf32>
    %28 = vector.broadcast %26 : vector<1x128xf32> to vector<128x128xf32>
    %29 = arith.mulf %27, %28 : vector<128x128xf32>
    %30 = arith.addf %24, %29 : vector<128x128xf32>
    %c0_3 = arith.constant 0 : index
    %c0_4 = arith.constant 0 : index
    %31 = vector.load %arg3[%c0_3, %c0_4] : memref<128x1xf32, #tpu.memory_space<vmem>>, vector<128x1xf32>
    %32 = vector.broadcast %31 : vector<128x1xf32> to vector<128x128xf32>
    %33 = arith.addf %30, %32 : vector<128x128xf32>
    %cst = arith.constant 0.000000e+00 : f32
    %34 = vector.broadcast %cst : f32 to vector<128x128xf32>
    %35 = arith.maximumf %33, %34 : vector<128x128xf32>
    %c0_5 = arith.constant 0 : index
    %c0_6 = arith.constant 0 : index
    %36 = vector.load %arg4[%c0_5, %c0_6] : memref<1024x128xbf16, #tpu.memory_space<vmem>>, vector<1024x128xbf16>
    %37 = arith.truncf %35 : vector<128x128xf32> to vector<128x128xbf16>
    %cst_7 = arith.constant dense<0.000000e+00> : vector<1024x128xf32>
    %38 = tpu.matmul %36, %37, %cst_7 {dimension_numbers = #tpu.dot_dimension_numbers<[1], [0], [0], [1], [0, 0, 1, 1], [], []>} : vector<1024x128xbf16>, vector<128x128xbf16>, vector<1024x128xf32> -> vector<1024x128xf32>
    %c0_8 = arith.constant 0 : index
    %c0_9 = arith.constant 0 : index
    %39 = vector.load %arg5[%c0_8, %c0_9] : memref<1024x1xf32, #tpu.memory_space<vmem>>, vector<1024x1xf32>
    %40 = vector.broadcast %39 : vector<1024x1xf32> to vector<1024x128xf32>
    %41 = arith.addf %38, %40 : vector<1024x128xf32>
    %42 = math.tanh %41 : vector<1024x128xf32>
    %c0_10 = arith.constant 0 : index
    %c0_11 = arith.constant 0 : index
    %43 = vector.load %arg6[%c0_10, %c0_11] : memref<256x1024xbf16, #tpu.memory_space<vmem>>, vector<256x1024xbf16>
    %44 = arith.truncf %42 : vector<1024x128xf32> to vector<1024x128xbf16>
    %cst_12 = arith.constant dense<0.000000e+00> : vector<256x128xf32>
    %45 = tpu.matmul %43, %44, %cst_12 {dimension_numbers = #tpu.dot_dimension_numbers<[1], [0], [0], [1], [0, 0, 1, 1], [], []>} : vector<256x1024xbf16>, vector<1024x128xbf16>, vector<256x128xf32> -> vector<256x128xf32>
    %c0_13 = arith.constant 0 : index
    %c0_14 = arith.constant 0 : index
    %46 = vector.load %arg7[%c0_13, %c0_14] : memref<256x1xf32, #tpu.memory_space<vmem>>, vector<256x1xf32>
    %47 = vector.broadcast %46 : vector<256x1xf32> to vector<256x128xf32>
    %48 = arith.addf %45, %47 : vector<256x128xf32>
    %cst_15 = arith.constant 0.000000e+00 : f32
    %49 = vector.broadcast %cst_15 : f32 to vector<256x128xf32>
    %50 = arith.maximumf %48, %49 : vector<256x128xf32>
    %c0_16 = arith.constant 0 : index
    %c0_17 = arith.constant 0 : index
    %51 = vector.load %arg8[%c0_16, %c0_17] : memref<256x1xf32, #tpu.memory_space<vmem>>, vector<256x1xf32>
    %52 = vector.broadcast %51 : vector<256x1xf32> to vector<256x128xf32>
    %53 = arith.mulf %52, %50 : vector<256x128xf32>
    %cst_18 = arith.constant dense<0.000000e+00> : vector<128xf32>
    %54 = vector.multi_reduction <add>, %53, %cst_18 [0] : vector<256x128xf32> to vector<128xf32>
    %55 = vector.shape_cast %54 : vector<128xf32> to vector<1x128xf32>
    %c0_19 = arith.constant 0 : index
    %c0_20 = arith.constant 0 : index
    %56 = vector.load %arg9[%c0_19, %c0_20] : memref<1x1xf32, #tpu.memory_space<vmem>>, vector<1x1xf32>
    %57 = vector.broadcast %56 : vector<1x1xf32> to vector<1x128xf32>
    %58 = arith.addf %55, %57 : vector<1x128xf32>
    %cst_21 = arith.constant 0.000000e+00 : f32
    %59 = vector.broadcast %cst_21 : f32 to vector<1x128xf32>
    %60 = arith.subf %59, %58 : vector<1x128xf32>
    %61 = math.exp %60 : vector<1x128xf32>
    %cst_22 = arith.constant 1.000000e+00 : f32
    %62 = vector.broadcast %cst_22 : f32 to vector<1x128xf32>
    %63 = arith.addf %62, %61 : vector<1x128xf32>
    %64 = tpu.reciprocal %63 {approx = true} : vector<1x128xf32> -> vector<1x128xf32>
    %c0_23 = arith.constant 0 : index
    %c0_24 = arith.constant 0 : index
    %65 = vector.load %arg10[%c0_23, %c0_24] : memref<1x128xf32, #tpu.memory_space<vmem>>, vector<1x128xf32>
    tpu.vector_store %arg10[%c0_23, %c0_24], %64 {strides = array<i32>} : memref<1x128xf32, #tpu.memory_space<vmem>>, vector<1x128xf32>,
    return
  }
  func.func @transform_0(%arg0: i32) -> (i32, i32) {
    %c0_i32 = arith.constant 0 : i32
    %c0_i32_0 = arith.constant 0 : i32
    return %c0_i32, %arg0 : i32, i32
  }
  func.func @transform_1(%arg0: i32) -> (i32, i32) {
    %c0_i32 = arith.constant 0 : i32
    %c0_i32_0 = arith.constant 0 : i32
    %c0_i32_1 = arith.constant 0 : i32
    return %c0_i32, %c0_i32_0 : i32, i32
  }
  func.func @transform_2(%arg0: i32) -> (i32, i32) {
    %c0_i32 = arith.constant 0 : i32
    %c0_i32_0 = arith.constant 0 : i32
    %c0_i32_1 = arith.constant 0 : i32
    return %c0_i32, %c0_i32_0 : i32, i32
  }
  func.func @transform_3(%arg0: i32) -> (i32, i32) {
    %c0_i32 = arith.constant 0 : i32
    %c0_i32_0 = arith.constant 0 : i32
    %c0_i32_1 = arith.constant 0 : i32
    return %c0_i32, %c0_i32_0 : i32, i32
  }
  func.func @transform_4(%arg0: i32) -> (i32, i32) {
    %c0_i32 = arith.constant 0 : i32
    %c0_i32_0 = arith.constant 0 : i32
    %c0_i32_1 = arith.constant 0 : i32
    return %c0_i32, %c0_i32_0 : i32, i32
  }
  func.func @transform_5(%arg0: i32) -> (i32, i32) {
    %c0_i32 = arith.constant 0 : i32
    %c0_i32_0 = arith.constant 0 : i32
    %c0_i32_1 = arith.constant 0 : i32
    return %c0_i32, %c0_i32_0 : i32, i32
  }
  func.func @transform_6(%arg0: i32) -> (i32, i32) {
    %c0_i32 = arith.constant 0 : i32
    %c0_i32_0 = arith.constant 0 : i32
    %c0_i32_1 = arith.constant 0 : i32
    return %c0_i32, %c0_i32_0 : i32, i32
  }
  func.func @transform_7(%arg0: i32) -> (i32, i32) {
    %c0_i32 = arith.constant 0 : i32
    %c0_i32_0 = arith.constant 0 : i32
    %c0_i32_1 = arith.constant 0 : i32
    return %c0_i32, %c0_i32_0 : i32, i32
  }
  func.func @transform_8(%arg0: i32) -> (i32, i32) {
    %c0_i32 = arith.constant 0 : i32
    %c0_i32_0 = arith.constant 0 : i32
    %c0_i32_1 = arith.constant 0 : i32
    return %c0_i32, %c0_i32_0 : i32, i32
  }
  func.func @transform_9(%arg0: i32) -> (i32, i32) {
    %c0_i32 = arith.constant 0 : i32
    %c0_i32_0 = arith.constant 0 : i32
    return %c0_i32, %arg0 : i32, i32
  }
}

</mosaic_0001>

<bundles_post_ra>
// kernel: tpu_custom_call.1
= control target key start
LH: loop header
LB: loop body
LE: loop exit
PB: predicated region body
PF: predicated region fallthrough
CT: control target
= control target key end

     0   :  { %s9317_s0 = inlined_call_operand.vmem [shape: f32[5,256], index: 0, kind: input, shape index: {}]   ;;  %s9318_s1 = inlined_call_operand.vmem [shape: f32[128,5], index: 1, kind: input, shape index: {}]   ;;  %s9319_s2 = inlined_call_operand.vmem [shape: f32[128,1], index: 2, kind: input, shape index: {}]   ;;  %s9320_s3 = inlined_call_operand.vmem [shape: bf16[1024,128], index: 3, kind: input, shape index: {}]   ;;  %s9321_s4 = inlined_call_operand.vmem [shape: f32[1024,1], index: 4, kind: input, shape index: {}]   ;;  %s9322_s5 = inlined_call_operand.vmem [shape: bf16[256,1024], index: 5, kind: input, shape index: {}]   ;;  %s9323_s6 = inlined_call_operand.vmem [shape: f32[256,1], index: 6, kind: input, shape index: {}]   ;;  %s9324_s7 = inlined_call_operand.vmem [shape: f32[256,1], index: 7, kind: input, shape index: {}]   ;;  %s9325_s8 = inlined_call_operand.<no memory space> [shape: f32[1,1], index: 8, kind: input, shape index: {}]   ;;  %s9326_s9 = inlined_call_operand.hbm [shape: f32[1,256], index: 9, kind: output, shape index: {}]  }
   0x1   :  { %v14_v0 = vstv %s9325_s8 }
   0x2   :  { %15 = vst [vmem:[#allocation2] sm:$0x1] %v14_v0 }
   0x3   :  { %16 = vsyncpa [#allocation4], 0 }
   0x4   :  { %18 = vsyncpa [#allocation4 + $0x1], 0  ;;  %s6376_s11 = smov 0   ;;  %s6378_s12 = smov 0  }
   0x5   :  { %s6380_s13 = smov 0   ;;  %s6382_s14 = smov 0  }
   0x6 LB: > { %s6397_s8 = sadd.s32 4294967295, %s6315_s14   ;;  %s4982_s15 = sadd.s32 4294967294, %s6315_s14   ;;  %s6315_s14 = sphi %s6382_s14, %s9560_s14   ;;  %s6311_s13 = sphi %s6380_s13, %s9559_s13   ;;  %s6307_s12 = sphi %s6378_s12, %s9558_s12   ;;  %s6303_s11 = sphi %s6376_s11, %s9557_s11  }
   0x7   : > { %s6401_s16 = sadd.s32 1, %s6315_s14   ;;  %s225_s17 = sadd.s32 1, %s6311_s13 }
   0x8   : > { %s222_s18 = ssub.s32 %s6315_s14, %s6401_s16  ;;  %p235_p0 = scmp.ne.s32.totalorder %s6311_s13, %s6307_s12 }
   0x9   : > { %p223_p1 = scmp.eq.s32.totalorder %s222_s18, 0  ;;  %p236_p2 = scmp.eq.s32.totalorder %s6397_s8, 1 }
   0xa   : > { %p241_p3 = scmp.ne.s32.totalorder %s6307_s12, %s6303_s11  ;;  %p242_p4 = scmp.eq.s32.totalorder %s4982_s15, 1 }
   0xb   : > { %s6412_s19 = scalar_select %p223_p1, %s6311_s13, %s225_s17  }
   0xc   : > { %p6414_p5 = por %p236_p2, %p235_p0  ;;  %p6418_p6 = por %p242_p4, %p241_p3 }
   0xd   : > { %p4985_p7 = scmp.ge.s32.totalorder %s6315_s14, 1  ;;  %p291_p8 = scmp.lt.s32.totalorder %s6315_s14, 3 }
   0xf   : > { %p292_p9 = pnand %p4985_p7, %p291_p8 }
  0x11   : > { %295 = sbr.rel (%p292_p9) target bundleno = 1373 (0x55d), region = 56 }
  0x16   : > { %v6427_v1 = vld [vmem:[%s9318_s1 + $0x10] sm:$0xff]  ;;  %v6432_v2 = vld [vmem:[%s9318_s1] sm:$0xff]  ;;  %v6317_v3 = vmov 1   ;;  %v9327_v4 = vmov 0   ;;  %v6441_v5 = vld [vmem:[%s9318_s1 + $0x18] sm:$0xff]  ;;  %v9331_v20 = vmov 2  }
  0x17   : > { %5891 = vset.pattern.permute.xlu0 %v6317_v3  ;;  %5890 = vset.pattern.permute.xlu1 %v9327_v4  ;;  %v6448_v6 = vld [vmem:[%s9318_s1 + $0x28] sm:$0xff]  ;;  %v6453_v7 = vld [vmem:[%s9318_s1 + $0x38] sm:$0xff]  ;;  %v345_v10 = vld [vmem:[%s9318_s1 + $0x70] sm:$0xff]  ;;  %v9332_v23 = vmov 3   ;;  %v9329_v24 = vmov 4   ;;  %p325_p10 = scmp.lt.s32.totalorder %s6397_s8, 1 }
  0x18   : > { %359 = vperm.xlu1 %5890, %v6427_v1   ;;  %448 = vperm.xlu0 %5891, %v6432_v2   ;;  %v6462_v8 = vld [vmem:[%s9318_s1 + $0x48] sm:$0xff]  ;;  %v6467_v9 = vld [vmem:[%s9318_s1 + $0x58] sm:$0xff]  ;;  %v6496_v14 = vld [vmem:[%s9318_s1 + $0x20] sm:$0xff]  ;;  %s323_s27 = sand.u32 1, %s6307_s12   ;;  %s5179_s28 = sshll.u32 %s6397_s8, 4 }
  0x19   : > { %v6478_v11 = vld [vmem:[%s9318_s1 + $0x68] sm:$0xff]  ;;  %v346_v12 = vld [vmem:[%s9318_s1 + $0x78] sm:$0xff]  ;;  %v6505_v15 = vld [vmem:[%s9318_s1 + $0x30] sm:$0xff]  ;;  %s326_s26 = scalar_select %p325_p10, %s6397_s8, 1 }
  0x1a   : > { %v6489_v13 = vld [vmem:[%s9318_s1 + $0x8] sm:$0xff]  ;;  %v6510_v16 = vld [vmem:[%s9318_s1 + $0x40] sm:$0xff]  ;;  %v6517_v17 = vld [vmem:[%s9318_s1 + $0x50] sm:$0xff]  ;;  %s9282_s17 = scalar_lea.hbm %s9326_s9, %s5179_s28  ;;  %s4915_s18 = scalar_lea.sflag [#allocation4], %s323_s27 }
  0x1b   : > { %v343_v18 = vld [vmem:[%s9318_s1 + $0x60] sm:$0xff]  ;;  %v862_v19 = vld [vmem:[%s9319_s2 + $0x78] sm:$0xff]  ;;  %v857_v21 = vld [vmem:[%s9319_s2 + $0x50] sm:$0xff]  ;;  %s4986_s29 = sshll.u32 %s326_s26, 3 }
  0x1c   : > { %364 = vperm.xlu1 %5890, %v6441_v5   ;;  %460 = vperm.xlu0 %5891, %v6441_v5   ;;  %v856_v22 = vld [vmem:[%s9319_s2 + $0x48] sm:$0xff]  ;;  %v861_v25 = vld [vmem:[%s9319_s2 + $0x70] sm:$0xff]  ;;  %v859_v34 = vld [vmem:[%s9319_s2 + $0x60] sm:$0xff]  ;;  %s328_s23 = scalar_lea.vmem %s9317_s0, %s4986_s29  ;;  %s324_s29 = scalar_lea.vmem [#allocation3], %s323_s27 }
  0x1d   : > { %v851_v35 = vld [vmem:[%s9319_s2 + $0x20] sm:$0xff]  ;;  %v860_v38 = vld [vmem:[%s9319_s2 + $0x68] sm:$0xff]  ;;  %v849_v39 = vld [vmem:[%s9319_s2 + $0x10] sm:$0xff]  ;;  %s4927_s30 = sshll.u32 %s324_s29, 4  ;;  %s4928_s30 = int_to_ptr.vmem [resolvable:$true] %s4927_s30 }
  0x1e   : > { %v848_v42 = vld [vmem:[%s9319_s2 + $0x8] sm:$0xff]  ;;  %v1114_v48 = vld [vmem:[%s9321_s4 + $0x18] sm:$0xff]  ;;  %v1141_v54 = vld [vmem:[%s9321_s4 + $0xf0] sm:$0xff]  ;;  %s6255_s22 = scalar_lea.vmem %s4928_s30, 16 }
  0x1f   : > { %v1112_v45 = vld [vmem:[%s9321_s4 + $0x8] sm:$0xff]  ;;  %v858_v57 = vld [vmem:[%s9319_s2 + $0x58] sm:$0xff]  ;;  %v1125_v58 = vld [vmem:[%s9321_s4 + $0x70] sm:$0xff]  ;;  %p6256_p11 = scmp.ne.s32.totalorder %s4928_s30, %s6255_s22 }
  0x20   : > { %374 = vperm.xlu1 %5890, %v6448_v6   ;;  %468 = vperm.xlu0 %5891, %v6448_v6   ;;  %v1116_v51 = vld [vmem:[%s9321_s4 + $0x28] sm:$0xff]  ;;  %v1139_v61 = vld [vmem:[%s9321_s4 + $0xe0] sm:$0xff] }
  0x21   : > { %v1123_v0 = vld [vmem:[%s9321_s4 + $0x60] sm:$0xff]  ;;  %p6257_p12 = pnand %p6256_p11, %p6414_p5 }
  0x23   : > { %p6258_p13 = pneg %p6257_p12 }
  0x24   : > { %384 = vperm.xlu1 %5890, %v6453_v7   ;;  %476 = vperm.xlu0 %5891, %v6453_v7  }
  0x28   : > { %394 = vperm.xlu1 %5890, %v6462_v8   ;;  %484 = vperm.xlu0 %5891, %v6462_v8  }
  0x2c   : > { %404 = vperm.xlu1 %5890, %v6467_v9   ;;  %504 = vperm.xlu0 %5891, %v345_v10  }
  0x30   : > { %414 = vperm.xlu1 %5890, %v6478_v11   ;;  %500 = vperm.xlu0 %5891, %v6478_v11  }
  0x34   : > { %424 = vperm.xlu1 %5890, %v346_v12   ;;  %5895 = vset.pattern.permute.xlu0 %v9327_v4 }
  0x35   : > { %349 = vperm.xlu0 %5895, %v6432_v2  }
  0x38   : > { %5892 = vset.pattern.permute.xlu1 %v6317_v3 }
  0x39   : > { %452 = vperm.xlu1 %5892, %v6489_v13   ;;  %354 = vperm.xlu0 %5895, %v6489_v13  }
  0x3d   : > { %456 = vperm.xlu1 %5892, %v6427_v1   ;;  %369 = vperm.xlu0 %5895, %v6496_v14  }
  0x41   : > { %464 = vperm.xlu1 %5892, %v6496_v14   ;;  %379 = vperm.xlu0 %5895, %v6505_v15  }
  0x45   : > { %472 = vperm.xlu1 %5892, %v6505_v15   ;;  %389 = vperm.xlu0 %5895, %v6510_v16  }
  0x49   : > { %480 = vperm.xlu1 %5892, %v6510_v16   ;;  %399 = vperm.xlu0 %5895, %v6517_v17  }
  0x4d   : > { %488 = vperm.xlu1 %5892, %v6517_v17   ;;  %409 = vperm.xlu0 %5895, %v343_v18  }
  0x51   : > { %508 = vperm.xlu1 %5892, %v346_v12   ;;  %419 = vperm.xlu0 %5895, %v345_v10  }
  0x55   : > { %5893 = vset.pattern.permute.xlu1 %v9331_v20  ;;  %940 = vperm.xlu0 %5895, %v862_v19   ;;  %v855_v19 = vld [vmem:[%s9319_s2 + $0x40] sm:$0xff] }
  0x56   : > { %608 = vperm.xlu1 %5893, %v346_v12  }
  0x59   : > { %915 = vperm.xlu0 %5895, %v857_v21  }
  0x5a   : > { %5894 = vset.pattern.permute.xlu1 %v6317_v3 }
  0x5b   : > { %496 = vperm.xlu1 %5894, %v343_v18  }
  0x5d   : > { %910 = vperm.xlu0 %5895, %v856_v22  }
  0x5f   : > { %5896 = vset.pattern.permute.xlu1 %v9332_v23 }
  0x60   : > { %704 = vperm.xlu1 %5896, %v345_v10  }
  0x61   : > { %5916 = vset.pattern.permute.xlu0 %v9329_v24 }
  0x62   : > { %808 = vperm.xlu0 %5916, %v346_v12  }
  0x64   : > { %708 = vperm.xlu1 %5896, %v346_v12   ;;  %v1121_v12 = vld [vmem:[%s9321_s4 + $0x50] sm:$0xff] }
  0x66   : > { %796 = vperm.xlu0 %5916, %v343_v18  }
  0x68   : > { %5897 = vset.pattern.permute.xlu1 %v9331_v20 }
  0x69   : > { %600 = vperm.xlu1 %5897, %v6478_v11  }
  0x6a   : > { %792 = vperm.xlu0 %5916, %v6467_v9  }
  0x6d   : > { %5898 = vset.pattern.permute.xlu1 %v9329_v24 }
  0x6e   : > { %804 = vperm.xlu1 %5898, %v345_v10   ;;  %772 = vperm.xlu0 %5916, %v6505_v15  }
  0x72   : > { %5899 = vset.pattern.permute.xlu1 %v6317_v3  ;;  %768 = vperm.xlu0 %5916, %v6448_v6  }
  0x73   : > { %492 = vperm.xlu1 %5899, %v6467_v9  }
  0x76   : > { %5920 = vset.pattern.permute.xlu0 %v9331_v20 }
  0x77   : > { %5900 = vset.pattern.permute.xlu1 %v9332_v23  ;;  %604 = vperm.xlu0 %5920, %v345_v10  }
  0x78   : > { %696 = vperm.xlu1 %5900, %v343_v18  }
  0x7b   : > { %596 = vperm.xlu0 %5920, %v343_v18  }
  0x7c   : > { %5901 = vset.pattern.permute.xlu1 %v9331_v20 }
  0x7d   : > { %588 = vperm.xlu1 %5901, %v6517_v17  }
  0x7f   : > { %580 = vperm.xlu0 %5920, %v6510_v16  }
  0x81   : > { %592 = vperm.xlu1 %5901, %v6467_v9  }
  0x83   : > { %576 = vperm.xlu0 %5920, %v6453_v7  }
  0x85   : > { %5902 = vset.pattern.permute.xlu1 %v9329_v24 }
  0x86   : > { %800 = vperm.xlu1 %5902, %v6478_v11  }
  0x87   : > { %556 = vperm.xlu0 %5920, %v6427_v1  }
  0x8a   : > { %5903 = vset.pattern.permute.xlu1 %v9327_v4 }
  0x8b   : > { %935 = vperm.xlu1 %5903, %v861_v25   ;;  %552 = vperm.xlu0 %5920, %v6489_v13   ;;  %v1133_v25 = vld [vmem:[%s9321_s4 + $0xb0] sm:$0xff] }
  0x8f   : > { %5904 = vset.pattern.permute.xlu1 %v9332_v23  ;;  %5924 = vset.pattern.permute.xlu0 %v9332_v23 }
  0x90   : > { %688 = vperm.xlu1 %5904, %v6517_v17   ;;  %700 = vperm.xlu0 %5924, %v6478_v11  }
  0x93   : > { %v6567_v26 = vpop.permute.xlu1 %359  ;;  %v6569_v27 = vpop.permute.xlu0 %448 }
  0x94   : > { %9341 = vst [vmem:[#allocation6_spill] sm:$0xff] %v6569_v27  ;;  %692 = vperm.xlu1 %5904, %v6467_v9   ;;  %680 = vperm.xlu0 %5924, %v6510_v16   ;;  %v1137_v9 = vld [vmem:[%s9321_s4 + $0xd0] sm:$0xff]  ;;  %v9347_v27 = vmov 3  }
  0x97   : > { %v6573_v28 = vpop.permute.xlu1 %364  ;;  %v6575_v29 = vpop.permute.xlu0 %460 }
  0x98   : > { %9342 = vst [vmem:[#allocation7_spill] sm:$0xff] %v6575_v29  ;;  %5905 = vset.pattern.permute.xlu1 %v9331_v20  ;;  %676 = vperm.xlu0 %5924, %v6453_v7  }
  0x99   : > { %584 = vperm.xlu1 %5905, %v6462_v8  }
  0x9b   : > { %v6580_v30 = vpop.permute.xlu1 %374  ;;  %v6582_v31 = vpop.permute.xlu0 %468 }
  0x9c   : > { %656 = vperm.xlu0 %5924, %v6427_v1  }
  0x9d   : > { %5906 = vset.pattern.permute.xlu1 %v9329_v24 }
  0x9e   : > { %788 = vperm.xlu1 %5906, %v6517_v17   ;;  %v1135_v17 = vld [vmem:[%s9321_s4 + $0xc0] sm:$0xff] }
  0x9f   : > { %v6587_v32 = vpop.permute.xlu1 %384  ;;  %v6589_v33 = vpop.permute.xlu0 %476 }
  0xa0   : > { %652 = vperm.xlu0 %5924, %v6489_v13  }
  0xa2   : > { %5907 = vset.pattern.permute.xlu1 %v9327_v4 }
  0xa3   : > { %v6599_v36 = vpop.permute.xlu1 %394  ;;  %925 = vperm.xlu1 %5907, %v859_v34   ;;  %v6601_v37 = vpop.permute.xlu0 %484 }
  0xa4   : > { %5928 = vset.pattern.permute.xlu0 %v9327_v4 }
  0xa5   : > { %885 = vperm.xlu0 %5928, %v851_v35  }
  0xa7   : > { %v6610_v40 = vpop.permute.xlu1 %404  ;;  %930 = vperm.xlu1 %5907, %v860_v38   ;;  %v6612_v41 = vpop.permute.xlu0 %504  ;;  %v1118_v38 = vld [vmem:[%s9321_s4 + $0x38] sm:$0xff] }
  0xa9   : > { %875 = vperm.xlu0 %5928, %v849_v39  }
  0xab   : > { %v6617_v43 = vpop.permute.xlu1 %414  ;;  %5908 = vset.pattern.permute.xlu1 %v9332_v23  ;;  %v6620_v44 = vpop.permute.xlu0 %500 }
  0xac   : > { %684 = vperm.xlu1 %5908, %v6462_v8  }
  0xad   : > { %870 = vperm.xlu0 %5928, %v848_v42  }
  0xaf   : > { %v6626_v46 = vpop.permute.xlu1 %424 }
  0xb0   : > { %5909 = vset.pattern.permute.xlu1 %v9331_v20  ;;  %v6629_v47 = vpop.permute.xlu0 %349 }
  0xb1   : > { %9343 = vst [vmem:[#allocation8_spill] sm:$0xff] %v6629_v47  ;;  %572 = vperm.xlu1 %5909, %v6505_v15   ;;  %1246 = vperm.xlu0 %5928, %v1112_v45   ;;  %v1132_v45 = vld [vmem:[%s9321_s4 + $0xa8] sm:$0xff] }
  0xb4   : > { %v6635_v49 = vpop.permute.xlu1 %452  ;;  %v6637_v50 = vpop.permute.xlu0 %354 }
  0xb5   : > { %9344 = vst [vmem:[#allocation9_spill] sm:$0xff] %v6635_v49  ;;  %9345 = vst [vmem:[#allocation10_spill] sm:$0xff] %v6637_v50  ;;  %5910 = vset.pattern.permute.xlu1 %v9329_v24  ;;  %1256 = vperm.xlu0 %5928, %v1114_v48  }
  0xb6   : > { %780 = vperm.xlu1 %5910, %v6510_v16  }
  0xb8   : > { %v6644_v52 = vpop.permute.xlu1 %456  ;;  %v6646_v53 = vpop.permute.xlu0 %369 }
  0xb9   : > { %1266 = vperm.xlu0 %5928, %v1116_v51  }
  0xba   : > { %784 = vperm.xlu1 %5910, %v6462_v8  }
  0xbc   : > { %v6652_v55 = vpop.permute.xlu1 %464  ;;  %v6654_v56 = vpop.permute.xlu0 %379 }
  0xbd   : > { %1391 = vperm.xlu0 %5928, %v1141_v54   ;;  %v427_v54 = vlaneseq }
  0xbe   : > { %5911 = vset.pattern.permute.xlu1 %v9327_v4 }
  0xbf   : > { %920 = vperm.xlu1 %5911, %v858_v57  }
  0xc0   : > { %v6663_v59 = vpop.permute.xlu1 %472  ;;  %v6665_v60 = vpop.permute.xlu0 %389 }
  0xc1   : > { %1311 = vperm.xlu0 %5928, %v1125_v58  }
  0xc3   : > { %5912 = vset.pattern.permute.xlu1 %v9332_v23 }
  0xc4   : > { %672 = vperm.xlu1 %5912, %v6505_v15   ;;  %v6672_v62 = vpop.permute.xlu1 %480  ;;  %v6674_v63 = vpop.permute.xlu0 %399 }
  0xc5   : > { %1381 = vperm.xlu0 %5928, %v1139_v61   ;;  %v1128_v61 = vld [vmem:[%s9321_s4 + $0x88] sm:$0xff] }
  0xc8   : > { %5913 = vset.pattern.permute.xlu1 %v9331_v20  ;;  %v6680_v3 = vpop.permute.xlu1 %488  ;;  %v6682_v8 = vpop.permute.xlu0 %409 }
  0xc9   : > { %564 = vperm.xlu1 %5913, %v6496_v14   ;;  %1301 = vperm.xlu0 %5928, %v1123_v0   ;;  %v6756_v0 = vshrl.u32 %v427_v54, 7  ;;  %v1146_v54 = vld [vmem:[%s9321_s4 + $0x118] sm:$0xff] }
  0xcb   : > { %9346 = vst [vmem:[#allocation11_spill] sm:$0xff] %v6756_v0 }
  0xcc   : > { %v6688_v10 = vpop.permute.xlu1 %508  ;;  %v6690_v11 = vpop.permute.xlu0 %419 }
  0xcd   : > { %568 = vperm.xlu1 %5913, %v6448_v6   ;;  %1371 = vperm.xlu0 %5928, %v1137_v9   ;;  %v853_v9 = vld [vmem:[%s9319_s2 + $0x30] sm:$0xff] }
  0xd0   : > { %v6696_v15 = vpop.permute.xlu0 %940 }
  0xd1   : > { %5914 = vset.pattern.permute.xlu1 %v9329_v24  ;;  %v6699_v16 = vpop.permute.xlu1 %608  ;;  %1291 = vperm.xlu0 %5928, %v1121_v12  }
  0xd2   : > { %776 = vperm.xlu1 %5914, %v6453_v7   ;;  %v1119_v7 = vld [vmem:[%s9321_s4 + $0x40] sm:$0xff] }
  0xd4   : > { %v6705_v18 = vpop.permute.xlu0 %915 }
  0xd5   : > { %1361 = vperm.xlu0 %5928, %v1135_v17   ;;  %v1144_v17 = vld [vmem:[%s9321_s4 + $0x108] sm:$0xff] }
  0xd6   : > { %5915 = vset.pattern.permute.xlu1 %v9327_v4  ;;  %v6711_v21 = vpop.permute.xlu1 %496 }
  0xd7   : > { %905 = vperm.xlu1 %5915, %v855_v19   ;;  %v9334_v19 = vsub.s32 0, %v6756_v0 }
  0xd8   : > { %v6716_v22 = vpop.permute.xlu0 %910 }
  0xd9   : > { %1281 = vperm.xlu0 %5928, %v1119_v7   ;;  %v513_v7 = vsub.s32 1, %v6756_v0 }
  0xdb   : > { %5917 = vset.pattern.permute.xlu1 %v9332_v23  ;;  %v6722_v34 = vpop.permute.xlu1 %704 }
  0xdc   : > { %664 = vperm.xlu1 %5917, %v6496_v14  }
  0xdd   : > { %1351 = vperm.xlu0 %5928, %v1133_v25   ;;  %v6725_v35 = vpop.permute.xlu0 %808  ;;  %v613_v25 = vsub.s32 2, %v6756_v0 }
  0xdf   : > { %v709_v39 = vpop.permute.xlu1 %708 }
  0xe0   : > { %668 = vperm.xlu1 %5917, %v6448_v6   ;;  %v1130_v6 = vld [vmem:[%s9321_s4 + $0x98] sm:$0xff] }
  0xe1   : > { %1276 = vperm.xlu0 %5928, %v1118_v38   ;;  %v6731_v42 = vpop.permute.xlu0 %796  ;;  %v330_v38 = vld [vmem:[%s328_s23] sm:$0x1f]  ;;  %s6322_s23 = smov [#allocation3]  }
  0xe2   : > { %s6259_s24 = sshll.u32 %s6322_s23, 4  ;;  %s6260_s24 = int_to_ptr.vmem [resolvable:$false] %s6259_s24 }
  0xe3   : > { %s6261_s8 = scalar_lea.vmem %s6260_s24, 32  ;;  %p6262_p0 = scmp.lt.s32.totalorder %s4928_s30, %s6260_s24 }
  0xe4   : > { %5918 = vset.pattern.permute.xlu1 %v9331_v20  ;;  %v6738_v48 = vpop.permute.xlu1 %600  ;;  %p6263_p1 = scmp.lt.s32.totalorder %s6261_s8, %s6255_s22 }
  0xe5   : > { %560 = vperm.xlu1 %5918, %v6441_v5   ;;  %1346 = vperm.xlu0 %5928, %v1132_v45   ;;  %v6741_v51 = vpop.permute.xlu0 %792  ;;  %v854_v45 = vld [vmem:[%s9319_s2 + $0x38] sm:$0xff] }
  0xe6   : > { %p6264_p2 = por %p6263_p1, %p6262_p0 }
  0xe8   : > { %p6265_p3 = pnand %p6264_p2, %p6258_p13 }
  0xe9   : > { %5919 = vset.pattern.permute.xlu1 %v9329_v24  ;;  %v6748_v57 = vpop.permute.xlu1 %804  ;;  %1336 = vperm.xlu0 %5928, %v1130_v6   ;;  %v6750_v58 = vpop.permute.xlu0 %772  ;;  %v6787_v24 = vrot.slane %v330_v38, %v613_v25  ;;  %v1148_v25 = vld [vmem:[%s9321_s4 + $0x128] sm:$0xff] }
  0xea   : > { %764 = vperm.xlu1 %5919, %v6496_v14  }
  0xed   : > { %1326 = vperm.xlu0 %5928, %v1128_v61   ;;  %v6764_v12 = vpop.permute.xlu0 %768  ;;  %v6783_v61 = vrot.slane %v330_v38, %v9334_v19 }
  0xee   : > { %5921 = vset.pattern.permute.xlu1 %v9327_v4  ;;  %v6767_v14 = vpop.permute.xlu1 %492  ;;  %v6785_v4 = vrot.slane %v330_v38, %v513_v7 }
  0xef   : > { %895 = vperm.xlu1 %5921, %v853_v9   ;;  %v713_v9 = vsub.s32 3, %v6756_v0  ;;  %v445_v19 = vmul.f32 %v6783_v61, %v6690_v11 }
  0xf0   : > { %v529_v23 = vmul.f32 %v6785_v4, %v6612_v41  ;;  %v530_v47 = vmul.f32 %v6785_v4, %v6688_v10 }
  0xf1   : > { %1406 = vperm.xlu0 %5928, %v1144_v17   ;;  %v813_v17 = vsub.s32 4, %v6756_v0  ;;  %v630_v0 = vmul.f32 %v6787_v24, %v6699_v16  ;;  %v6808_v41 = vrot.slane %v330_v38, %v713_v9  ;;  %v1173_v16 = vld [vmem:[%s9321_s4 + $0x1f0] sm:$0xff] }
  0xf2   : > { %v605_v6 = vpop.permute.xlu0 %604  ;;  %v545_v50 = vadd.f32 %v529_v23, %v445_v19 }
  0xf3   : > { %900 = vperm.xlu1 %5921, %v854_v45   ;;  %v6790_v20 = vpop.permute.xlu1 %696  ;;  %v446_v45 = vmul.f32 %v6783_v61, %v6626_v46  ;;  %v6811_v10 = vrot.slane %v330_v38, %v813_v17  ;;  %v730_v49 = vmul.f32 %v6808_v41, %v709_v39  ;;  %v629_v29 = vmul.f32 %v6787_v24, %v605_v6  ;;  %v1157_v6 = vld [vmem:[%s9321_s4 + $0x170] sm:$0xff] }
  0xf4   : > { %v9348_v38 = vmov 2  }
  0xf5   : > { %1416 = vperm.xlu0 %5928, %v1146_v54   ;;  %v546_v54 = vadd.f32 %v530_v47, %v446_v45  ;;  %v830_v47 = vmul.f32 %v6811_v10, %v6725_v35  ;;  %v645_v19 = vadd.f32 %v629_v29, %v545_v50  ;;  %v1171_v50 = vld [vmem:[%s9321_s4 + $0x1e0] sm:$0xff]  ;;  %v829_v35 = vmul.f32 %v6811_v10, %v6748_v57 }
  0xf6   : > { %v6799_v7 = vpop.permute.xlu0 %596 }
  0xf7   : > { %5922 = vset.pattern.permute.xlu1 %v9347_v27  ;;  %v646_v9 = vadd.f32 %v630_v0, %v546_v54  ;;  %v729_v0 = vmul.f32 %v6808_v41, %v6722_v34  ;;  %v9349_v54 = vmov 4  }
  0xf8   : > { %660 = vperm.xlu1 %5922, %v6441_v5   ;;  %v6814_v11 = vpop.permute.xlu1 %588 }
  0xf9   : > { %1426 = vperm.xlu0 %5928, %v1148_v25   ;;  %v746_v23 = vadd.f32 %v730_v49, %v646_v9  ;;  %v745_v49 = vadd.f32 %v729_v0, %v645_v19 }
  0xfa   : > { %v6818_v46 = vpop.permute.xlu0 %580 }
  0xfb   : > { %v846_v25 = vadd.f32 %v830_v47, %v746_v23  ;;  %v845_v34 = vadd.f32 %v829_v35, %v745_v49  ;;  %v852_v23 = vld [vmem:[%s9319_s2 + $0x28] sm:$0xff]  ;;  %v1153_v49 = vld [vmem:[%s9321_s4 + $0x150] sm:$0xff] }
  0xfc   : > { %5923 = vset.pattern.permute.xlu1 %v9348_v38  ;;  %v6824_v17 = vpop.permute.xlu1 %592 }
  0xfd   : > { %548 = vperm.xlu1 %5923, %v6432_v2   ;;  %1551 = vperm.xlu0 %5928, %v1173_v16   ;;  %v958_v16 = vadd.f32 %v6696_v15, %v846_v25 }
  0xfe   : > { %v6829_v39 = vpop.permute.xlu0 %576 }
  0xff   : > { %v974_v57 = vmax.f32 %v958_v16, 0.0  ;;  %v527_v16 = vmul.f32 %v6785_v4, %v6711_v21  ;;  %v528_v21 = vmul.f32 %v6785_v4, %v6620_v44 }
 0x101   : > { %v6836_v45 = vpop.permute.xlu1 %800  ;;  %5925 = vset.pattern.permute.xlu1 %v9349_v54  ;;  %1471 = vperm.xlu0 %5928, %v1157_v6   ;;  %v9350_v6 = vmov 0  }
 0x102   : > { %756 = vperm.xlu1 %5925, %v6427_v1   ;;  %v6840_v29 = vpop.permute.xlu0 %556  ;;  %v1155_v1 = vld [vmem:[%s9321_s4 + $0x160] sm:$0xff] }
 0x105   : > { %1541 = vperm.xlu0 %5928, %v1171_v50  }
 0x106   : > { %v936_v9 = vpop.permute.xlu1 %935  ;;  %760 = vperm.xlu1 %5925, %v6441_v5   ;;  %v6849_v38 = vpop.permute.xlu0 %552  ;;  %v1169_v5 = vld [vmem:[%s9321_s4 + $0x1d0] sm:$0xff] }
 0x107   : > { %v957_v47 = vadd.f32 %v936_v9, %v845_v34  ;;  %v443_v34 = vmul.f32 %v6783_v61, %v6682_v8  ;;  %v1167_v9 = vld [vmem:[%s9321_s4 + $0x1c0] sm:$0xff]  ;;  %v444_v8 = vmul.f32 %v6783_v61, %v6617_v43  ;;  %v727_v43 = vmul.f32 %v6808_v41, %v6790_v20  ;;  %v850_v20 = vld [vmem:[%s9319_s2 + $0x18] sm:$0xff] }
 0x109   : > { %v973_v19 = vmax.f32 %v957_v47, 0.0  ;;  %1461 = vperm.xlu0 %5928, %v1155_v1   ;;  %v627_v1 = vmul.f32 %v6787_v24, %v6799_v7  ;;  %v1151_v7 = vld [vmem:[%s9321_s4 + $0x140] sm:$0xff] }
 0x10a   : > { %5926 = vset.pattern.permute.xlu1 %v9350_v6 }
 0x10b   : > { %v6861_v15 = vpop.permute.xlu1 %688  ;;  %890 = vperm.xlu1 %5926, %v852_v23   ;;  %v701_v0 = vpop.permute.xlu0 %700  ;;  %v1110_v25 = vpack.c.bf16 %v974_v57, %v973_v19  ;;  %v543_v23 = vadd.f32 %v527_v16, %v443_v34  ;;  %v628_v19 = vmul.f32 %v6787_v24, %v6738_v48  ;;  %v827_v48 = vmul.f32 %v6811_v10, %v6731_v42 }
 0x10c   : > { %v728_v44 = vmul.f32 %v6808_v41, %v701_v0  ;;  %v828_v42 = vmul.f32 %v6811_v10, %v6836_v45  ;;  %v1111_v45 = vld [vmem:[%s9321_s4] sm:$0xff] }
 0x10d   : > { %1531 = vperm.xlu0 %5928, %v1169_v5   ;;  %5702 = vmatprep.subr.bf16.mxu0 %v1110_v25  ;;  %v643_v57 = vadd.f32 %v627_v1, %v543_v23 }
 0x10e   : > { %5703 = vmatpush3.bf16.msra.mxu0 %v1110_v25 }
 0x10f   : > { %v6866_v50 = vpop.permute.xlu1 %692  ;;  %5927 = vset.pattern.permute.xlu1 %v9347_v27  ;;  %v6869_v35 = vpop.permute.xlu0 %680  ;;  %v743_v16 = vadd.f32 %v727_v43, %v643_v57 }
 0x110   : > { %648 = vperm.xlu1 %5927, %v6432_v2  }
 0x111   : > { %1451 = vperm.xlu0 %5928, %v1153_v49   ;;  %v843_v1 = vadd.f32 %v827_v48, %v743_v16  ;;  %v1162_v48 = vld [vmem:[%s9321_s4 + $0x198] sm:$0xff] }
 0x113   : > { %v6881_v47 = vpop.permute.xlu0 %676 }
 0x114   : > { %v6883_v27 = vpop.permute.xlu1 %584  ;;  %5929 = vset.pattern.permute.xlu1 %v9349_v54  ;;  %v544_v54 = vadd.f32 %v528_v21, %v444_v8  ;;  %v847_v8 = vld [vmem:[%s9319_s2] sm:$0xff] }
 0x115   : > { %748 = vperm.xlu1 %5929, %v6432_v2   ;;  %1521 = vperm.xlu0 %5928, %v1167_v9   ;;  %v1165_v2 = vld [vmem:[%s9321_s4 + $0x1b0] sm:$0xff]  ;;  %v1150_v9 = vld [vmem:[%s9321_s4 + $0x138] sm:$0xff] }
 0x116   : > { %v644_v49 = vadd.f32 %v628_v19, %v544_v54  ;;  %v1164_v19 = vld [vmem:[%s9321_s4 + $0x1a8] sm:$0xff] }
 0x117   : > { %v6896_v5 = vpop.permute.xlu0 %656 }
 0x118   : > { %v744_v0 = vadd.f32 %v728_v44, %v644_v49 }
 0x119   : > { %v6901_v25 = vpop.permute.xlu1 %788  ;;  %752 = vperm.xlu1 %5929, %v6489_v13   ;;  %1441 = vperm.xlu0 %5928, %v1151_v7  }
 0x11b   : > { %v6909_v34 = vpop.permute.xlu0 %652 }
 0x11d   : > { %5930 = vset.pattern.permute.xlu1 %v9350_v6  ;;  %1511 = vperm.xlu0 %5928, %v1165_v2   ;;  %v844_v6 = vadd.f32 %v828_v42, %v744_v0  ;;  %v5931_v2 = vld [vmem:[%s9320_s3] sm:$0xff]   ;;  %v525_v42 = vmul.f32 %v6785_v4, %v6680_v3  ;;  %v442_v3 = vmul.f32 %v6783_v61, %v6610_v40 }
 0x11e   : > { %v926_v13 = vpop.permute.xlu1 %925  ;;  %880 = vperm.xlu1 %5930, %v850_v20   ;;  %v1113_v20 = vld [vmem:[%s9321_s4 + $0x10] sm:$0xff]  ;;  %5718 = vmatprep.mubr.bf16.mxu0 %v5931_v2  ;;  %v726_v2 = vmul.f32 %v6808_v41, %v6866_v50  ;;  %v825_v40 = vmul.f32 %v6811_v10, %v6901_v25  ;;  %v826_v50 = vmul.f32 %v6811_v10, %v6741_v51 }
 0x11f   : > { %v955_v23 = vadd.f32 %v926_v13, %v843_v1  ;;  %v1160_v13 = vld [vmem:[%s9321_s4 + $0x188] sm:$0xff]  ;;  %v1115_v1 = vld [vmem:[%s9321_s4 + $0x20] sm:$0xff] }
 0x120   : > { %v6923_v21 = vpop.permute.xlu0 %885 }
 0x121   : > { %1436 = vperm.xlu0 %5928, %v1150_v9   ;;  %v971_v43 = vmax.f32 %v955_v23, 0.0  ;;  %v441_v9 = vmul.f32 %v6783_v61, %v6674_v63  ;;  %v1176_v63 = vld [vmem:[%s9321_s4 + $0x208] sm:$0xff] }
 0x122   : > { %v931_v7 = vpop.permute.xlu1 %930  ;;  %865 = vperm.xlu1 %5930, %v847_v8  }
 0x123   : > { %v956_v57 = vadd.f32 %v931_v7, %v844_v6  ;;  %v526_v6 = vmul.f32 %v6785_v4, %v6767_v14  ;;  %v625_v7 = vmul.f32 %v6787_v24, %v6814_v11  ;;  %v1117_v14 = vld [vmem:[%s9321_s4 + $0x30] sm:$0xff] }
 0x124   : > { %v6931_v54 = vpop.permute.xlu0 %875 }
 0x125   : > { %v972_v44 = vmax.f32 %v956_v57, 0.0  ;;  %1506 = vperm.xlu0 %5928, %v1164_v19   ;;  %v541_v19 = vadd.f32 %v525_v42, %v441_v9  ;;  %v626_v57 = vmul.f32 %v6787_v24, %v6824_v17  ;;  %v1178_v17 = vld [vmem:[%s9321_s4 + $0x218] sm:$0xff] }
 0x126   : > { %1241 = vperm.xlu1 %5930, %v1111_v45   ;;  %v725_v45 = vmul.f32 %v6808_v41, %v6861_v15 }
 0x127   : > { %v6939_v49 = vpop.permute.xlu1 %684  ;;  %v1109_v16 = vpack.c.bf16 %v972_v44, %v971_v43  ;;  %v542_v43 = vadd.f32 %v526_v6, %v442_v3  ;;  %v641_v44 = vadd.f32 %v625_v7, %v541_v19  ;;  %v1126_v6 = vld [vmem:[%s9321_s4 + $0x78] sm:$0xff] }
 0x128   : > { %v6944_v0 = vpop.permute.xlu0 %870  ;;  %v1206_v19 = vld [vmem:[%s9321_s4 + $0x2f8] sm:$0xff] }
 0x129   : > { %1496 = vperm.xlu0 %5928, %v1162_v48   ;;  %5704 = vmatprep.subr.bf16.mxu0 %v1109_v16  ;;  %v642_v15 = vadd.f32 %v626_v57, %v542_v43 }
 0x12a   : > { %1251 = vperm.xlu1 %5930, %v1113_v20   ;;  %5705 = vmatpush3.bf16.msra.mxu0 %v1109_v16  ;;  %v741_v16 = vadd.f32 %v725_v45, %v641_v44  ;;  %v1142_v20 = vld [vmem:[%s9321_s4 + $0xf8] sm:$0xff]  ;;  %v1140_v45 = vld [vmem:[%s9321_s4 + $0xe8] sm:$0xff] }
 0x12b   : > { %v742_v25 = vadd.f32 %v726_v2, %v642_v15 }
 0x12c   : > { %v6956_v8 = vpop.permute.xlu1 %572  ;;  %v6958_v23 = vpop.permute.xlu0 %1246  ;;  %v841_v9 = vadd.f32 %v825_v40, %v741_v16  ;;  %v1238_v16 = vld [vmem:[%s9321_s4 + $0x3f8] sm:$0xff] }
 0x12d   : > { %1486 = vperm.xlu0 %5928, %v1160_v13   ;;  %v842_v3 = vadd.f32 %v826_v50, %v742_v25  ;;  %v524_v50 = vmul.f32 %v6785_v4, %v6601_v37  ;;  %v1138_v25 = vld [vmem:[%s9321_s4 + $0xd8] sm:$0xff]  ;;  %v439_v37 = vmul.f32 %v6783_v61, %v6665_v60 }
 0x12e   : > { %1261 = vperm.xlu1 %5930, %v1115_v1   ;;  %v1180_v1 = vld [vmem:[%s9321_s4 + $0x228] sm:$0xff] }
 0x130   : > { %v6976_v11 = vpop.permute.xlu0 %1256 }
 0x131   : > { %v6982_v48 = vpop.permute.xlu1 %780  ;;  %1566 = vperm.xlu0 %5928, %v1176_v63   ;;  %v953_v63 = vadd.f32 %v6705_v18, %v841_v9  ;;  %v1190_v18 = vld [vmem:[%s9321_s4 + $0x278] sm:$0xff] }
 0x132   : > { %1271 = vperm.xlu1 %5930, %v1117_v14  }
 0x133   : > { %v969_v44 = vmax.f32 %v953_v63, 0.0 }
 0x134   : > { %v6990_v13 = vpop.permute.xlu0 %1266 }
 0x135   : > { %v785_v42 = vpop.permute.xlu1 %784  ;;  %1576 = vperm.xlu0 %5928, %v1178_v17   ;;  %v1124_v17 = vld [vmem:[%s9321_s4 + $0x68] sm:$0xff] }
 0x136   : > { %1396 = vperm.xlu1 %5930, %v1142_v20   ;;  %v440_v20 = vmul.f32 %v6783_v61, %v6599_v36  ;;  %v1222_v36 = vld [vmem:[%s9321_s4 + $0x378] sm:$0xff]  ;;  %v824_v60 = vmul.f32 %v6811_v10, %v785_v42  ;;  %v823_v42 = vmul.f32 %v6811_v10, %v6982_v48 }
 0x138   : > { %v7000_v7 = vpop.permute.xlu0 %1391  ;;  %v540_v63 = vadd.f32 %v524_v50, %v440_v20  ;;  %v1188_v50 = vld [vmem:[%s9321_s4 + $0x268] sm:$0xff] }
 0x139   : > { %1586 = vperm.xlu0 %5928, %v1180_v1  }
 0x13a   : > { %v921_v51 = vpop.permute.xlu1 %920  ;;  %1316 = vperm.xlu1 %5930, %v1126_v6   ;;  %v624_v6 = vmul.f32 %v6787_v24, %v6883_v27  ;;  %v1122_v27 = vld [vmem:[%s9321_s4 + $0x58] sm:$0xff] }
 0x13b   : > { %v954_v57 = vadd.f32 %v921_v51, %v842_v3  ;;  %v523_v3 = vmul.f32 %v6785_v4, %v6672_v62  ;;  %v724_v51 = vmul.f32 %v6808_v41, %v6939_v49  ;;  %v1204_v62 = vld [vmem:[%s9321_s4 + $0x2e8] sm:$0xff] }
 0x13c   : > { %v7009_v14 = vpop.permute.xlu0 %1311 }
 0x13d   : > { %v970_v43 = vmax.f32 %v954_v57, 0.0  ;;  %1716 = vperm.xlu0 %5928, %v1206_v19   ;;  %v539_v49 = vadd.f32 %v523_v3, %v439_v37  ;;  %v1236_v37 = vld [vmem:[%s9321_s4 + $0x3e8] sm:$0xff] }
 0x13e   : > { %1386 = vperm.xlu1 %5930, %v1140_v45   ;;  %v623_v45 = vmul.f32 %v6787_v24, %v6818_v46 }
 0x13f   : > { %v7014_v2 = vpop.permute.xlu1 %672  ;;  %v1108_v40 = vpack.c.bf16 %v970_v43, %v969_v44  ;;  %v640_v43 = vadd.f32 %v624_v6, %v540_v63  ;;  %v723_v44 = vmul.f32 %v6808_v41, %v6869_v35 }
 0x140   : > { %v7019_v15 = vpop.permute.xlu0 %1381  ;;  %v639_v46 = vadd.f32 %v623_v45, %v539_v49  ;;  %v1131_v49 = vld [vmem:[%s9321_s4 + $0xa0] sm:$0xff] }
 0x141   : > { %1636 = vperm.xlu0 %5928, %v1190_v18   ;;  %5706 = vmatprep.subr.bf16.mxu0 %v1108_v40  ;;  %v740_v18 = vadd.f32 %v724_v51, %v640_v43  ;;  %v1134_v51 = vld [vmem:[%s9321_s4 + $0xb8] sm:$0xff] }
 0x142   : > { %1306 = vperm.xlu1 %5930, %v1124_v17   ;;  %5707 = vmatpush3.bf16.msra.mxu0 %v1108_v40  ;;  %v1136_v40 = vld [vmem:[%s9321_s4 + $0xc8] sm:$0xff]  ;;  %v739_v35 = vadd.f32 %v723_v44, %v639_v46  ;;  %v1202_v44 = vld [vmem:[%s9321_s4 + $0x2d8] sm:$0xff]  ;;  %v1129_v46 = vld [vmem:[%s9321_s4 + $0x90] sm:$0xff] }
 0x144   : > { %v7031_v9 = vpop.permute.xlu1 %564  ;;  %v7033_v1 = vpop.permute.xlu0 %1301  ;;  %v839_v63 = vadd.f32 %v823_v42, %v739_v35  ;;  %v1186_v42 = vld [vmem:[%s9321_s4 + $0x258] sm:$0xff]  ;;  %v1127_v35 = vld [vmem:[%s9321_s4 + $0x80] sm:$0xff] }
 0x145   : > { %1876 = vperm.xlu0 %5928, %v1238_v16   ;;  %v840_v16 = vadd.f32 %v824_v60, %v740_v18 }
 0x146   : > { %1376 = vperm.xlu1 %5930, %v1138_v25   ;;  %v1120_v25 = vld [vmem:[%s9321_s4 + $0x48] sm:$0xff] }
 0x148   : > { %v7049_v19 = vpop.permute.xlu1 %568  ;;  %v7051_v57 = vpop.permute.xlu0 %1371 }
 0x149   : > { %1796 = vperm.xlu0 %5928, %v1222_v36   ;;  %v952_v36 = vadd.f32 %v6716_v22, %v840_v16  ;;  %v1220_v22 = vld [vmem:[%s9321_s4 + $0x368] sm:$0xff]  ;;  %v437_v16 = vmul.f32 %v6783_v61, %v6654_v56  ;;  %v1234_v56 = vld [vmem:[%s9321_s4 + $0x3d8] sm:$0xff] }
 0x14a   : > { %1296 = vperm.xlu1 %5930, %v1122_v27  }
 0x14b   : > { %v968_v43 = vmax.f32 %v952_v36, 0.0  ;;  %v621_v36 = vmul.f32 %v6787_v24, %v6956_v8  ;;  %v1143_v8 = vld [vmem:[%s9321_s4 + $0x100] sm:$0xff] }
 0x14c   : > { %v7064_v17 = vpop.permute.xlu0 %1291 }
 0x14d   : > { %v777_v20 = vpop.permute.xlu1 %776  ;;  %1706 = vperm.xlu0 %5928, %v1204_v62  }
 0x14e   : > { %1366 = vperm.xlu1 %5930, %v1136_v40  }
 0x150   : > { %v7074_v6 = vpop.permute.xlu0 %1361 }
 0x151   : > { %1626 = vperm.xlu0 %5928, %v1188_v50   ;;  %v521_v50 = vmul.f32 %v6785_v4, %v6663_v59  ;;  %v438_v59 = vmul.f32 %v6783_v61, %v6587_v32  ;;  %v1218_v32 = vld [vmem:[%s9321_s4 + $0x358] sm:$0xff] }
 0x152   : > { %v906_v48 = vpop.permute.xlu1 %905  ;;  %1286 = vperm.xlu1 %5930, %v1120_v25  }
 0x153   : > { %v951_v3 = vadd.f32 %v906_v48, %v839_v63  ;;  %v522_v48 = vmul.f32 %v6785_v4, %v6589_v33 }
 0x154   : > { %v7083_v45 = vpop.permute.xlu0 %1281 }
 0x155   : > { %v967_v27 = vmax.f32 %v951_v3, 0.0  ;;  %1866 = vperm.xlu0 %5928, %v1236_v37   ;;  %v537_v37 = vadd.f32 %v521_v50, %v437_v16  ;;  %v721_v3 = vmul.f32 %v6808_v41, %v7014_v2  ;;  %v538_v33 = vadd.f32 %v522_v48, %v438_v59 }
 0x156   : > { %1356 = vperm.xlu1 %5930, %v1134_v51   ;;  %v622_v51 = vmul.f32 %v6787_v24, %v6829_v39  ;;  %v722_v2 = vmul.f32 %v6808_v41, %v6881_v47  ;;  %v1145_v39 = vld [vmem:[%s9321_s4 + $0x110] sm:$0xff]  ;;  %v1147_v47 = vld [vmem:[%s9321_s4 + $0x120] sm:$0xff] }
 0x157   : > { %v7088_v60 = vpop.permute.xlu1 %664  ;;  %v1107_v62 = vpack.c.bf16 %v968_v43, %v967_v27  ;;  %v637_v27 = vadd.f32 %v621_v36, %v537_v37  ;;  %v1149_v37 = vld [vmem:[%s9321_s4 + $0x130] sm:$0xff] }
 0x158   : > { %v7096_v18 = vpop.permute.xlu0 %1351 }
 0x159   : > { %1786 = vperm.xlu0 %5928, %v1220_v22   ;;  %5708 = vmatprep.subr.bf16.mxu0 %v1107_v62  ;;  %v821_v22 = vmul.f32 %v6811_v10, %v6750_v58  ;;  %v1200_v58 = vld [vmem:[%s9321_s4 + $0x2c8] sm:$0xff] }
 0x15a   : > { %1341 = vperm.xlu1 %5930, %v1131_v49   ;;  %5709 = vmatpush3.bf16.msra.mxu0 %v1107_v62  ;;  %v737_v62 = vadd.f32 %v721_v3, %v637_v27 }
 0x15b   : > { %v7098_v40 = vpop.permute.xlu1 %668 }
 0x15c   : > { %v7117_v63 = vpop.permute.xlu0 %1276  ;;  %v837_v50 = vadd.f32 %v821_v22, %v737_v62  ;;  %v1174_v22 = vld [vmem:[%s9321_s4 + $0x1f8] sm:$0xff]  ;;  %v435_v62 = vmul.f32 %v6783_v61, %v6646_v53 }
 0x15d   : > { %1696 = vperm.xlu0 %5928, %v1202_v44   ;;  %v638_v44 = vadd.f32 %v622_v51, %v538_v33  ;;  %v1232_v51 = vld [vmem:[%s9321_s4 + $0x3c8] sm:$0xff]  ;;  %v1198_v53 = vld [vmem:[%s9321_s4 + $0x2b8] sm:$0xff] }
 0x15e   : > { %1331 = vperm.xlu1 %5930, %v1129_v46   ;;  %v822_v46 = vmul.f32 %v6811_v10, %v777_v20  ;;  %v1184_v20 = vld [vmem:[%s9321_s4 + $0x248] sm:$0xff] }
 0x15f   : > { %v738_v16 = vadd.f32 %v722_v2, %v638_v44  ;;  %v1216_v2 = vld [vmem:[%s9321_s4 + $0x348] sm:$0xff]  ;;  %v1158_v44 = vld [vmem:[%s9321_s4 + $0x178] sm:$0xff] }
 0x160   : > { %v7113_v25 = vpop.permute.xlu1 %560  ;;  %v7140_v49 = vpop.permute.xlu0 %1346 }
 0x161   : > { %1616 = vperm.xlu0 %5928, %v1186_v42  }
 0x162   : > { %1321 = vperm.xlu1 %5930, %v1127_v35  }
 0x164   : > { %v7152_v35 = vpop.permute.xlu0 %1336 }
 0x165   : > { %v765_v43 = vpop.permute.xlu1 %764  ;;  %1856 = vperm.xlu0 %5928, %v1234_v56   ;;  %v838_v56 = vadd.f32 %v822_v46, %v738_v16  ;;  %v619_v16 = vmul.f32 %v6787_v24, %v7031_v9 }
 0x166   : > { %1401 = vperm.xlu1 %5930, %v1143_v8  }
 0x168   : > { %v7163_v27 = vpop.permute.xlu0 %1326 }
 0x169   : > { %1776 = vperm.xlu0 %5928, %v1218_v32  }
 0x16a   : > { %v896_v42 = vpop.permute.xlu1 %895  ;;  %1411 = vperm.xlu1 %5930, %v1145_v39   ;;  %v519_v39 = vmul.f32 %v6785_v4, %v6652_v55 }
 0x16b   : > { %v949_v36 = vadd.f32 %v896_v42, %v837_v50  ;;  %v436_v42 = vmul.f32 %v6783_v61, %v6580_v30  ;;  %v719_v30 = vmul.f32 %v6808_v41, %v7088_v60 }
 0x16c   : > { %v7188_v50 = vpop.permute.xlu0 %1406  ;;  %v535_v55 = vadd.f32 %v519_v39, %v435_v62 }
 0x16d   : > { %1686 = vperm.xlu0 %5928, %v1200_v58   ;;  %v965_v3 = vmax.f32 %v949_v36, 0.0  ;;  %v520_v58 = vmul.f32 %v6785_v4, %v6582_v31  ;;  %9351 = vst [vmem:[#allocation12_spill] sm:$0xff] %v7188_v50  ;;  %v1172_v31 = vld [vmem:[%s9321_s4 + $0x1e8] sm:$0xff]  ;;  %v5962_v50 = vld [vmem:[%s9320_s3 + $0xf8] sm:$0xff]  }
 0x16e   : > { %v901_v59 = vpop.permute.xlu1 %900  ;;  %1421 = vperm.xlu1 %5930, %v1147_v47   ;;  %v620_v47 = vmul.f32 %v6787_v24, %v7049_v19  ;;  %v635_v36 = vadd.f32 %v619_v16, %v535_v55  ;;  %v1182_v19 = vld [vmem:[%s9321_s4 + $0x238] sm:$0xff]  ;;  %v1196_v55 = vld [vmem:[%s9321_s4 + $0x2a8] sm:$0xff] }
 0x16f   : > { %v950_v48 = vadd.f32 %v901_v59, %v838_v56  ;;  %v536_v9 = vadd.f32 %v520_v58, %v436_v42  ;;  %v720_v56 = vmul.f32 %v6808_v41, %v7098_v40  ;;  %v819_v59 = vmul.f32 %v6811_v10, %v765_v43  ;;  %v1230_v43 = vld [vmem:[%s9321_s4 + $0x3b8] sm:$0xff] }
 0x170   : > { %v735_v60 = vadd.f32 %v719_v30, %v635_v36  ;;  %v1214_v42 = vld [vmem:[%s9321_s4 + $0x338] sm:$0xff]  ;;  %v433_v36 = vmul.f32 %v6783_v61, %v6567_v26  ;;  %v717_v26 = vmul.f32 %v6808_v41, %v6896_v5 }
 0x171   : > { %v966_v8 = vmax.f32 %v950_v48, 0.0  ;;  %1606 = vperm.xlu0 %5928, %v1184_v20   ;;  %v636_v48 = vadd.f32 %v620_v47, %v536_v9  ;;  %v1168_v9 = vld [vmem:[%s9321_s4 + $0x1c8] sm:$0xff] }
 0x172   : > { %1431 = vperm.xlu1 %5930, %v1149_v37   ;;  %v7206_v37 = vpop.permute.xlu0 %1416 }
 0x173   : > { %v7165_v32 = vpop.permute.xlu1 %660  ;;  %v1106_v33 = vpack.c.bf16 %v966_v8, %v965_v3  ;;  %v1156_v3 = vld [vmem:[%s9321_s4 + $0x168] sm:$0xff]  ;;  %v736_v8 = vadd.f32 %v720_v56, %v636_v48  ;;  %v617_v56 = vmul.f32 %v6787_v24, %v6840_v29  ;;  %v9355_v48 = vld [vmem:[#allocation9_spill] sm:$0xff] }
 0x174   : > { %v1152_v29 = vld [vmem:[%s9321_s4 + $0x148] sm:$0xff] }
 0x175   : > { %1846 = vperm.xlu0 %5928, %v1232_v51   ;;  %5710 = vmatprep.subr.bf16.mxu0 %v1106_v33  ;;  %v835_v51 = vadd.f32 %v819_v59, %v735_v60  ;;  %v9354_v59 = vld [vmem:[#allocation7_spill] sm:$0xff]  ;;  %v516_v60 = vmul.f32 %v6785_v4, %v9355_v48 }
 0x176   : > { %1556 = vperm.xlu1 %5930, %v1174_v22   ;;  %5711 = vmatpush3.bf16.msra.mxu0 %v1106_v33  ;;  %v820_v33 = vmul.f32 %v6811_v10, %v6764_v12  ;;  %v1170_v22 = vld [vmem:[%s9321_s4 + $0x1d8] sm:$0xff]  ;;  %v7220_v62 = vpop.permute.xlu0 %1426 }
 0x177   : > { %9352 = vst [vmem:[#allocation13_spill] sm:$0xff] %v7220_v62  ;;  %v1154_v12 = vld [vmem:[%s9321_s4 + $0x158] sm:$0xff]  ;;  %v5972_v62 = vld [vmem:[%s9320_s3 + $0x148] sm:$0xff]  }
 0x178   : > { %v7180_v46 = vpop.permute.xlu1 %548  ;;  %v836_v39 = vadd.f32 %v820_v33, %v736_v8  ;;  %v616_v33 = vmul.f32 %v6787_v24, %v6849_v38  ;;  %v716_v38 = vmul.f32 %v6808_v41, %v6909_v34 }
 0x179   : > { %1766 = vperm.xlu0 %5928, %v1216_v2   ;;  %v947_v2 = vadd.f32 %v6923_v21, %v835_v51  ;;  %v517_v21 = vmul.f32 %v6785_v4, %v6644_v52  ;;  %v434_v52 = vmul.f32 %v6783_v61, %v6573_v28  ;;  %v1228_v28 = vld [vmem:[%s9321_s4 + $0x3a8] sm:$0xff] }
 0x17a   : > { %1476 = vperm.xlu1 %5930, %v1158_v44   ;;  %v7233_v47 = vpop.permute.xlu0 %1551 }
 0x17b   : > { %9353 = vst [vmem:[#allocation14_spill] sm:$0xff] %v7233_v47  ;;  %v533_v51 = vadd.f32 %v517_v21, %v433_v36 }
 0x17d   : > { %v757_v20 = vpop.permute.xlu1 %756  ;;  %1676 = vperm.xlu0 %5928, %v1198_v53   ;;  %v963_v53 = vmax.f32 %v947_v2, 0.0 }
 0x17e   : > { %1546 = vperm.xlu1 %5930, %v1172_v31   ;;  %v817_v2 = vmul.f32 %v6811_v10, %v757_v20  ;;  %v615_v20 = vmul.f32 %v6787_v24, %v7180_v46 }
 0x181   : > { %v761_v40 = vpop.permute.xlu1 %760  ;;  %1596 = vperm.xlu0 %5928, %v1182_v19   ;;  %v518_v19 = vmul.f32 %v6785_v4, %v9354_v59 }
 0x182   : > { %1466 = vperm.xlu1 %5930, %v1156_v3   ;;  %v9356_v3 = vld [vmem:[#allocation10_spill] sm:$0xff]  ;;  %v818_v34 = vmul.f32 %v6811_v10, %v761_v40 }
 0x183   : > { %v432_v8 = vmul.f32 %v6783_v61, %v9356_v3  ;;  %v1163_v40 = vld [vmem:[%s9321_s4 + $0x1a0] sm:$0xff] }
 0x185   : > { %1836 = vperm.xlu0 %5928, %v1230_v43   ;;  %v633_v43 = vadd.f32 %v617_v56, %v533_v51 }
 0x186   : > { %1536 = vperm.xlu1 %5930, %v1170_v22   ;;  %v891_v44 = vpop.permute.xlu1 %890  ;;  %v618_v22 = vmul.f32 %v6787_v24, %v7113_v25  ;;  %v718_v25 = vmul.f32 %v6808_v41, %v7165_v32  ;;  %v1194_v24 = vld [vmem:[%s9321_s4 + $0x298] sm:$0xff] }
 0x187   : > { %v948_v58 = vadd.f32 %v891_v44, %v836_v39  ;;  %v9357_v39 = vld [vmem:[#allocation6_spill] sm:$0xff]  ;;  %v733_v21 = vadd.f32 %v717_v26, %v633_v43 }
 0x188   : > { %v515_v44 = vmul.f32 %v6785_v4, %v9357_v39  ;;  %v1212_v4 = vld [vmem:[%s9321_s4 + $0x328] sm:$0xff] }
 0x189   : > { %v964_v16 = vmax.f32 %v948_v58, 0.0  ;;  %1756 = vperm.xlu0 %5928, %v1214_v42   ;;  %v534_v42 = vadd.f32 %v518_v19, %v434_v52  ;;  %v9358_v58 = vld [vmem:[#allocation8_spill] sm:$0xff] }
 0x18a   : > { %1456 = vperm.xlu1 %5930, %v1154_v12   ;;  %v431_v12 = vmul.f32 %v6783_v61, %v9358_v58  ;;  %v1166_v61 = vld [vmem:[%s9321_s4 + $0x1b8] sm:$0xff] }
 0x18b   : > { %v649_v30 = vpop.permute.xlu1 %648  ;;  %v1105_v31 = vpack.c.bf16 %v964_v16, %v963_v53  ;;  %v7267_v16 = vpop.permute.xlu0 %1471  ;;  %v532_v53 = vadd.f32 %v516_v60, %v432_v8 }
 0x18c   : > { %9359 = vst [vmem:[#allocation7_spill] sm:$0xff] %v7267_v16  ;;  %v531_v56 = vadd.f32 %v515_v44, %v431_v12  ;;  %v715_v19 = vmul.f32 %v6808_v41, %v649_v30  ;;  %v1210_v44 = vld [vmem:[%s9321_s4 + $0x318] sm:$0xff]  ;;  %v4664_v16 = vld [vmem:[%s9324_s7 + $0xe0] sm:$0xff] }
 0x18d   : > { %1666 = vperm.xlu0 %5928, %v1196_v55   ;;  %5712 = vmatprep.subr.bf16.mxu0 %v1105_v31  ;;  %v632_v55 = vadd.f32 %v616_v33, %v532_v53 }
 0x18e   : > { %1526 = vperm.xlu1 %5930, %v1168_v9   ;;  %5713 = vmatpush3.bf16.msra.mxu0 %v1105_v31  ;;  %v634_v31 = vadd.f32 %v618_v22, %v534_v42  ;;  %v833_v9 = vadd.f32 %v817_v2, %v733_v21  ;;  %v631_v46 = vadd.f32 %v615_v20, %v531_v56  ;;  %v1159_v42 = vld [vmem:[%s9321_s4 + $0x180] sm:$0xff]  ;;  %v1192_v21 = vld [vmem:[%s9321_s4 + $0x288] sm:$0xff] }
 0x18f   : > { %v732_v52 = vadd.f32 %v716_v38, %v632_v55  ;;  %v7287_v48 = vpop.permute.xlu0 %1541  ;;  %v1224_v55 = vld [vmem:[%s9321_s4 + $0x388] sm:$0xff]  ;;  %v1179_v56 = vld [vmem:[%s9321_s4 + $0x220] sm:$0xff] }
 0x190   : > { %v749_v5 = vpop.permute.xlu1 %748  ;;  %v734_v59 = vadd.f32 %v718_v25, %v634_v31  ;;  %9360 = vst [vmem:[#allocation9_spill] sm:$0xff] %v7287_v48  ;;  %v945_v60 = vadd.f32 %v6931_v54, %v833_v9  ;;  %v731_v41 = vadd.f32 %v715_v19, %v631_v46  ;;  %v1175_v25 = vld [vmem:[%s9321_s4 + $0x200] sm:$0xff]  ;;  %v1177_v31 = vld [vmem:[%s9321_s4 + $0x210] sm:$0xff]  ;;  %v3129_v19 = vld [vmem:[%s9323_s6 + $0x8] sm:$0xff] }
 0x191   : > { %1826 = vperm.xlu0 %5928, %v1228_v28   ;;  %v815_v3 = vmul.f32 %v6811_v10, %v749_v5  ;;  %v1226_v28 = vld [vmem:[%s9321_s4 + $0x398] sm:$0xff]  ;;  %v1205_v46 = vld [vmem:[%s9321_s4 + $0x2f0] sm:$0xff]  ;;  %v4661_v48 = vld [vmem:[%s9324_s7 + $0xc8] sm:$0xff] }
 0x192   : > { %1446 = vperm.xlu1 %5930, %v1152_v29   ;;  %v834_v51 = vadd.f32 %v818_v34, %v734_v59  ;;  %v1161_v29 = vld [vmem:[%s9321_s4 + $0x190] sm:$0xff]  ;;  %v5935_v59 = vld [vmem:[%s9320_s3 + $0x20] sm:$0xff]  }
 0x193   : > { %v831_v33 = vadd.f32 %v815_v3, %v731_v41  ;;  %v7301_v22 = vpop.permute.xlu0 %1461  ;;  %v1189_v3 = vld [vmem:[%s9321_s4 + $0x270] sm:$0xff] }
 0x194   : > { %v753_v36 = vpop.permute.xlu1 %752  ;;  %9361 = vst [vmem:[#allocation10_spill] sm:$0xff] %v7301_v22  ;;  %v5937_v41 = vld [vmem:[%s9320_s3 + $0x30] sm:$0xff]  }
 0x195   : > { %v816_v32 = vmul.f32 %v6811_v10, %v753_v36  ;;  %1746 = vperm.xlu0 %5928, %v1212_v4   ;;  %v961_v10 = vmax.f32 %v945_v60, 0.0  ;;  %v5932_v4 = vld [vmem:[%s9320_s3 + $0x8] sm:$0xff]   ;;  %v3131_v60 = vld [vmem:[%s9323_s6 + $0x18] sm:$0xff] }
 0x196   : > { %1516 = vperm.xlu1 %5930, %v1166_v61   ;;  %v5933_v61 = vld [vmem:[%s9320_s3 + $0x10] sm:$0xff]   ;;  %v1208_v36 = vld [vmem:[%s9321_s4 + $0x308] sm:$0xff] }
 0x197   : > { %v832_v8 = vadd.f32 %v816_v32, %v732_v52  ;;  %v7314_v38 = vpop.permute.xlu0 %1531  ;;  %v5934_v32 = vld [vmem:[%s9320_s3 + $0x18] sm:$0xff]  }
 0x198   : > { %9362 = vst [vmem:[#allocation6_spill] sm:$0xff] %v7314_v38 }
 0x199   : > { %v881_v26 = vpop.permute.xlu1 %880  ;;  %1656 = vperm.xlu0 %5928, %v1194_v24   ;;  %v944_v43 = vadd.f32 %v6944_v0, %v832_v8  ;;  %v5936_v8 = vld [vmem:[%s9320_s3 + $0x28] sm:$0xff]  }
 0x19a   : > { %v946_v30 = vadd.f32 %v881_v26, %v834_v51  ;;  %1501 = vperm.xlu1 %5930, %v1163_v40  }
 0x19b   : > { %v960_v0 = vmax.f32 %v944_v43, 0.0  ;;  %v7333_v9 = vpop.permute.xlu0 %1451  ;;  %v3135_v43 = vld [vmem:[%s9323_s6 + $0x38] sm:$0xff] }
 0x19c   : > { %v962_v54 = vmax.f32 %v946_v30, 0.0  ;;  %9363 = vst [vmem:[#allocation8_spill] sm:$0xff] %v7333_v9  ;;  %v3133_v30 = vld [vmem:[%s9323_s6 + $0x28] sm:$0xff] }
 0x19d   : > { %v866_v2 = vpop.permute.xlu1 %865  ;;  %1816 = vperm.xlu0 %5928, %v1226_v28   ;;  %v1237_v28 = vld [vmem:[%s9321_s4 + $0x3f0] sm:$0xff] }
 0x19e   : > { %v943_v5 = vadd.f32 %v866_v2, %v831_v33  ;;  %1491 = vperm.xlu1 %5930, %v1161_v29   ;;  %v1104_v39 = vpack.c.bf16 %v962_v54, %v961_v10  ;;  %v1221_v33 = vld [vmem:[%s9321_s4 + $0x370] sm:$0xff]  ;;  %v5938_v10 = vld [vmem:[%s9320_s3 + $0x38] sm:$0xff]  }
 0x19f   : > { %v7354_v24 = vpop.permute.xlu0 %1521 }
 0x1a0   : > { %v959_v58 = vmax.f32 %v943_v5, 0.0  ;;  %5714 = vmatprep.subr.bf16.mxu0 %v1104_v39  ;;  %9364 = vst [vmem:[#allocation15_spill] sm:$0xff] %v7354_v24  ;;  %v5939_v5 = vld [vmem:[%s9320_s3 + $0x40] sm:$0xff]   ;;  %v5982_v24 = vld [vmem:[%s9320_s3 + $0x198] sm:$0xff]  }
 0x1a1   : > { %v7309_v12 = vpop.permute.xlu1 %1241  ;;  %1736 = vperm.xlu0 %5928, %v1210_v44   ;;  %5715 = vmatpush3.bf16.msra.mxu0 %v1104_v39  ;;  %v3137_v39 = vld [vmem:[%s9323_s6 + $0x48] sm:$0xff]  ;;  %v1203_v44 = vld [vmem:[%s9321_s4 + $0x2e0] sm:$0xff] }
 0x1a2   : > { %1481 = vperm.xlu1 %5930, %v1159_v42   ;;  %v1103_v53 = vpack.c.bf16 %v960_v0, %v959_v58  ;;  %v3139_v0 = vld [vmem:[%s9323_s6 + $0x58] sm:$0xff] }
 0x1a3   : > { %v7370_v51 = vpop.permute.xlu0 %1441 }
 0x1a4   : > { %5716 = vmatprep.subr.bf16.mxu0 %v1103_v53  ;;  %9365 = vst [vmem:[#allocation16_spill] sm:$0xff] %v7370_v51 }
 0x1a5   : > { %v7322_v20 = vpop.permute.xlu1 %1251  ;;  %1646 = vperm.xlu0 %5928, %v1192_v21   ;;  %5717 = vmatpush3.bf16.msra.mxu0 %v1103_v53  ;;  %v1187_v53 = vld [vmem:[%s9321_s4 + $0x260] sm:$0xff]  ;;  %v5940_v21 = vld [vmem:[%s9320_s3 + $0x48] sm:$0xff]  }
 0x1a6   : > { %1561 = vperm.xlu1 %5930, %v1175_v25  }
 0x1a7   : > { %v7388_v54 = vpop.permute.xlu0 %1511 }
 0x1a8   : > { %5719 = vmatmul.mubr.bf16.vlgmr.msra.gmra.mxu0 %v5932_v4  ;;  %9366 = vst [vmem:[#allocation17_spill] sm:$0xff] %v7388_v54  ;;  %v5941_v4 = vld [vmem:[%s9320_s3 + $0x50] sm:$0xff]  }
 0x1a9   : > { %v7335_v34 = vpop.permute.xlu1 %1261  ;;  %1806 = vperm.xlu0 %5928, %v1224_v55   ;;  %5722 = vmatprep.mubr.bf16.mxu0 %v5933_v61  ;;  %v3141_v61 = vld [vmem:[%s9323_s6 + $0x68] sm:$0xff] }
 0x1aa   : > { %1571 = vperm.xlu1 %5930, %v1177_v31   ;;  %v1235_v31 = vld [vmem:[%s9321_s4 + $0x3e0] sm:$0xff] }
 0x1ab   : > { %v7407_v42 = vpop.permute.xlu0 %1436 }
 0x1ad   : > { %v7346_v52 = vpop.permute.xlu1 %1271  ;;  %1726 = vperm.xlu0 %5928, %v1208_v36  }
 0x1ae   : > { %1581 = vperm.xlu1 %5930, %v1179_v56   ;;  %v3143_v56 = vld [vmem:[%s9323_s6 + $0x78] sm:$0xff] }
 0x1af   : > { %v7428_v55 = vpop.permute.xlu0 %1506 }
 0x1b0   : > { %5723 = vmatmul.mubr.bf16.gmra.mxu0 %v5934_v32  ;;  %9367 = vst [vmem:[#allocation18_spill] sm:$0xff] %v7428_v55  ;;  %v1219_v32 = vld [vmem:[%s9321_s4 + $0x360] sm:$0xff]  ;;  %v4641_v55 = vld [vmem:[%s9324_s7 + $0x28] sm:$0xff] }
 0x1b1   : > { %v7359_v40 = vpop.permute.xlu1 %1396  ;;  %3167 = vperm.xlu0 %5928, %v3129_v19   ;;  %5726 = vmatprep.mubr.bf16.mxu0 %v5935_v59  ;;  %v5942_v59 = vld [vmem:[%s9320_s3 + $0x58] sm:$0xff]  }
 0x1b2   : > { %1711 = vperm.xlu1 %5930, %v1205_v46   ;;  %v5943_v46 = vld [vmem:[%s9320_s3 + $0x60] sm:$0xff]  }
 0x1b3   : > { %v7444_v19 = vpop.permute.xlu0 %1496 }
 0x1b4   : > { %9368 = vst [vmem:[#allocation19_spill] sm:$0xff] %v7444_v19  ;;  %v5970_v19 = vld [vmem:[%s9320_s3 + $0x138] sm:$0xff]  }
 0x1b5   : > { %v7372_v26 = vpop.permute.xlu1 %1316  ;;  %3177 = vperm.xlu0 %5928, %v3131_v60  }
 0x1b6   : > { %1631 = vperm.xlu1 %5930, %v1189_v3   ;;  %v3145_v3 = vld [vmem:[%s9323_s6 + $0x88] sm:$0xff] }
 0x1b8   : > { %5727 = vmatmul.mubr.bf16.gmra.mxu0 %v5936_v8  ;;  %v1201_v8 = vld [vmem:[%s9321_s4 + $0x2d0] sm:$0xff] }
 0x1b9   : > { %v7383_v29 = vpop.permute.xlu1 %1386  ;;  %3187 = vperm.xlu0 %5928, %v3133_v30   ;;  %5730 = vmatprep.mubr.bf16.mxu0 %v5937_v41  ;;  %v3147_v41 = vld [vmem:[%s9323_s6 + $0x98] sm:$0xff]  ;;  %v7460_v30 = vpop.permute.xlu0 %1486 }
 0x1ba   : > { %1871 = vperm.xlu1 %5930, %v1237_v28   ;;  %9369 = vst [vmem:[#allocation20_spill] sm:$0xff] %v7460_v30  ;;  %v1185_v28 = vld [vmem:[%s9321_s4 + $0x250] sm:$0xff]  ;;  %v5964_v30 = vld [vmem:[%s9320_s3 + $0x108] sm:$0xff]  }
 0x1bd   : > { %v7396_v2 = vpop.permute.xlu1 %1306  ;;  %3197 = vperm.xlu0 %5928, %v3135_v43  }
 0x1be   : > { %1791 = vperm.xlu1 %5930, %v1221_v33   ;;  %v5944_v33 = vld [vmem:[%s9320_s3 + $0x68] sm:$0xff]  }
 0x1c0   : > { %5731 = vmatmul.mubr.bf16.gmra.mxu0 %v5938_v10  ;;  %v5945_v10 = vld [vmem:[%s9320_s3 + $0x70] sm:$0xff]  }
 0x1c1   : > { %v7409_v58 = vpop.permute.xlu1 %1376  ;;  %3207 = vperm.xlu0 %5928, %v3137_v39   ;;  %5734 = vmatprep.mubr.bf16.mxu0 %v5939_v5  ;;  %v4636_v5 = vld [vmem:[%s9324_s7] sm:$0xff]  ;;  %v1233_v39 = vld [vmem:[%s9321_s4 + $0x3d0] sm:$0xff] }
 0x1c2   : > { %1701 = vperm.xlu1 %5930, %v1203_v44   ;;  %v7479_v44 = vpop.permute.xlu0 %1566 }
 0x1c3   : > { %9370 = vst [vmem:[#allocation21_spill] sm:$0xff] %v7479_v44 }
 0x1c5   : > { %v7420_v25 = vpop.permute.xlu1 %1296  ;;  %3217 = vperm.xlu0 %5928, %v3139_v0  }
 0x1c6   : > { %1621 = vperm.xlu1 %5930, %v1187_v53   ;;  %v4638_v53 = vld [vmem:[%s9324_s7 + $0x10] sm:$0xff] }
 0x1c8   : > { %5735 = vmatmul.mubr.bf16.gmra.mxu0 %v5940_v21  ;;  %v1217_v21 = vld [vmem:[%s9321_s4 + $0x350] sm:$0xff] }
 0x1c9   : > { %v7433_v36 = vpop.permute.xlu1 %1366  ;;  %3227 = vperm.xlu0 %5928, %v3141_v61   ;;  %5738 = vmatprep.mubr.bf16.mxu0 %v5941_v4  ;;  %v5946_v4 = vld [vmem:[%s9320_s3 + $0x78] sm:$0xff]   ;;  %v5947_v61 = vld [vmem:[%s9320_s3 + $0x80] sm:$0xff]  }
 0x1ca   : > { %1861 = vperm.xlu1 %5930, %v1235_v31   ;;  %v4640_v31 = vld [vmem:[%s9324_s7 + $0x20] sm:$0xff] }
 0x1cd   : > { %3237 = vperm.xlu0 %5928, %v3143_v56   ;;  %v7449_v60 = vpop.permute.xlu1 %1286  ;;  %v7498_v56 = vpop.permute.xlu0 %1576 }
 0x1ce   : > { %1781 = vperm.xlu1 %5930, %v1219_v32   ;;  %9371 = vst [vmem:[#allocation22_spill] sm:$0xff] %v7498_v56  ;;  %v1199_v32 = vld [vmem:[%s9321_s4 + $0x2c0] sm:$0xff] }
 0x1d0   : > { %5739 = vmatmul.mubr.bf16.gmra.mxu0 %v5942_v59 }
 0x1d1   : > { %3247 = vperm.xlu0 %5928, %v3145_v3   ;;  %5742 = vmatprep.mubr.bf16.mxu0 %v5943_v46  ;;  %v7465_v43 = vpop.permute.xlu1 %1356  ;;  %v4642_v46 = vld [vmem:[%s9324_s7 + $0x30] sm:$0xff]  ;;  %v1183_v3 = vld [vmem:[%s9321_s4 + $0x240] sm:$0xff] }
 0x1d2   : > { %1691 = vperm.xlu1 %5930, %v1201_v8   ;;  %v5948_v8 = vld [vmem:[%s9320_s3 + $0x88] sm:$0xff]  }
 0x1d5   : > { %3257 = vperm.xlu0 %5928, %v3147_v41   ;;  %v7481_v0 = vpop.permute.xlu1 %1341  ;;  %v7514_v41 = vpop.permute.xlu0 %1586 }
 0x1d6   : > { %1611 = vperm.xlu1 %5930, %v1185_v28   ;;  %9372 = vst [vmem:[#allocation23_spill] sm:$0xff] %v7514_v41  ;;  %v5949_v28 = vld [vmem:[%s9320_s3 + $0x90] sm:$0xff]   ;;  %v5956_v41 = vld [vmem:[%s9320_s3 + $0xc8] sm:$0xff]  }
 0x1d8   : > { %5743 = vmatmul.mubr.bf16.gmra.mxu0 %v5944_v33 }
 0x1d9   : > { %4670 = vperm.xlu0 %5928, %v4636_v5   ;;  %5746 = vmatprep.mubr.bf16.mxu0 %v5945_v10  ;;  %v7503_v59 = vpop.permute.xlu1 %1331  ;;  %v4644_v10 = vld [vmem:[%s9324_s7 + $0x40] sm:$0xff] }
 0x1da   : > { %1851 = vperm.xlu1 %5930, %v1233_v39   ;;  %v1231_v5 = vld [vmem:[%s9321_s4 + $0x3c0] sm:$0xff]  ;;  %v4646_v39 = vld [vmem:[%s9324_s7 + $0x50] sm:$0xff] }
 0x1dd   : > { %4680 = vperm.xlu0 %5928, %v4638_v53   ;;  %v7519_v33 = vpop.permute.xlu1 %1321  ;;  %v7530_v53 = vpop.permute.xlu0 %1716 }
 0x1de   : > { %1771 = vperm.xlu1 %5930, %v1217_v21   ;;  %9373 = vst [vmem:[#allocation24_spill] sm:$0xff] %v7530_v53  ;;  %v1215_v21 = vld [vmem:[%s9321_s4 + $0x340] sm:$0xff]  ;;  %v5958_v53 = vld [vmem:[%s9320_s3 + $0xd8] sm:$0xff]  }
 0x1e0   : > { %5747 = vmatmul.mubr.bf16.gmra.mxu0 %v5946_v4 }
 0x1e1   : > { %4690 = vperm.xlu0 %5928, %v4640_v31   ;;  %5750 = vmatprep.mubr.bf16.mxu0 %v5947_v61  ;;  %v7535_v4 = vpop.permute.xlu1 %1401  ;;  %v5950_v61 = vld [vmem:[%s9320_s3 + $0x98] sm:$0xff]   ;;  %v5951_v31 = vld [vmem:[%s9320_s3 + $0xa0] sm:$0xff]  }
 0x1e2   : > { %1681 = vperm.xlu1 %5930, %v1199_v32   ;;  %9374 = vst [vmem:[#allocation25_spill] sm:$0xff] %v7535_v4  ;;  %v4648_v32 = vld [vmem:[%s9324_s7 + $0x60] sm:$0xff] }
 0x1e5   : > { %4700 = vperm.xlu0 %5928, %v4642_v46   ;;  %v1197_v46 = vld [vmem:[%s9321_s4 + $0x2b0] sm:$0xff] }
 0x1e6   : > { %1601 = vperm.xlu1 %5930, %v1183_v3   ;;  %v7549_v3 = vpop.permute.xlu0 %1636 }
 0x1e7   : > { %9375 = vst [vmem:[#allocation26_spill] sm:$0xff] %v7549_v3 }
 0x1e8   : > { %5751 = vmatmul.mubr.bf16.gmra.mxu0 %v5948_v8  ;;  %v7551_v8 = vpop.permute.xlu1 %1411 }
 0x1e9   : > { %4710 = vperm.xlu0 %5928, %v4644_v10   ;;  %5754 = vmatprep.mubr.bf16.mxu0 %v5949_v28  ;;  %v4650_v28 = vld [vmem:[%s9324_s7 + $0x70] sm:$0xff] }
 0x1ea   : > { %1841 = vperm.xlu1 %5930, %v1231_v5   ;;  %v1181_v10 = vld [vmem:[%s9321_s4 + $0x230] sm:$0xff]  ;;  %v5952_v5 = vld [vmem:[%s9320_s3 + $0xa8] sm:$0xff]  }
 0x1ed   : > { %4720 = vperm.xlu0 %5928, %v4646_v39   ;;  %v5953_v39 = vld [vmem:[%s9320_s3 + $0xb0] sm:$0xff]  }
 0x1ee   : > { %1761 = vperm.xlu1 %5930, %v1215_v21   ;;  %v3149_v21 = vld [vmem:[%s9323_s6 + $0xa8] sm:$0xff] }
 0x1f0   : > { %5755 = vmatmul.mubr.bf16.gmra.mxu0 %v5950_v61  ;;  %v7568_v61 = vpop.permute.xlu0 %1876 }
 0x1f1   : > { %4730 = vperm.xlu0 %5928, %v4648_v32   ;;  %5758 = vmatprep.mubr.bf16.mxu0 %v5951_v31  ;;  %9376 = vst [vmem:[#allocation27_spill] sm:$0xff] %v7568_v61  ;;  %v1229_v31 = vld [vmem:[%s9321_s4 + $0x3b0] sm:$0xff]  ;;  %v7573_v32 = vpop.permute.xlu1 %1421 }
 0x1f2   : > { %1671 = vperm.xlu1 %5930, %v1197_v46   ;;  %9377 = vst [vmem:[#allocation28_spill] sm:$0xff] %v7573_v32  ;;  %v3150_v46 = vld [vmem:[%s9323_s6 + $0xb0] sm:$0xff] }
 0x1f4   : > { %v7584_v61 = vpop.permute.xlu0 %1796 }
 0x1f5   : > { %4740 = vperm.xlu0 %5928, %v4650_v28   ;;  %v1213_v28 = vld [vmem:[%s9321_s4 + $0x330] sm:$0xff]  ;;  %9378 = vst [vmem:[#allocation29_spill] sm:$0xff] %v7584_v61 }
 0x1f6   : > { %1591 = vperm.xlu1 %5930, %v1181_v10   ;;  %v5954_v10 = vld [vmem:[%s9320_s3 + $0xb8] sm:$0xff]  }
 0x1f8   : > { %5759 = vmatmul.mubr.bf16.gmra.mxu0 %v5952_v5  ;;  %v5955_v5 = vld [vmem:[%s9320_s3 + $0xc0] sm:$0xff]   ;;  %v7600_v61 = vpop.permute.xlu0 %1706 }
 0x1f9   : > { %3267 = vperm.xlu0 %5928, %v3149_v21   ;;  %5762 = vmatprep.mubr.bf16.mxu0 %v5953_v39  ;;  %v7589_v39 = vpop.permute.xlu1 %1431  ;;  %v3151_v21 = vld [vmem:[%s9323_s6 + $0xb8] sm:$0xff]  ;;  %9379 = vst [vmem:[#allocation30_spill] sm:$0xff] %v7600_v61 }
 0x1fa   : > { %1831 = vperm.xlu1 %5930, %v1229_v31   ;;  %v1195_v31 = vld [vmem:[%s9321_s4 + $0x2a0] sm:$0xff] }
 0x1fd   : > { %3272 = vperm.xlu0 %5928, %v3150_v46   ;;  %v3152_v46 = vld [vmem:[%s9323_s6 + $0xc0] sm:$0xff]  ;;  %v7605_v44 = vpop.permute.xlu1 %1556 }
 0x1fe   : > { %1751 = vperm.xlu1 %5930, %v1213_v28   ;;  %v1227_v28 = vld [vmem:[%s9321_s4 + $0x3a0] sm:$0xff]  ;;  %9380 = vst [vmem:[#allocation31_spill] sm:$0xff] %v7605_v44 }
 0x200   : > { %5763 = vmatmul.mubr.bf16.gmra.mxu0 %v5954_v10  ;;  %v5957_v10 = vld [vmem:[%s9320_s3 + $0xd0] sm:$0xff]  }
 0x201   : > { %3277 = vperm.xlu0 %5928, %v3151_v21   ;;  %5766 = vmatprep.mubr.bf16.mxu0 %v5955_v5  ;;  %v3153_v5 = vld [vmem:[%s9323_s6 + $0xc8] sm:$0xff]  ;;  %v1211_v21 = vld [vmem:[%s9321_s4 + $0x320] sm:$0xff]  ;;  %v7621_v61 = vpop.permute.xlu1 %1476 }
 0x202   : > { %1661 = vperm.xlu1 %5930, %v1195_v31   ;;  %v7619_v31 = vpop.permute.xlu0 %1626  ;;  %9382 = vst [vmem:[#allocation33_spill] sm:$0xff] %v7621_v61 }
 0x203   : > { %9381 = vst [vmem:[#allocation32_spill] sm:$0xff] %v7619_v31 }
 0x205   : > { %3282 = vperm.xlu0 %5928, %v3152_v46   ;;  %v3154_v46 = vld [vmem:[%s9323_s6 + $0xd0] sm:$0xff]  ;;  %v7643_v31 = vpop.permute.xlu1 %1546 }
 0x206   : > { %1821 = vperm.xlu1 %5930, %v1227_v28   ;;  %v1193_v28 = vld [vmem:[%s9321_s4 + $0x290] sm:$0xff]  ;;  %9384 = vst [vmem:[#allocation35_spill] sm:$0xff] %v7643_v31 }
 0x208   : > { %5767 = vmatmul.mubr.bf16.gmra.mxu0 %v5956_v41  ;;  %v5959_v41 = vld [vmem:[%s9320_s3 + $0xe0] sm:$0xff]  }
 0x209   : > { %3287 = vperm.xlu0 %5928, %v3153_v5   ;;  %5770 = vmatprep.mubr.bf16.mxu0 %v5957_v10  ;;  %v3155_v10 = vld [vmem:[%s9323_s6 + $0xd8] sm:$0xff]  ;;  %v7638_v5 = vpop.permute.xlu0 %1866 }
 0x20a   : > { %1741 = vperm.xlu1 %5930, %v1211_v21   ;;  %9383 = vst [vmem:[#allocation34_spill] sm:$0xff] %v7638_v5  ;;  %v1225_v21 = vld [vmem:[%s9321_s4 + $0x390] sm:$0xff]  ;;  %v5960_v5 = vld [vmem:[%s9320_s3 + $0xe8] sm:$0xff]  }
 0x20d   : > { %3292 = vperm.xlu0 %5928, %v3154_v46   ;;  %v3156_v46 = vld [vmem:[%s9323_s6 + $0xe0] sm:$0xff]  ;;  %v7654_v3 = vpop.permute.xlu0 %1786 }
 0x20e   : > { %1651 = vperm.xlu1 %5930, %v1193_v28   ;;  %v1209_v28 = vld [vmem:[%s9321_s4 + $0x310] sm:$0xff]  ;;  %9385 = vst [vmem:[#allocation36_spill] sm:$0xff] %v7654_v3 }
 0x210   : > { %5771 = vmatmul.mubr.bf16.gmra.mxu0 %v5958_v53  ;;  %v5961_v53 = vld [vmem:[%s9320_s3 + $0xf0] sm:$0xff]  }
 0x211   : > { %3297 = vperm.xlu0 %5928, %v3155_v10   ;;  %5774 = vmatprep.mubr.bf16.mxu0 %v5959_v41  ;;  %v7659_v41 = vpop.permute.xlu1 %1466  ;;  %v3157_v10 = vld [vmem:[%s9323_s6 + $0xe8] sm:$0xff]  ;;  %v7670_v3 = vpop.permute.xlu0 %1696 }
 0x212   : > { %1811 = vperm.xlu1 %5930, %v1225_v21   ;;  %9386 = vst [vmem:[#allocation37_spill] sm:$0xff] %v7659_v41  ;;  %v1191_v21 = vld [vmem:[%s9321_s4 + $0x280] sm:$0xff]  ;;  %9387 = vst [vmem:[#allocation38_spill] sm:$0xff] %v7670_v3  ;;  %v5990_v41 = vld [vmem:[%s9320_s3 + $0x1d8] sm:$0xff]  }
 0x215   : > { %3302 = vperm.xlu0 %5928, %v3156_v46   ;;  %v3158_v46 = vld [vmem:[%s9323_s6 + $0xf0] sm:$0xff]  ;;  %v7675_v4 = vpop.permute.xlu1 %1536 }
 0x216   : > { %1731 = vperm.xlu1 %5930, %v1209_v28   ;;  %v1223_v28 = vld [vmem:[%s9321_s4 + $0x380] sm:$0xff]  ;;  %9388 = vst [vmem:[#allocation39_spill] sm:$0xff] %v7675_v4 }
 0x218   : > { %5775 = vmatmul.mubr.bf16.gmra.mxu0 %v5960_v5  ;;  %v5963_v5 = vld [vmem:[%s9320_s3 + $0x100] sm:$0xff]  }
 0x219   : > { %3307 = vperm.xlu0 %5928, %v3157_v10   ;;  %5778 = vmatprep.mubr.bf16.mxu0 %v5961_v53  ;;  %v3159_v53 = vld [vmem:[%s9323_s6 + $0xf8] sm:$0xff]  ;;  %v1207_v10 = vld [vmem:[%s9321_s4 + $0x300] sm:$0xff]  ;;  %v7691_v3 = vpop.permute.xlu1 %1456 }
 0x21a   : > { %1641 = vperm.xlu1 %5930, %v1191_v21   ;;  %v7689_v21 = vpop.permute.xlu0 %1616  ;;  %9390 = vst [vmem:[#allocation41_spill] sm:$0xff] %v7691_v3 }
 0x21b   : > { %9389 = vst [vmem:[#allocation40_spill] sm:$0xff] %v7689_v21 }
 0x21d   : > { %3312 = vperm.xlu0 %5928, %v3158_v46   ;;  %v4663_v46 = vld [vmem:[%s9324_s7 + $0xd8] sm:$0xff]  ;;  %v7713_v21 = vpop.permute.xlu1 %1526 }
 0x21e   : > { %1801 = vperm.xlu1 %5930, %v1223_v28   ;;  %v3128_v28 = vld [vmem:[%s9323_s6] sm:$0xff]  ;;  %9392 = vst [vmem:[#allocation43_spill] sm:$0xff] %v7713_v21 }
 0x21f   : > { %v5991_v21 = vld [vmem:[%s9320_s3 + $0x1e0] sm:$0xff]  }
 0x220   : > { %5779 = vmatmul.mubr.bf16.gmra.mxu0 %v5962_v50  ;;  %v5965_v50 = vld [vmem:[%s9320_s3 + $0x110] sm:$0xff]  }
 0x221   : > { %3317 = vperm.xlu0 %5928, %v3159_v53   ;;  %5782 = vmatprep.mubr.bf16.mxu0 %v5963_v5  ;;  %v4665_v5 = vld [vmem:[%s9324_s7 + $0xe8] sm:$0xff]  ;;  %v7708_v53 = vpop.permute.xlu0 %1856 }
 0x222   : > { %1721 = vperm.xlu1 %5930, %v1207_v10   ;;  %9391 = vst [vmem:[#allocation42_spill] sm:$0xff] %v7708_v53  ;;  %v3130_v10 = vld [vmem:[%s9323_s6 + $0x10] sm:$0xff]  ;;  %v5966_v53 = vld [vmem:[%s9320_s3 + $0x118] sm:$0xff]  }
 0x225   : > { %4805 = vperm.xlu0 %5928, %v4663_v46   ;;  %v4667_v46 = vld [vmem:[%s9324_s7 + $0xf8] sm:$0xff]  ;;  %v7724_v32 = vpop.permute.xlu0 %1776 }
 0x226   : > { %3162 = vperm.xlu1 %5930, %v3128_v28   ;;  %v3132_v28 = vld [vmem:[%s9323_s6 + $0x20] sm:$0xff]  ;;  %9393 = vst [vmem:[#allocation44_spill] sm:$0xff] %v7724_v32 }
 0x228   : > { %5783 = vmatmul.mubr.bf16.gmra.mxu0 %v5964_v30  ;;  %v5967_v30 = vld [vmem:[%s9320_s3 + $0x120] sm:$0xff]  }
 0x229   : > { %4815 = vperm.xlu0 %5928, %v4665_v5   ;;  %5786 = vmatprep.mubr.bf16.mxu0 %v5965_v50  ;;  %v7729_v50 = vpop.permute.xlu1 %1446  ;;  %v3134_v5 = vld [vmem:[%s9323_s6 + $0x30] sm:$0xff] }
 0x22a   : > { %3172 = vperm.xlu1 %5930, %v3130_v10   ;;  %9394 = vst [vmem:[#allocation45_spill] sm:$0xff] %v7729_v50  ;;  %v3136_v10 = vld [vmem:[%s9323_s6 + $0x40] sm:$0xff]  ;;  %v5978_v50 = vld [vmem:[%s9320_s3 + $0x178] sm:$0xff]  }
 0x22d   : > { %4825 = vperm.xlu0 %5928, %v4667_v46   ;;  %v7737_v32 = vpop.permute.xlu1 %1516  ;;  %v5968_v46 = vld [vmem:[%s9320_s3 + $0x128] sm:$0xff]  }
 0x22e   : > { %3182 = vperm.xlu1 %5930, %v3132_v28   ;;  %9395 = vst [vmem:[#allocation46_spill] sm:$0xff] %v7737_v32  ;;  %v5969_v28 = vld [vmem:[%s9320_s3 + $0x130] sm:$0xff]   ;;  %v4643_v32 = vld [vmem:[%s9324_s7 + $0x38] sm:$0xff] }
 0x230   : > { %5787 = vmatmul.mubr.bf16.gmra.mxu0 %v5966_v53  ;;  %v3138_v53 = vld [vmem:[%s9323_s6 + $0x50] sm:$0xff] }
 0x231   : > { %5790 = vmatprep.mubr.bf16.mxu0 %v5967_v30  ;;  %v7748_v30 = vpop.permute.xlu1 %1501 }
 0x232   : > { %3192 = vperm.xlu1 %5930, %v3134_v5   ;;  %9396 = vst [vmem:[#allocation47_spill] sm:$0xff] %v7748_v30  ;;  %v3140_v5 = vld [vmem:[%s9323_s6 + $0x60] sm:$0xff] }
 0x236   : > { %3202 = vperm.xlu1 %5930, %v3136_v10   ;;  %v5971_v10 = vld [vmem:[%s9320_s3 + $0x140] sm:$0xff]  }
 0x238   : > { %5791 = vmatmul.mubr.bf16.gmra.mxu0 %v5968_v46  ;;  %v3142_v46 = vld [vmem:[%s9323_s6 + $0x70] sm:$0xff] }
 0x239   : > { %5794 = vmatprep.mubr.bf16.mxu0 %v5969_v28  ;;  %v7762_v28 = vpop.permute.xlu1 %1491 }
 0x23a   : > { %3212 = vperm.xlu1 %5930, %v3138_v53   ;;  %9397 = vst [vmem:[#allocation48_spill] sm:$0xff] %v7762_v28  ;;  %v3144_v53 = vld [vmem:[%s9323_s6 + $0x80] sm:$0xff]  ;;  %v5974_v28 = vld [vmem:[%s9320_s3 + $0x158] sm:$0xff]  }
 0x23d   : > { %v7773_v30 = vpop.permute.xlu1 %1481 }
 0x23e   : > { %3222 = vperm.xlu1 %5930, %v3140_v5   ;;  %v5973_v5 = vld [vmem:[%s9320_s3 + $0x150] sm:$0xff]   ;;  %9398 = vst [vmem:[#allocation49_spill] sm:$0xff] %v7773_v30  ;;  %v5980_v30 = vld [vmem:[%s9320_s3 + $0x188] sm:$0xff]  }
 0x240   : > { %5795 = vmatmul.mubr.bf16.gmra.mxu0 %v5970_v19  ;;  %v3146_v19 = vld [vmem:[%s9323_s6 + $0x90] sm:$0xff] }
 0x241   : > { %5798 = vmatprep.mubr.bf16.mxu0 %v5971_v10  ;;  %v3148_v10 = vld [vmem:[%s9323_s6 + $0xa0] sm:$0xff] }
 0x242   : > { %3232 = vperm.xlu1 %5930, %v3142_v46   ;;  %v7781_v46 = vpop.permute.xlu1 %1561 }
 0x243   : > { %9399 = vst [vmem:[#allocation50_spill] sm:$0xff] %v7781_v46  ;;  %v7800_v46 = vld [vmem:[%s9322_s5] sm:$0xff] }
 0x244   : > { %9401 = vst [vmem:[#allocation52_spill] sm:$0xff] %v7800_v46 }
 0x246   : > { %3242 = vperm.xlu1 %5930, %v3144_v53   ;;  %v5975_v53 = vld [vmem:[%s9320_s3 + $0x160] sm:$0xff]  }
 0x248   : > { %5799 = vmatmul.mubr.bf16.gmra.mxu0 %v5972_v62  ;;  %v4637_v62 = vld [vmem:[%s9324_s7 + $0x8] sm:$0xff] }
 0x249   : > { %5802 = vmatprep.mubr.bf16.mxu0 %v5973_v5  ;;  %v7792_v5 = vpop.permute.xlu1 %1571 }
 0x24a   : > { %3252 = vperm.xlu1 %5930, %v3146_v19   ;;  %9400 = vst [vmem:[#allocation51_spill] sm:$0xff] %v7792_v5  ;;  %v4639_v19 = vld [vmem:[%s9324_s7 + $0x18] sm:$0xff]  ;;  %v4658_v5 = vld [vmem:[%s9324_s7 + $0xb0] sm:$0xff] }
 0x24d   : > { %v7820_v54 = vpop.permute.xlu1 %1581 }
 0x24e   : > { %3262 = vperm.xlu1 %5930, %v3148_v10   ;;  %v7805_v10 = vld [vmem:[%s9322_s5 + $0x20] sm:$0xff]  ;;  %9403 = vst [vmem:[#allocation54_spill] sm:$0xff] %v7820_v54 }
 0x24f   : > { %9402 = vst [vmem:[#allocation53_spill] sm:$0xff] %v7805_v10 }
 0x250   : > { %5803 = vmatmul.mubr.bf16.gmra.mxu0 %v5974_v28  ;;  %v5976_v28 = vld [vmem:[%s9320_s3 + $0x168] sm:$0xff]  }
 0x251   : > { %5806 = vmatprep.mubr.bf16.mxu0 %v5975_v53  ;;  %v5052_v53 = vcombine.high %v7800_v46, %v7805_v10 }
 0x252   : > { %4675 = vperm.xlu1 %5930, %v4637_v62   ;;  %v5977_v62 = vld [vmem:[%s9320_s3 + $0x170] sm:$0xff]  }
 0x253   : > { %3992 = vmatprep.mubr.bf16.mxu1 %v5052_v53  ;;  %v7831_v53 = vpop.permute.xlu1 %1711 }
 0x254   : > { %9404 = vst [vmem:[#allocation55_spill] sm:$0xff] %v7831_v53 }
 0x256   : > { %4685 = vperm.xlu1 %5930, %v4639_v19   ;;  %v5979_v19 = vld [vmem:[%s9320_s3 + $0x180] sm:$0xff]  }
 0x258   : > { %5807 = vmatmul.mubr.bf16.gmra.mxu0 %v5976_v28  ;;  %v4645_v28 = vld [vmem:[%s9324_s7 + $0x48] sm:$0xff] }
 0x259   : > { %5810 = vmatprep.mubr.bf16.mxu0 %v5977_v62  ;;  %v7839_v62 = vpop.permute.xlu1 %1631 }
 0x25a   : > { %4695 = vperm.xlu1 %5930, %v4641_v55   ;;  %v4647_v55 = vld [vmem:[%s9324_s7 + $0x58] sm:$0xff]  ;;  %9405 = vst [vmem:[#allocation56_spill] sm:$0xff] %v7839_v62 }
 0x25b   : > { %v4651_v62 = vld [vmem:[%s9324_s7 + $0x78] sm:$0xff] }
 0x25e   : > { %4705 = vperm.xlu1 %5930, %v4643_v32   ;;  %v5981_v32 = vld [vmem:[%s9320_s3 + $0x190] sm:$0xff]  }
 0x260   : > { %5811 = vmatmul.mubr.bf16.gmra.mxu0 %v5978_v50  ;;  %v4649_v50 = vld [vmem:[%s9324_s7 + $0x68] sm:$0xff] }
 0x261   : > { %5814 = vmatprep.mubr.bf16.mxu0 %v5979_v19 }
 0x262   : > { %4715 = vperm.xlu1 %5930, %v4645_v28   ;;  %v7850_v28 = vpop.permute.xlu1 %1871 }
 0x263   : > { %9406 = vst [vmem:[#allocation57_spill] sm:$0xff] %v7850_v28 }
 0x266   : > { %4725 = vperm.xlu1 %5930, %v4647_v55  }
 0x268   : > { %v5720_v19 = vpop.f32.mrf.mxu0  ;;  %5815 = vmatmul.mubr.bf16.gmra.mxu0 %v5980_v30 }
 0x269   : > { %5818 = vmatprep.mubr.bf16.mxu0 %v5981_v32  ;;  %v2306_v54 = vadd.f32 %v5720_v19, %v7322_v20  ;;  %v5983_v32 = vld [vmem:[%s9320_s3 + $0x1a0] sm:$0xff]  }
 0x26a   : > { %4735 = vperm.xlu1 %5930, %v4649_v50   ;;  %v2297_v53 = vpop.f32.mrf.mxu0 }
 0x26b   : > { %v2298_v56 = vadd.f32 %v2297_v53, %v7309_v12  ;;  %5995 = vtanh.f32 %v2306_v54  ;;  %v4652_v12 = vld [vmem:[%s9324_s7 + $0x80] sm:$0xff]  ;;  %v7868_v53 = vpop.permute.xlu1 %1791 }
 0x26c   : > { %v5721_v55 = vpop.f32.mrf.mxu0  ;;  %9407 = vst [vmem:[#allocation58_spill] sm:$0xff] %v7868_v53 }
 0x26d   : > { %v2309_v30 = vadd.f32 %v5721_v55, %v6976_v11 }
 0x26e   : > { %4745 = vperm.xlu1 %5930, %v4651_v62   ;;  %v2300_v20 = vpop.f32.mrf.mxu0  ;;  %v4653_v62 = vld [vmem:[%s9324_s7 + $0x88] sm:$0xff] }
 0x26f   : > { %5997 = vtanh.f32 %v2309_v30  ;;  %v2301_v50 = vadd.f32 %v2300_v20, %v6958_v23  ;;  %v5984_v30 = vld [vmem:[%s9320_s3 + $0x1a8] sm:$0xff]  }
 0x270   : > { %5999 = vtanh.f32 %v2298_v56  ;;  %v5724_v19 = vpop.f32.mrf.mxu0  ;;  %5819 = vmatmul.mubr.bf16.gmra.mxu0 %v5982_v24  ;;  %v5985_v24 = vld [vmem:[%s9320_s3 + $0x1b0] sm:$0xff]  }
 0x271   : > { %6001 = vtanh.f32 %v2301_v50  ;;  %5822 = vmatprep.mubr.bf16.mxu0 %v5983_v32  ;;  %v2322_v11 = vadd.f32 %v5724_v19, %v7346_v52  ;;  %v7882_v52 = vpop.permute.xlu1 %1701  ;;  %v4655_v19 = vld [vmem:[%s9324_s7 + $0x98] sm:$0xff] }
 0x272   : > { %4750 = vperm.xlu1 %5930, %v4652_v12   ;;  %v2313_v54 = vpop.f32.mrf.mxu0  ;;  %9408 = vst [vmem:[#allocation59_spill] sm:$0xff] %v7882_v52 }
 0x273   : > { %v2314_v23 = vadd.f32 %v2313_v54, %v7335_v34  ;;  %6003 = vtanh.f32 %v2322_v11  ;;  %v4654_v34 = vld [vmem:[%s9324_s7 + $0x90] sm:$0xff] }
 0x274   : > { %v5725_v55 = vpop.f32.mrf.mxu0 }
 0x275   : > { %v2325_v56 = vadd.f32 %v5725_v55, %v7117_v63  ;;  %v7899_v11 = vpop.permute.xlu1 %1621  ;;  %v5987_v55 = vld [vmem:[%s9320_s3 + $0x1c0] sm:$0xff]  }
 0x276   : > { %4755 = vperm.xlu1 %5930, %v4653_v62   ;;  %v2316_v32 = vpop.f32.mrf.mxu0  ;;  %9409 = vst [vmem:[#allocation60_spill] sm:$0xff] %v7899_v11  ;;  %v5986_v62 = vld [vmem:[%s9320_s3 + $0x1b8] sm:$0xff]  }
 0x277   : > { %6005 = vtanh.f32 %v2325_v56  ;;  %v2317_v20 = vadd.f32 %v2316_v32, %v6990_v13  ;;  %v4656_v32 = vld [vmem:[%s9324_s7 + $0xa0] sm:$0xff] }
 0x278   : > { %6007 = vtanh.f32 %v2314_v23  ;;  %v7888_v50 = vpop.f32.mrf.mxu0  ;;  %5823 = vmatmul.mubr.bf16.gmra.mxu0 %v5984_v30  ;;  %v7892_v12 = vpop.eup %5995 }
 0x279   : > { %6009 = vtanh.f32 %v2317_v20  ;;  %5826 = vmatprep.mubr.bf16.mxu0 %v5985_v24  ;;  %v7922_v28 = vpop.permute.xlu1 %1861  ;;  %v5988_v20 = vld [vmem:[%s9320_s3 + $0x1c8] sm:$0xff]   ;;  %v2338_v9 = vadd.f32 %v7888_v50, %v7064_v17 }
 0x27a   : > { %4760 = vperm.xlu1 %5930, %v4654_v34   ;;  %v7890_v63 = vpop.f32.mrf.mxu0  ;;  %9411 = vst [vmem:[#allocation62_spill] sm:$0xff] %v7922_v28 }
 0x27b   : > { %6011 = vtanh.f32 %v2338_v9 }
 0x27c   : > { %v7897_v13 = vpop.eup %5997  ;;  %v7901_v54 = vpop.f32.mrf.mxu0 }
 0x27d   : > { %v7906_v23 = vpop.eup %5999  ;;  %v7950_v38 = vpop.permute.xlu1 %1781 }
 0x27e   : > { %9410 = vst [vmem:[#allocation61_spill] sm:$0xff] %v7906_v23  ;;  %v7913_v56 = vpop.eup %6001  ;;  %4765 = vperm.xlu1 %5930, %v4655_v19   ;;  %v7915_v24 = vpop.f32.mrf.mxu0  ;;  %v4657_v19 = vld [vmem:[%s9324_s7 + $0xa8] sm:$0xff]  ;;  %9412 = vst [vmem:[#allocation63_spill] sm:$0xff] %v7950_v38 }
 0x280   : > { %v5732_v34 = vpop.f32.mrf.mxu0  ;;  %5827 = vmatmul.mubr.bf16.gmra.mxu0 %v5986_v62  ;;  %v7924_v30 = vpop.eup %6003  ;;  %v5989_v62 = vld [vmem:[%s9320_s3 + $0x1d0] sm:$0xff]  }
 0x281   : > { %5830 = vmatprep.mubr.bf16.mxu0 %v5987_v55  ;;  %v7967_v38 = vpop.permute.xlu1 %1691 }
 0x282   : > { %4770 = vperm.xlu1 %5930, %v4656_v32   ;;  %v2345_v53 = vpop.f32.mrf.mxu0  ;;  %9413 = vst [vmem:[#allocation64_spill] sm:$0xff] %v7967_v38  ;;  %v5992_v38 = vld [vmem:[%s9320_s3 + $0x1e8] sm:$0xff]  }
 0x283   : > { %v2346_v46 = vadd.f32 %v2345_v53, %v7033_v1 }
 0x284   : > { %v7929_v52 = vpop.eup %6005  ;;  %v5733_v11 = vpop.f32.mrf.mxu0 }
 0x285   : > { %v7934_v51 = vpop.eup %6007  ;;  %v7981_v47 = vpop.permute.xlu1 %1611  ;;  %v2357_v17 = vadd.f32 %v5733_v11, %v7372_v26 }
 0x286   : > { %v7941_v32 = vpop.eup %6009  ;;  %4775 = vperm.xlu1 %5930, %v4657_v19   ;;  %v7943_v28 = vpop.f32.mrf.mxu0  ;;  %v4659_v19 = vld [vmem:[%s9324_s7 + $0xb8] sm:$0xff]  ;;  %9414 = vst [vmem:[#allocation65_spill] sm:$0xff] %v7981_v47 }
 0x287   : > { %v2349_v9 = vadd.f32 %v7943_v28, %v7396_v2  ;;  %v2330_v2 = vadd.f32 %v7890_v63, %v7083_v45 }
 0x288   : > { %v7952_v31 = vpop.f32.mrf.mxu0  ;;  %5831 = vmatmul.mubr.bf16.gmra.mxu0 %v5988_v20  ;;  %v4660_v20 = vld [vmem:[%s9324_s7 + $0xc0] sm:$0xff] }
 0x289   : > { %5834 = vmatprep.mubr.bf16.mxu0 %v5989_v62  ;;  %v7996_v47 = vpop.permute.xlu1 %1851 }
 0x28a   : > { %4780 = vperm.xlu1 %5930, %v4658_v5   ;;  %v7954_v55 = vpop.f32.mrf.mxu0  ;;  %9415 = vst [vmem:[#allocation66_spill] sm:$0xff] %v7996_v47  ;;  %v4666_v47 = vld [vmem:[%s9324_s7 + $0xf0] sm:$0xff] }
 0x28c   : > { %v7959_v4 = vpop.f32.mrf.mxu0 }
 0x28d   : > { %v8012_v10 = vpop.permute.xlu1 %1771 }
 0x28e   : > { %4785 = vperm.xlu1 %5930, %v4659_v19   ;;  %v7969_v5 = vpop.f32.mrf.mxu0 }
 0x290   : > { %v7974_v62 = vpop.f32.mrf.mxu0  ;;  %5835 = vmatmul.mubr.bf16.gmra.mxu0 %v5990_v41  ;;  %v5993_v41 = vld [vmem:[%s9320_s3 + $0x1f0] sm:$0xff]  }
 0x291   : > { %5838 = vmatprep.mubr.bf16.mxu0 %v5991_v21  ;;  %v8019_v1 = vpop.permute.xlu1 %1681 }
 0x292   : > { %4790 = vperm.xlu1 %5930, %v4660_v20   ;;  %v7976_v44 = vpop.f32.mrf.mxu0  ;;  %v4662_v20 = vld [vmem:[%s9324_s7 + $0xd0] sm:$0xff] }
 0x294   : > { %v7983_v19 = vpop.f32.mrf.mxu0 }
 0x295   : > { %v2389_v45 = vadd.f32 %v7983_v19, %v7465_v43 }
 0x296   : > { %4795 = vperm.xlu1 %5930, %v4661_v48   ;;  %v7991_v21 = vpop.f32.mrf.mxu0  ;;  %v5994_v48 = vld [vmem:[%s9320_s3 + $0x1f8] sm:$0xff]  }
 0x297   : > { %v2381_v63 = vadd.f32 %v7991_v21, %v7140_v49 }
 0x298   : > { %v5744_v61 = vpop.f32.mrf.mxu0  ;;  %5839 = vmatmul.mubr.bf16.gmra.mxu0 %v5992_v38  ;;  %v2341_v38 = vadd.f32 %v7901_v54, %v7420_v25 }
 0x299   : > { %5842 = vmatprep.mubr.bf16.mxu0 %v5993_v41 }
 0x29a   : > { %4800 = vperm.xlu1 %5930, %v4662_v20   ;;  %v2393_v22 = vpop.f32.mrf.mxu0  ;;  %v2354_v20 = vadd.f32 %v5732_v34, %v7009_v14  ;;  %6013 = vtanh.f32 %v2341_v38  ;;  %v4897_v14 = vld [vmem:[#allocation2] sm:$0x1] }
 0x29c   : > { %v5745_v3 = vpop.f32.mrf.mxu0  ;;  %6015 = vtanh.f32 %v2354_v20 }
 0x29d   : > { %6017 = vtanh.f32 %v2346_v46  ;;  %v2402_v46 = vadd.f32 %v5744_v61, %v7051_v57 }
 0x29e   : > { %4810 = vperm.xlu1 %5930, %v4664_v16   ;;  %v2396_v41 = vpop.f32.mrf.mxu0  ;;  %6019 = vtanh.f32 %v2357_v17  ;;  %v2373_v17 = vadd.f32 %v7959_v4, %v7152_v35  ;;  %v2365_v35 = vadd.f32 %v7969_v5, %v7163_v27 }
 0x29f   : > { %v2397_v53 = vadd.f32 %v2396_v41, %v7433_v36  ;;  %v2333_v36 = vadd.f32 %v7915_v24, %v7449_v60 }
 0x2a0   : > { %v5748_v23 = vpop.f32.mrf.mxu0  ;;  %5843 = vmatmul.mubr.bf16.gmra.mxu0 %v5994_v48 }
 0x2a1   : > { %v2418_v25 = vadd.f32 %v5748_v23, %v7000_v7  ;;  %v2405_v7 = vadd.f32 %v5745_v3, %v7409_v58  ;;  %v8034_v3 = vpop.eup %6011 }
 0x2a2   : > { %4820 = vperm.xlu1 %5930, %v4666_v47   ;;  %v2409_v16 = vpop.f32.mrf.mxu0 }
 0x2a3   : > { %v2410_v50 = vadd.f32 %v2409_v16, %v7019_v15  ;;  %6021 = vtanh.f32 %v2418_v25 }
 0x2a4   : > { %v5749_v54 = vpop.f32.mrf.mxu0 }
 0x2a5   : > { %v2421_v34 = vadd.f32 %v5749_v54, %v7359_v40 }
 0x2a6   : > { %4900 = vperm.xlu1 %5930, %v4897_v14   ;;  %v2412_v26 = vpop.f32.mrf.mxu0 }
 0x2a7   : > { %6023 = vtanh.f32 %v2421_v34  ;;  %v2413_v47 = vadd.f32 %v2412_v26, %v7383_v29  ;;  %v2394_v29 = vadd.f32 %v2393_v22, %v7074_v6  ;;  %v8040_v61 = vpop.eup %6013  ;;  %v2386_v6 = vadd.f32 %v7974_v62, %v7096_v18 }
 0x2a8   : > { %6025 = vtanh.f32 %v2410_v50  ;;  %v5752_v15 = vpop.f32.mrf.mxu0  ;;  %v2378_v18 = vadd.f32 %v7976_v44, %v7481_v0  ;;  %v3069_v27 = vpack.c.bf16 %v8040_v61, %v8034_v3 }
 0x2a9   : > { %6027 = vtanh.f32 %v2413_v47  ;;  %v2434_v40 = vadd.f32 %v5752_v15, %v7551_v8  ;;  %v6016_v28 = vpop.eup %6015 }
 0x2aa   : > { %6029 = vtanh.f32 %v2349_v9  ;;  %v8028_v11 = vpop.f32.mrf.mxu0  ;;  %v6018_v22 = vpop.eup %6017 }
 0x2ab   : > { %6031 = vtanh.f32 %v2405_v7  ;;  %v6020_v60 = vpop.eup %6019 }
 0x2ac   : > { %6033 = vtanh.f32 %v2402_v46  ;;  %v5753_v58 = vpop.f32.mrf.mxu0 }
 0x2ad   : > { %6035 = vtanh.f32 %v2397_v53  ;;  %v2437_v57 = vadd.f32 %v5753_v58, %v7206_v37 }
 0x2ae   : > { %6037 = vtanh.f32 %v2434_v40  ;;  %v8038_v8 = vpop.f32.mrf.mxu0 }
 0x2af   : > { %6039 = vtanh.f32 %v2437_v57 }
 0x2b0   : > { %6041 = vtanh.f32 %v2330_v2  ;;  %v5756_v37 = vpop.f32.mrf.mxu0  ;;  %v6022_v48 = vpop.eup %6021 }
 0x2b1   : > { %6043 = vtanh.f32 %v2394_v29  ;;  %v2450_v23 = vadd.f32 %v5756_v37, %v7589_v39  ;;  %v3071_v39 = vpack.c.bf16 %v6020_v60, %v6016_v28 }
 0x2b2   : > { %6045 = vtanh.f32 %v2333_v36  ;;  %v8049_v24 = vpop.f32.mrf.mxu0 }
 0x2b3   : > { %6047 = vtanh.f32 %v2389_v45 }
 0x2b4   : > { %v6024_v43 = vpop.eup %6023  ;;  %6049 = vtanh.f32 %v2386_v6  ;;  %v5757_v19 = vpop.f32.mrf.mxu0 }
 0x2b5   : > { %v6026_v38 = vpop.eup %6025  ;;  %6051 = vtanh.f32 %v2381_v63  ;;  %v2453_v62 = vadd.f32 %v5757_v19, %v7407_v42  ;;  %v3079_v49 = vpack.c.bf16 %v6024_v43, %v6022_v48  ;;  %v2370_v42 = vadd.f32 %v7952_v31, %v7503_v59 }
 0x2b6   : > { %v6028_v21 = vpop.eup %6027  ;;  %6053 = vtanh.f32 %v2450_v23  ;;  %v8054_v41 = vpop.f32.mrf.mxu0  ;;  %v2362_v59 = vadd.f32 %v7954_v55, %v7519_v33  ;;  %v9416_v63 = vpack.c.bf16 %v7929_v52, %v7924_v30 }
 0x2b7   : > { %v6030_v20 = vpop.eup %6029  ;;  %6055 = vtanh.f32 %v2453_v62  ;;  %5254 = vmatprep.subr.bf16.mxu1 %v3079_v49  ;;  %v3078_v25 = vpack.c.bf16 %v6028_v21, %v6026_v38  ;;  %v9417_v38 = vpack.c.bf16 %v7941_v32, %v7934_v51  ;;  %v8102_v62 = vpop.permute.xlu0 %1686  ;;  %v9418_v21 = vpack.c.bf16 %v7897_v13, %v7892_v12  ;;  %v2944_v51 = vld [vmem:[%s9322_s5 + $0x40] sm:$0xff] }
 0x2b8   : > { %v6032_v16 = vpop.eup %6031  ;;  %v8058_v14 = vpop.f32.mrf.mxu0  ;;  %5255 = vmatpush3.bf16.msra.mxu1 %v3071_v39  ;;  %6057 = vtanh.f32 %v2378_v18  ;;  %v3070_v54 = vpack.c.bf16 %v6030_v20, %v6018_v22  ;;  %v2948_v32 = vld [vmem:[%s9322_s5 + $0x60] sm:$0xff] }
 0x2b9   : > { %v6034_v44 = vpop.eup %6033  ;;  %5256 = vmatprep.subr.bf16.mxu1 %v3078_v25  ;;  %6059 = vtanh.f32 %v2373_v17  ;;  %v8111_v39 = vpop.permute.xlu1 %1601  ;;  %v9419_v12 = vld [vmem:[#allocation61_spill] sm:$0xff] }
 0x2ba   : > { %v6036_v0 = vpop.eup %6035  ;;  %v8062_v50 = vpop.f32.mrf.mxu0  ;;  %v3077_v4 = vpack.c.bf16 %v6032_v16, %v6034_v44  ;;  %6061 = vtanh.f32 %v2370_v42  ;;  %v9420_v13 = vpack.c.bf16 %v7913_v56, %v9419_v12  ;;  %v5060_v16 = vcombine.high %v2944_v51, %v2948_v32  ;;  %v8131_v44 = vld [vmem:[%s9322_s5 + $0x10] sm:$0xff] }
 0x2bb   : > { %v8064_v34 = vpop.eup %6037  ;;  %6063 = vtanh.f32 %v2365_v35  ;;  %v8121_v17 = vpop.permute.xlu0 %1606  ;;  %v8136_v42 = vld [vmem:[%s9322_s5 + $0x30] sm:$0xff] }
 0x2bc   : > { %v8068_v9 = vpop.eup %6039  ;;  %v8070_v26 = vpop.f32.mrf.mxu0  ;;  %5257 = vmatpush3.bf16.msra.mxu1 %v3070_v54  ;;  %6065 = vtanh.f32 %v2362_v59  ;;  %v5056_v54 = vcombine.high %v8131_v44, %v8136_v42  ;;  %v9422_v56 = vld [vmem:[#allocation52_spill] sm:$0xff] }
 0x2bd   : > { %v6042_v7 = vpop.eup %6041  ;;  %5258 = vmatprep.subr.bf16.mxu1 %v3077_v4  ;;  %v8142_v35 = vpop.permute.xlu1 %1841  ;;  %v9423_v4 = vld [vmem:[#allocation53_spill] sm:$0xff] }
 0x2be   : > { %v6044_v47 = vpop.eup %6043  ;;  %v8076_v46 = vpop.f32.mrf.mxu0  ;;  %9421 = vst [vmem:[#allocation61_spill] sm:$0xff] %v8142_v35  ;;  %4314 = vmatprep.mubr.bf16.mxu0 %v5056_v54  ;;  %v9433_v54 = vld [vmem:[#allocation9_spill] sm:$0xff] }
 0x2bf   : > { %v6046_v5 = vpop.eup %6045  ;;  %v3076_v15 = vpack.c.bf16 %v6036_v0, %v6044_v47 }
 0x2c0   : > { %v6048_v53 = vpop.eup %6047  ;;  %v8080_v40 = vpop.f32.mrf.mxu0  ;;  %5259 = vmatpush3.bf16.msra.mxu1 %v3069_v27  ;;  %v3068_v58 = vpack.c.bf16 %v6046_v5, %v6042_v7  ;;  %v9424_v7 = vcombine.low %v9422_v56, %v9423_v4  ;;  %v2952_v27 = vld [vmem:[%s9322_s5 + $0x80] sm:$0xff] }
 0x2c1   : > { %v6050_v2 = vpop.eup %6049  ;;  %5260 = vmatprep.subr.bf16.mxu1 %v3076_v15  ;;  %v2956_v5 = vld [vmem:[%s9322_s5 + $0xa0] sm:$0xff]  ;;  %v8155_v15 = vpop.permute.xlu0 %1846 }
 0x2c2   : > { %v6052_v33 = vpop.eup %6051  ;;  %v2473_v55 = vpop.f32.mrf.mxu0  ;;  %v3075_v57 = vpack.c.bf16 %v6048_v53, %v6050_v2  ;;  %v5059_v2 = vcombine.low %v2944_v51, %v2948_v32  ;;  %v9431_v51 = vld [vmem:[#allocation33_spill] sm:$0xff] }
 0x2c3   : > { %v8082_v29 = vpop.eup %6053 }
 0x2c4   : > { %v8084_v36 = vpop.eup %6055  ;;  %v5765_v45 = vpop.f32.mrf.mxu0  ;;  %5261 = vmatpush3.bf16.msra.mxu1 %v3068_v58  ;;  %v5068_v58 = vcombine.high %v2952_v27, %v2956_v5 }
 0x2c5   : > { %5262 = vmatprep.subr.bf16.mxu1 %v3075_v57  ;;  %v3083_v3 = vpack.c.bf16 %v8084_v36, %v8082_v29  ;;  %v6058_v61 = vpop.eup %6057  ;;  %v8157_v57 = vpop.permute.xlu1 %1761  ;;  %v2485_v32 = vadd.f32 %v5765_v45, %v9431_v51  ;;  %v9439_v51 = vld [vmem:[#allocation43_spill] sm:$0xff] }
 0x2c6   : > { %v8088_v28 = vpop.f32.mrf.mxu0  ;;  %v3074_v6 = vpack.c.bf16 %v6052_v33, %v6058_v61  ;;  %v6060_v37 = vpop.eup %6059  ;;  %9425 = vst [vmem:[#allocation52_spill] sm:$0xff] %v8157_v57  ;;  %v9426_v61 = vld [vmem:[#allocation8_spill] sm:$0xff] }
 0x2c7   : > { %v6062_v60 = vpop.eup %6061 }
 0x2c8   : > { %v8090_v22 = vpop.f32.mrf.mxu0  ;;  %5263 = vmatpush3.bf16.msra.mxu1 %v9416_v63  ;;  %v3073_v48 = vpack.c.bf16 %v6060_v37, %v6062_v60  ;;  %v6064_v43 = vpop.eup %6063  ;;  %v9427_v37 = vld [vmem:[#allocation41_spill] sm:$0xff] }
 0x2c9   : > { %5264 = vmatprep.subr.bf16.mxu1 %v3074_v6  ;;  %v6066_v18 = vpop.eup %6065  ;;  %v2466_v6 = vadd.f32 %v8058_v14, %v9426_v61  ;;  %v2469_v63 = vadd.f32 %v8070_v26, %v9427_v37  ;;  %v2960_v14 = vld [vmem:[%s9322_s5 + $0xc0] sm:$0xff] }
 0x2ca   : > { %v8095_v23 = vpop.f32.mrf.mxu0  ;;  %v3072_v52 = vpack.c.bf16 %v6064_v43, %v6066_v18  ;;  %v9430_v18 = vld [vmem:[#allocation10_spill] sm:$0xff]  ;;  %v9435_v61 = vld [vmem:[#allocation37_spill] sm:$0xff] }
 0x2cb   : > { %6067 = vtanh.f32 %v2466_v6  ;;  %v2964_v26 = vld [vmem:[%s9322_s5 + $0xe0] sm:$0xff]  ;;  %v2477_v6 = vadd.f32 %v8088_v28, %v9435_v61 }
 0x2cc   : > { %v8097_v19 = vpop.f32.mrf.mxu0  ;;  %5265 = vmatpush3.bf16.msra.mxu1 %v9417_v38  ;;  %v8165_v38 = vpop.permute.xlu0 %1766  ;;  %6069 = vtanh.f32 %v2469_v63  ;;  %v5076_v4 = vcombine.high %v2960_v14, %v2964_v26  ;;  %v9436_v63 = vld [vmem:[#allocation39_spill] sm:$0xff]  ;;  %v2968_v28 = vld [vmem:[%s9322_s5 + $0x100] sm:$0xff] }
 0x2cd   : > { %5266 = vmatprep.subr.bf16.mxu1 %v3073_v48  ;;  %v9428_v48 = vld [vmem:[#allocation7_spill] sm:$0xff]  ;;  %9429 = vst [vmem:[#allocation53_spill] sm:$0xff] %v8165_v38 }
 0x2ce   : > { %v8104_v49 = vpop.f32.mrf.mxu0  ;;  %v2482_v43 = vadd.f32 %v8080_v40, %v9428_v48  ;;  %v9432_v40 = vld [vmem:[#allocation14_spill] sm:$0xff] }
 0x2d0   : > { %v8106_v30 = vpop.f32.mrf.mxu0  ;;  %5267 = vmatpush3.bf16.msra.mxu1 %v9418_v21  ;;  %6071 = vtanh.f32 %v2482_v43  ;;  %v9437_v43 = vld [vmem:[#allocation35_spill] sm:$0xff] }
 0x2d1   : > { %5268 = vmatprep.subr.bf16.mxu1 %v3072_v52  ;;  %v2474_v52 = vadd.f32 %v2473_v55, %v9430_v18  ;;  %v5067_v55 = vcombine.low %v2952_v27, %v2956_v5  ;;  %v9438_v5 = vld [vmem:[#allocation6_spill] sm:$0xff] }
 0x2d2   : > { %v8119_v20 = vpop.f32.mrf.mxu0 }
 0x2d3   : > { %6073 = vtanh.f32 %v2474_v52 }
 0x2d4   : > { %v8123_v25 = vpop.f32.mrf.mxu0  ;;  %5269 = vmatpush3.bf16.msra.mxu1 %v9420_v13  ;;  %6075 = vtanh.f32 %v2485_v32 }
 0x2d6   : > { %v8138_v0 = vpop.f32.mrf.mxu0 }
 0x2d7   : > { %3993 = vmatmul.mubr.bf16.vlgmr.msra.gmra.mxu1 %v9424_v7  ;;  %v9434_v7 = vld [vmem:[#allocation31_spill] sm:$0xff] }
 0x2d8   : > { %v5776_v47 = vpop.f32.mrf.mxu0  ;;  %4000 = vmatprep.mubr.bf16.mxu1 %v5060_v16  ;;  %v8176_v16 = vpop.permute.xlu1 %1671 }
 0x2d9   : > { %v2530_v18 = vadd.f32 %v5776_v47, %v9438_v5  ;;  %v5075_v47 = vcombine.low %v2960_v14, %v2964_v26 }
 0x2da   : > { %v2521_v53 = vpop.f32.mrf.mxu0 }
 0x2dc   : > { %v5777_v33 = vpop.f32.mrf.mxu0 }
 0x2dd   : > { %v2533_v48 = vadd.f32 %v5777_v33, %v9436_v63  ;;  %v2972_v33 = vld [vmem:[%s9322_s5 + $0x120] sm:$0xff] }
 0x2de   : > { %v2524_v60 = vpop.f32.mrf.mxu0 }
 0x2df   : > { %4001 = vmatmul.mubr.bf16.gmra.mxu1 %v5059_v2  ;;  %v2525_v32 = vadd.f32 %v2524_v60, %v9439_v51 }
 0x2e0   : > { %v5780_v21 = vpop.f32.mrf.mxu0  ;;  %4008 = vmatprep.mubr.bf16.mxu1 %v5068_v58  ;;  %v8180_v58 = vpop.permute.xlu0 %1676 }
 0x2e1   : > { %v2546_v12 = vadd.f32 %v5780_v21, %v9432_v40  ;;  %v1592_v21 = vpop.permute.xlu1 %1591  ;;  %v9440_v40 = vld [vmem:[#allocation51_spill] sm:$0xff] }
 0x2e2   : > { %v2537_v13 = vpop.f32.mrf.mxu0 }
 0x2e3   : > { %v2538_v56 = vadd.f32 %v2537_v13, %v9433_v54  ;;  %6077 = vtanh.f32 %v2546_v12  ;;  %v9441_v54 = vld [vmem:[#allocation16_spill] sm:$0xff] }
 0x2e4   : > { %v5781_v45 = vpop.f32.mrf.mxu0  ;;  %v2458_v60 = vadd.f32 %v8062_v50, %v9441_v54  ;;  %v9446_v50 = vld [vmem:[#allocation46_spill] sm:$0xff] }
 0x2e5   : > { %v2549_v2 = vadd.f32 %v5781_v45, %v9434_v7  ;;  %v5084_v45 = vcombine.high %v2968_v28, %v2972_v33  ;;  %v8209_v26 = vpop.permute.xlu1 %1831 }
 0x2e6   : > { %v2540_v37 = vpop.f32.mrf.mxu0  ;;  %9445 = vst [vmem:[#allocation8_spill] sm:$0xff] %v8209_v26  ;;  %v9466_v26 = vld [vmem:[#allocation56_spill] sm:$0xff] }
 0x2e7   : > { %6079 = vtanh.f32 %v2549_v2  ;;  %v2541_v27 = vadd.f32 %v2540_v37, %v9437_v43  ;;  %4009 = vmatmul.mubr.bf16.gmra.mxu1 %v5067_v55  ;;  %v1597_v55 = vpop.permute.xlu0 %1596  ;;  %v9443_v2 = vld [vmem:[#allocation22_spill] sm:$0xff]  ;;  %v8201_v37 = vpop.eup %6067  ;;  %v2517_v43 = vadd.f32 %v8123_v25, %v9446_v50  ;;  %v9451_v50 = vld [vmem:[#allocation13_spill] sm:$0xff] }
 0x2e8   : > { %6081 = vtanh.f32 %v2538_v56  ;;  %v5784_v52 = vpop.f32.mrf.mxu0  ;;  %4016 = vmatprep.mubr.bf16.mxu1 %v5076_v4  ;;  %v9442_v4 = vld [vmem:[#allocation15_spill] sm:$0xff]  ;;  %v8207_v14 = vpop.eup %6069  ;;  %v8225_v25 = vld [vmem:[%s9322_s5 + $0x160] sm:$0xff] }
 0x2e9   : > { %6083 = vtanh.f32 %v2541_v27  ;;  %v2562_v12 = vadd.f32 %v5784_v52, %v9440_v40  ;;  %v2522_v7 = vadd.f32 %v2521_v53, %v9442_v4  ;;  %v6072_v53 = vpop.eup %6071  ;;  %v9447_v27 = vld [vmem:[#allocation17_spill] sm:$0xff]  ;;  %v9448_v52 = vld [vmem:[#allocation18_spill] sm:$0xff] }
 0x2ea   : > { %6085 = vtanh.f32 %v2477_v6  ;;  %v8195_v13 = vpop.f32.mrf.mxu0  ;;  %v9444_v6 = vld [vmem:[#allocation45_spill] sm:$0xff]  ;;  %v2514_v5 = vadd.f32 %v8106_v30, %v9447_v27  ;;  %v2509_v51 = vadd.f32 %v8138_v0, %v9448_v52  ;;  %v5083_v0 = vcombine.low %v2968_v28, %v2972_v33 }
 0x2eb   : > { %6087 = vtanh.f32 %v2533_v48  ;;  %v2461_v63 = vadd.f32 %v8076_v46, %v9444_v6  ;;  %v6074_v46 = vpop.eup %6073 }
 0x2ec   : > { %6089 = vtanh.f32 %v2530_v18  ;;  %v5785_v56 = vpop.f32.mrf.mxu0  ;;  %v6076_v40 = vpop.eup %6075 }
 0x2ed   : > { %6091 = vtanh.f32 %v2525_v32  ;;  %v2565_v61 = vadd.f32 %v5785_v56, %v9443_v2  ;;  %v8220_v32 = vld [vmem:[%s9322_s5 + $0x140] sm:$0xff]  ;;  %v9450_v2 = vld [vmem:[#allocation47_spill] sm:$0xff]  ;;  %v3087_v33 = vpack.c.bf16 %v6076_v40, %v6072_v53  ;;  %v9454_v53 = vld [vmem:[#allocation48_spill] sm:$0xff] }
 0x2ee   : > { %6093 = vtanh.f32 %v2562_v12  ;;  %v8205_v48 = vpop.f32.mrf.mxu0  ;;  %v8227_v12 = vpop.permute.xlu0 %1836  ;;  %v2498_v40 = vadd.f32 %v8090_v22, %v9454_v53  ;;  %v9455_v22 = vld [vmem:[#allocation20_spill] sm:$0xff] }
 0x2ef   : > { %6095 = vtanh.f32 %v2565_v61  ;;  %4017 = vmatmul.mubr.bf16.gmra.mxu1 %v5075_v47  ;;  %9449 = vst [vmem:[#allocation41_spill] sm:$0xff] %v8227_v12  ;;  %v2506_v61 = vadd.f32 %v8119_v20, %v9450_v2  ;;  %v2493_v2 = vadd.f32 %v8104_v49, %v9455_v22 }
 0x2f0   : > { %6097 = vtanh.f32 %v2458_v60  ;;  %v5788_v18 = vpop.f32.mrf.mxu0  ;;  %4024 = vmatprep.mubr.bf16.mxu1 %v5084_v45  ;;  %v6078_v54 = vpop.eup %6077  ;;  %v5092_v45 = vcombine.high %v8220_v32, %v8225_v25 }
 0x2f1   : > { %6099 = vtanh.f32 %v2522_v7  ;;  %v2578_v30 = vadd.f32 %v5788_v18, %v1592_v21  ;;  %v8233_v7 = vpop.permute.xlu1 %1751 }
 0x2f2   : > { %6101 = vtanh.f32 %v2461_v63  ;;  %v8229_v47 = vpop.f32.mrf.mxu0 }
 0x2f3   : > { %6103 = vtanh.f32 %v2517_v43  ;;  %v2445_v43 = vadd.f32 %v8054_v41, %v9451_v50 }
 0x2f4   : > { %v6080_v60 = vpop.eup %6079  ;;  %6105 = vtanh.f32 %v2514_v5  ;;  %v5789_v56 = vpop.f32.mrf.mxu0  ;;  %v9452_v5 = vld [vmem:[#allocation19_spill] sm:$0xff] }
 0x2f5   : > { %v6082_v4 = vpop.eup %6081  ;;  %6107 = vtanh.f32 %v2509_v51  ;;  %v2581_v6 = vadd.f32 %v5789_v56, %v1597_v55  ;;  %v3095_v21 = vpack.c.bf16 %v6080_v60, %v6078_v54  ;;  %v2501_v18 = vadd.f32 %v8097_v19, %v9452_v5  ;;  %v8243_v51 = vpop.permute.xlu0 %1756  ;;  %v9453_v55 = vld [vmem:[#allocation28_spill] sm:$0xff]  ;;  %v2984_v19 = vld [vmem:[%s9322_s5 + $0x180] sm:$0xff] }
 0x2f6   : > { %v6084_v63 = vpop.eup %6083  ;;  %6109 = vtanh.f32 %v2578_v30  ;;  %v8239_v28 = vpop.f32.mrf.mxu0  ;;  %v2442_v54 = vadd.f32 %v8049_v24, %v9453_v55  ;;  %v2988_v30 = vld [vmem:[%s9322_s5 + $0x1a0] sm:$0xff] }
 0x2f7   : > { %v6086_v27 = vpop.eup %6085  ;;  %6111 = vtanh.f32 %v2581_v6  ;;  %4025 = vmatmul.mubr.bf16.gmra.mxu1 %v5083_v0  ;;  %5366 = vmatprep.subr.bf16.mxu1 %v3095_v21  ;;  %v3094_v52 = vpack.c.bf16 %v6084_v63, %v6082_v4  ;;  %v8261_v4 = vpop.permute.xlu1 %1661  ;;  %v5091_v6 = vcombine.low %v8220_v32, %v8225_v25  ;;  %v5100_v50 = vcombine.high %v2984_v19, %v2988_v30  ;;  %v9457_v32 = vld [vmem:[#allocation12_spill] sm:$0xff] }
 0x2f8   : > { %v6088_v20 = vpop.eup %6087  ;;  %v8247_v60 = vpop.f32.mrf.mxu0  ;;  %5367 = vmatpush3.bf16.msra.mxu1 %v3087_v33  ;;  %4032 = vmatprep.mubr.bf16.mxu1 %v5092_v45  ;;  %6113 = vtanh.f32 %v2506_v61  ;;  %v3086_v56 = vpack.c.bf16 %v6086_v27, %v6074_v46  ;;  %v2429_v25 = vadd.f32 %v8038_v8, %v9457_v32  ;;  %v2992_v8 = vld [vmem:[%s9322_s5 + $0x1c0] sm:$0xff] }
 0x2f9   : > { %v6090_v41 = vpop.eup %6089  ;;  %5368 = vmatprep.subr.bf16.mxu1 %v3094_v52  ;;  %6115 = vtanh.f32 %v2445_v43  ;;  %v9456_v43 = vld [vmem:[#allocation49_spill] sm:$0xff]  ;;  %v8275_v5 = vpop.permute.xlu0 %1666  ;;  %v3085_v52 = vpack.c.bf16 %v8207_v14, %v8201_v37 }
 0x2fa   : > { %v6092_v0 = vpop.eup %6091  ;;  %v8257_v24 = vpop.f32.mrf.mxu0  ;;  %6117 = vtanh.f32 %v2501_v18  ;;  %v3093_v61 = vpack.c.bf16 %v6088_v20, %v6090_v41  ;;  %v2490_v33 = vadd.f32 %v8095_v23, %v9456_v43  ;;  %v2996_v37 = vld [vmem:[%s9322_s5 + $0x1e0] sm:$0xff] }
 0x2fb   : > { %v8259_v45 = vpop.eup %6093  ;;  %6119 = vtanh.f32 %v2442_v54  ;;  %v9458_v54 = vld [vmem:[#allocation25_spill] sm:$0xff]  ;;  %v5107_v29 = vcombine.low %v2992_v8, %v2996_v37 }
 0x2fc   : > { %v8267_v21 = vpop.eup %6095  ;;  %v8269_v63 = vpop.f32.mrf.mxu0  ;;  %5369 = vmatpush3.bf16.msra.mxu1 %v3086_v56  ;;  %6121 = vtanh.f32 %v2498_v40  ;;  %v2426_v41 = vadd.f32 %v8028_v11, %v9458_v54  ;;  %v3004_v54 = vld [vmem:[%s9322_s5 + $0x220] sm:$0xff] }
 0x2fd   : > { %v6098_v46 = vpop.eup %6097  ;;  %5370 = vmatprep.subr.bf16.mxu1 %v3093_v61  ;;  %6123 = vtanh.f32 %v2493_v2  ;;  %v8287_v56 = vpop.permute.xlu1 %1821  ;;  %v5099_v61 = vcombine.low %v2984_v19, %v2988_v30 }
 0x2fe   : > { %v6100_v27 = vpop.eup %6099  ;;  %v8279_v18 = vpop.f32.mrf.mxu0  ;;  %9459 = vst [vmem:[#allocation7_spill] sm:$0xff] %v8287_v56  ;;  %6125 = vtanh.f32 %v2490_v33  ;;  %v5108_v33 = vcombine.high %v2992_v8, %v2996_v37  ;;  %v9461_v8 = vpack.c.bf16 %v8068_v9, %v8064_v34 }
 0x2ff   : > { %v6102_v20 = vpop.eup %6101  ;;  %4033 = vmatmul.mubr.bf16.gmra.mxu1 %v5091_v6  ;;  %v3092_v55 = vpack.c.bf16 %v6092_v0, %v6100_v27  ;;  %6127 = vtanh.f32 %v2429_v25 }
 0x300   : > { %v6104_v23 = vpop.eup %6103  ;;  %v8285_v53 = vpop.f32.mrf.mxu0  ;;  %5371 = vmatpush3.bf16.msra.mxu1 %v3085_v52  ;;  %4040 = vmatprep.mubr.bf16.mxu1 %v5100_v50  ;;  %v3084_v0 = vpack.c.bf16 %v6102_v20, %v6098_v46  ;;  %6129 = vtanh.f32 %v2426_v41 }
 0x301   : > { %v6106_v40 = vpop.eup %6105  ;;  %5372 = vmatprep.subr.bf16.mxu1 %v3092_v55  ;;  %v8301_v50 = vpop.permute.xlu0 %1826  ;;  %v2610_v57 = vadd.f32 %v8285_v53, %v9466_v26  ;;  %v3024_v26 = vld [vmem:[%s9322_s5 + $0x2c0] sm:$0xff] }
 0x302   : > { %v6108_v14 = vpop.eup %6107  ;;  %v8295_v11 = vpop.f32.mrf.mxu0  ;;  %v3091_v2 = vpack.c.bf16 %v6104_v23, %v6106_v40  ;;  %9460 = vst [vmem:[#allocation10_spill] sm:$0xff] %v8301_v50  ;;  %v3000_v23 = vld [vmem:[%s9322_s5 + $0x200] sm:$0xff]  ;;  %v2589_v50 = vadd.f32 %v8279_v18, %v8121_v17  ;;  %v9469_v17 = vld [vmem:[#allocation32_spill] sm:$0xff] }
 0x303   : > { %v8297_v22 = vpop.eup %6109  ;;  %v8309_v52 = vpop.permute.xlu1 %1741  ;;  %v3028_v53 = vld [vmem:[%s9322_s5 + $0x2e0] sm:$0xff] }
 0x304   : > { %v8299_v6 = vpop.eup %6111  ;;  %v8303_v43 = vpop.f32.mrf.mxu0  ;;  %5373 = vmatpush3.bf16.msra.mxu1 %v3084_v0 }
 0x305   : > { %5374 = vmatprep.subr.bf16.mxu1 %v3091_v2  ;;  %v6114_v32 = vpop.eup %6113  ;;  %v8322_v40 = vpop.permute.xlu0 %1746 }
 0x306   : > { %v8307_v25 = vpop.f32.mrf.mxu0  ;;  %v6116_v46 = vpop.eup %6115  ;;  %v3090_v19 = vpack.c.bf16 %v6108_v14, %v6114_v32 }
 0x307   : > { %4041 = vmatmul.mubr.bf16.gmra.mxu1 %v5099_v61  ;;  %v6118_v30 = vpop.eup %6117  ;;  %v5116_v61 = vcombine.high %v3000_v23, %v3004_v54  ;;  %v2605_v18 = vadd.f32 %v8307_v25, %v9469_v17  ;;  %v9473_v17 = vld [vmem:[#allocation64_spill] sm:$0xff] }
 0x308   : > { %v8311_v20 = vpop.f32.mrf.mxu0  ;;  %5375 = vmatpush3.bf16.msra.mxu1 %v3083_v3  ;;  %4048 = vmatprep.mubr.bf16.mxu1 %v5108_v33  ;;  %v6120_v55 = vpop.eup %6119 }
 0x309   : > { %5376 = vmatprep.subr.bf16.mxu1 %v3090_v19  ;;  %v6122_v41 = vpop.eup %6121  ;;  %v3082_v0 = vpack.c.bf16 %v6116_v46, %v6120_v55  ;;  %v8328_v33 = vpop.permute.xlu1 %1651  ;;  %v3008_v46 = vld [vmem:[%s9322_s5 + $0x240] sm:$0xff] }
 0x30a   : > { %v8324_v14 = vpop.f32.mrf.mxu0  ;;  %v3089_v2 = vpack.c.bf16 %v6118_v30, %v6122_v41  ;;  %v6124_v36 = vpop.eup %6123  ;;  %v3012_v30 = vld [vmem:[%s9322_s5 + $0x260] sm:$0xff] }
 0x30b   : > { %v6126_v32 = vpop.eup %6125  ;;  %v8332_v27 = vpop.permute.xlu0 %1656  ;;  %v5124_v34 = vcombine.high %v3008_v46, %v3012_v30 }
 0x30c   : > { %v8326_v3 = vpop.f32.mrf.mxu0  ;;  %5377 = vmatpush3.bf16.msra.mxu1 %v3082_v0  ;;  %v6128_v59 = vpop.eup %6127  ;;  %v3088_v49 = vpack.c.bf16 %v6124_v36, %v6126_v32  ;;  %v3016_v32 = vld [vmem:[%s9322_s5 + $0x280] sm:$0xff] }
 0x30d   : > { %5378 = vmatprep.subr.bf16.mxu1 %v3089_v2  ;;  %v6130_v37 = vpop.eup %6129  ;;  %v8347_v0 = vpop.permute.xlu1 %1811  ;;  %v5115_v2 = vcombine.low %v3000_v23, %v3004_v54  ;;  %v9464_v23 = vld [vmem:[#allocation65_spill] sm:$0xff] }
 0x30e   : > { %v8330_v19 = vpop.f32.mrf.mxu0  ;;  %v3080_v41 = vpack.c.bf16 %v6128_v59, %v6130_v37  ;;  %9462 = vst [vmem:[#allocation33_spill] sm:$0xff] %v8347_v0  ;;  %v3020_v59 = vld [vmem:[%s9322_s5 + $0x2a0] sm:$0xff]  ;;  %v2594_v54 = vadd.f32 %v8247_v60, %v9464_v23  ;;  %v2586_v37 = vadd.f32 %v8257_v24, %v8111_v39  ;;  %v9467_v39 = vld [vmem:[#allocation60_spill] sm:$0xff] }
 0x30f   : > { %4049 = vmatmul.mubr.bf16.gmra.mxu1 %v5107_v29  ;;  %v8351_v9 = vpop.permute.xlu0 %1816  ;;  %v5132_v56 = vcombine.high %v3016_v32, %v3020_v59  ;;  %v2602_v24 = vadd.f32 %v8295_v11, %v9467_v39  ;;  %v9472_v39 = vld [vmem:[#allocation24_spill] sm:$0xff] }
 0x310   : > { %v8334_v31 = vpop.f32.mrf.mxu0  ;;  %5379 = vmatpush3.bf16.msra.mxu1 %v9461_v8  ;;  %4056 = vmatprep.mubr.bf16.mxu1 %v5116_v61  ;;  %9463 = vst [vmem:[#allocation14_spill] sm:$0xff] %v8351_v9  ;;  %6131 = vtanh.f32 %v2594_v54 }
 0x311   : > { %5380 = vmatprep.subr.bf16.mxu1 %v3088_v49  ;;  %v1732_v61 = vpop.permute.xlu1 %1731  ;;  %6133 = vtanh.f32 %v2586_v37 }
 0x312   : > { %v8345_v55 = vpop.f32.mrf.mxu0 }
 0x314   : > { %v8349_v29 = vpop.f32.mrf.mxu0  ;;  %5381 = vmatpush3.bf16.msra.mxu1 %v3080_v41  ;;  %v5123_v41 = vcombine.low %v3008_v46, %v3012_v30  ;;  %v9468_v46 = vld [vmem:[#allocation26_spill] sm:$0xff] }
 0x315   : > { %v8373_v23 = vpop.permute.xlu1 %1641 }
 0x316   : > { %v8353_v49 = vpop.f32.mrf.mxu0 }
 0x317   : > { %4057 = vmatmul.mubr.bf16.gmra.mxu1 %v5115_v2  ;;  %v8365_v2 = vpop.permute.xlu0 %1736 }
 0x318   : > { %v5808_v36 = vpop.f32.mrf.mxu0  ;;  %4064 = vmatprep.mubr.bf16.mxu1 %v5124_v34  ;;  %v9465_v34 = vld [vmem:[#allocation40_spill] sm:$0xff] }
 0x319   : > { %v2597_v0 = vadd.f32 %v8269_v63, %v9465_v34  ;;  %v2613_v63 = vadd.f32 %v8303_v43, %v9468_v46  ;;  %v8391_v34 = vpop.permute.xlu1 %1801  ;;  %v2658_v12 = vadd.f32 %v5808_v36, %v9473_v17  ;;  %v3032_v36 = vld [vmem:[%s9322_s5 + $0x300] sm:$0xff] }
 0x31a   : > { %v2649_v8 = vpop.f32.mrf.mxu0 }
 0x31b   : > { %6135 = vtanh.f32 %v2597_v0  ;;  %v8387_v11 = vpop.permute.xlu0 %1646  ;;  %v9470_v0 = vld [vmem:[#allocation55_spill] sm:$0xff] }
 0x31c   : > { %v5809_v9 = vpop.f32.mrf.mxu0  ;;  %6137 = vtanh.f32 %v2589_v50  ;;  %v9471_v50 = vld [vmem:[#allocation59_spill] sm:$0xff] }
 0x31d   : > { %6139 = vtanh.f32 %v2610_v57  ;;  %v9474_v57 = vld [vmem:[#allocation38_spill] sm:$0xff] }
 0x31e   : > { %v2652_v60 = vpop.f32.mrf.mxu0  ;;  %6141 = vtanh.f32 %v2602_v24  ;;  %v2661_v35 = vadd.f32 %v5809_v9, %v9474_v57 }
 0x31f   : > { %4065 = vmatmul.mubr.bf16.gmra.mxu1 %v5123_v41  ;;  %6143 = vtanh.f32 %v2613_v63  ;;  %v5140_v41 = vcombine.high %v3024_v26, %v3028_v53 }
 0x320   : > { %v5812_v30 = vpop.f32.mrf.mxu0  ;;  %4072 = vmatprep.mubr.bf16.mxu1 %v5132_v56  ;;  %v5131_v56 = vcombine.low %v3016_v32, %v3020_v59  ;;  %6145 = vtanh.f32 %v2605_v18  ;;  %v8397_v32 = vpop.permute.xlu0 %1806  ;;  %v2650_v59 = vadd.f32 %v2649_v8, %v8019_v1  ;;  %v2653_v18 = vadd.f32 %v2652_v60, %v8102_v62 }
 0x321   : > { %v2674_v54 = vadd.f32 %v5812_v30, %v9470_v0  ;;  %v9475_v30 = vld [vmem:[#allocation30_spill] sm:$0xff]  ;;  %v1722_v1 = vpop.permute.xlu1 %1721  ;;  %v5139_v8 = vcombine.low %v3024_v26, %v3028_v53  ;;  %v2645_v53 = vadd.f32 %v8349_v29, %v8180_v58 }
 0x322   : > { %v2665_v43 = vpop.f32.mrf.mxu0  ;;  %v8432_v58 = vld [vmem:[%s9322_s5 + $0x360] sm:$0xff] }
 0x323   : > { %v2666_v37 = vadd.f32 %v2665_v43, %v9471_v50  ;;  %6147 = vtanh.f32 %v2674_v54  ;;  %v8407_v54 = vpop.eup %6131 }
 0x324   : > { %v5813_v25 = vpop.f32.mrf.mxu0  ;;  %v8409_v43 = vpop.eup %6133 }
 0x325   : > { %v2677_v46 = vadd.f32 %v5813_v25, %v9472_v39  ;;  %v2642_v25 = vadd.f32 %v8334_v31, %v8176_v16  ;;  %v2637_v31 = vadd.f32 %v8353_v49, %v8275_v5  ;;  %v8427_v16 = vld [vmem:[%s9322_s5 + $0x340] sm:$0xff] }
 0x326   : > { %v2668_v38 = vpop.f32.mrf.mxu0 }
 0x327   : > { %6149 = vtanh.f32 %v2677_v46  ;;  %v2669_v24 = vadd.f32 %v2668_v38, %v9475_v30  ;;  %4073 = vmatmul.mubr.bf16.gmra.mxu1 %v5131_v56  ;;  %v3036_v38 = vld [vmem:[%s9322_s5 + $0x320] sm:$0xff]  ;;  %v2634_v46 = vadd.f32 %v8345_v55, %v8261_v4 }
 0x328   : > { %6151 = vtanh.f32 %v2666_v37  ;;  %v5816_v63 = vpop.f32.mrf.mxu0  ;;  %4080 = vmatprep.mubr.bf16.mxu1 %v5140_v41  ;;  %v5148_v60 = vcombine.high %v3032_v36, %v3036_v38  ;;  %v8411_v56 = vpop.eup %6135  ;;  %v5147_v30 = vcombine.low %v3032_v36, %v3036_v38 }
 0x329   : > { %6153 = vtanh.f32 %v2669_v24  ;;  %v2690_v0 = vadd.f32 %v5816_v63, %v1732_v61  ;;  %v8414_v37 = vpop.eup %6137 }
 0x32a   : > { %6155 = vtanh.f32 %v2658_v12  ;;  %v2681_v9 = vpop.f32.mrf.mxu0  ;;  %v1727_v12 = vpop.permute.xlu0 %1726 }
 0x32b   : > { %6157 = vtanh.f32 %v2661_v35  ;;  %v2682_v62 = vadd.f32 %v2681_v9, %v1722_v1  ;;  %v6140_v26 = vpop.eup %6139  ;;  %v9476_v1 = vld [vmem:[#allocation23_spill] sm:$0xff] }
 0x32c   : > { %6159 = vtanh.f32 %v2650_v59  ;;  %v5817_v61 = vpop.f32.mrf.mxu0  ;;  %v6142_v39 = vpop.eup %6141  ;;  %v5156_v59 = vcombine.high %v8427_v16, %v8432_v58 }
 0x32d   : > { %6161 = vtanh.f32 %v2653_v18  ;;  %v2693_v50 = vadd.f32 %v5817_v61, %v8365_v2  ;;  %v6144_v17 = vpop.eup %6143 }
 0x32e   : > { %6163 = vtanh.f32 %v2690_v0  ;;  %v2684_v35 = vpop.f32.mrf.mxu0  ;;  %v6146_v29 = vpop.eup %6145  ;;  %v3103_v36 = vpack.c.bf16 %v6144_v17, %v6140_v26 }
 0x32f   : > { %6165 = vtanh.f32 %v2693_v50  ;;  %v2685_v41 = vadd.f32 %v2684_v35, %v1727_v12  ;;  %4081 = vmatmul.mubr.bf16.gmra.mxu1 %v5139_v8  ;;  %v3102_v35 = vpack.c.bf16 %v6146_v29, %v6142_v39  ;;  %v2618_v39 = vadd.f32 %v8324_v14, %v8373_v23 }
 0x330   : > { %6167 = vtanh.f32 %v2682_v62  ;;  %v5820_v2 = vpop.f32.mrf.mxu0  ;;  %4088 = vmatprep.mubr.bf16.mxu1 %v5148_v60  ;;  %v6148_v57 = vpop.eup %6147  ;;  %v3101_v29 = vpack.c.bf16 %v8411_v56, %v8407_v54  ;;  %v3056_v54 = vld [vmem:[%s9322_s5 + $0x3c0] sm:$0xff] }
 0x331   : > { %6169 = vtanh.f32 %v2685_v41  ;;  %v2706_v4 = vadd.f32 %v5820_v2, %v8233_v7  ;;  %v2573_v7 = vadd.f32 %v8239_v28, %v9476_v1  ;;  %v3060_v56 = vld [vmem:[%s9322_s5 + $0x3e0] sm:$0xff] }
 0x332   : > { %6171 = vtanh.f32 %v2642_v25  ;;  %v2697_v55 = vpop.f32.mrf.mxu0  ;;  %v2626_v25 = vadd.f32 %v8311_v20, %v8328_v33  ;;  %v2621_v20 = vadd.f32 %v8330_v19, %v8387_v11  ;;  %v5172_v1 = vcombine.high %v3056_v54, %v3060_v56 }
 0x333   : > { %6173 = vtanh.f32 %v2645_v53  ;;  %v2698_v49 = vadd.f32 %v2697_v55, %v8309_v52  ;;  %v2629_v52 = vadd.f32 %v8326_v3, %v8332_v27  ;;  %v3048_v27 = vld [vmem:[%s9322_s5 + $0x380] sm:$0xff]  ;;  %v5155_v53 = vcombine.low %v8427_v16, %v8432_v58 }
 0x334   : > { %v6150_v5 = vpop.eup %6149  ;;  %6175 = vtanh.f32 %v2634_v46  ;;  %v5821_v24 = vpop.f32.mrf.mxu0 }
 0x335   : > { %v6152_v63 = vpop.eup %6151  ;;  %6177 = vtanh.f32 %v2637_v31  ;;  %v2709_v18 = vadd.f32 %v5821_v24, %v8243_v51  ;;  %v3111_v0 = vpack.c.bf16 %v6150_v5, %v6148_v57  ;;  %v9477_v51 = vld [vmem:[#allocation54_spill] sm:$0xff]  ;;  %v9478_v31 = vld [vmem:[#allocation21_spill] sm:$0xff] }
 0x336   : > { %v6154_v9 = vpop.eup %6153  ;;  %6179 = vtanh.f32 %v2706_v4  ;;  %v2700_v8 = vpop.f32.mrf.mxu0  ;;  %v2570_v50 = vadd.f32 %v8229_v47, %v9477_v51  ;;  %v2557_v16 = vadd.f32 %v8205_v48, %v9478_v31  ;;  %v9479_v57 = vld [vmem:[#allocation50_spill] sm:$0xff] }
 0x337   : > { %v6156_v38 = vpop.eup %6155  ;;  %6181 = vtanh.f32 %v2709_v18  ;;  %v2701_v62 = vadd.f32 %v2700_v8, %v8322_v40  ;;  %4089 = vmatmul.mubr.bf16.gmra.mxu1 %v5147_v30  ;;  %5478 = vmatprep.subr.bf16.mxu0 %v3111_v0  ;;  %v3110_v61 = vpack.c.bf16 %v6154_v9, %v6152_v63  ;;  %v3052_v40 = vld [vmem:[%s9322_s5 + $0x3a0] sm:$0xff]  ;;  %v2554_v30 = vadd.f32 %v8195_v13, %v9479_v57 }
 0x338   : > { %v6158_v60 = vpop.eup %6157  ;;  %6183 = vtanh.f32 %v2698_v49  ;;  %v8446_v12 = vpop.f32.mrf.mxu0  ;;  %5479 = vmatpush3.bf16.msra.mxu0 %v3103_v36  ;;  %4096 = vmatprep.mubr.bf16.mxu1 %v5156_v59  ;;  %v5164_v2 = vcombine.high %v3048_v27, %v3052_v40  ;;  %v3100_v13 = vpack.c.bf16 %v8414_v37, %v8409_v43  ;;  %v5163_v18 = vcombine.low %v3048_v27, %v3052_v40 }
 0x339   : > { %v6160_v28 = vpop.eup %6159  ;;  %6185 = vtanh.f32 %v2701_v62  ;;  %5480 = vmatprep.subr.bf16.mxu0 %v3110_v61  ;;  %v3109_v33 = vpack.c.bf16 %v6158_v60, %v6156_v38  ;;  %v9480_v60 = vpack.c.bf16 %v8299_v6, %v8297_v22 }
 0x33a   : > { %v6162_v47 = vpop.eup %6161  ;;  %6187 = vtanh.f32 %v2573_v7  ;;  %v8456_v3 = vpop.f32.mrf.mxu0 }
 0x33b   : > { %v8458_v26 = vpop.eup %6163  ;;  %6189 = vtanh.f32 %v2629_v52  ;;  %v3108_v55 = vpack.c.bf16 %v6162_v47, %v6160_v28  ;;  %v2941_v28 = vld [vmem:[%s9322_s5 + $0x28] sm:$0xff] }
 0x33c   : > { %v8464_v41 = vpop.eup %6165  ;;  %6191 = vtanh.f32 %v2570_v50  ;;  %v8466_v46 = vpop.f32.mrf.mxu0  ;;  %5481 = vmatpush3.bf16.msra.mxu0 %v3102_v35  ;;  %v2937_v50 = vld [vmem:[%s9322_s5 + $0x8] sm:$0xff]  ;;  %v5171_v35 = vcombine.low %v3056_v54, %v3060_v56 }
 0x33d   : > { %v8468_v17 = vpop.eup %6167  ;;  %6193 = vtanh.f32 %v2626_v25  ;;  %5482 = vmatprep.subr.bf16.mxu0 %v3109_v33  ;;  %v3113_v19 = vpack.c.bf16 %v8464_v41, %v8458_v26  ;;  %v5054_v6 = vcombine.high %v2937_v50, %v2941_v28  ;;  %v3014_v26 = vld [vmem:[%s9322_s5 + $0x270] sm:$0xff] }
 0x33e   : > { %v8474_v11 = vpop.eup %6169  ;;  %v8478_v58 = vpop.f32.mrf.mxu0  ;;  %6195 = vtanh.f32 %v2621_v20 }
 0x33f   : > { %v6172_v4 = vpop.eup %6171  ;;  %4097 = vmatmul.mubr.bf16.gmra.mxu1 %v5155_v53  ;;  %v3112_v14 = vpack.c.bf16 %v8474_v11, %v8468_v17  ;;  %6197 = vtanh.f32 %v2618_v39  ;;  %v3018_v17 = vld [vmem:[%s9322_s5 + $0x290] sm:$0xff] }
 0x340   : > { %v6174_v23 = vpop.eup %6173  ;;  %v8486_v5 = vpop.f32.mrf.mxu0  ;;  %5483 = vmatpush3.bf16.msra.mxu0 %v3101_v29  ;;  %4104 = vmatprep.mubr.bf16.mxu1 %v5164_v2  ;;  %6199 = vtanh.f32 %v2557_v16  ;;  %v9481_v16 = vpack.c.bf16 %v8267_v21, %v8259_v45  ;;  %v2945_v29 = vld [vmem:[%s9322_s5 + $0x48] sm:$0xff]  ;;  %v2950_v45 = vld [vmem:[%s9322_s5 + $0x70] sm:$0xff] }
 0x341   : > { %v6176_v48 = vpop.eup %6175  ;;  %5484 = vmatprep.subr.bf16.mxu0 %v3108_v55  ;;  %v3107_v63 = vpack.c.bf16 %v6174_v23, %v6172_v4  ;;  %6201 = vtanh.f32 %v2554_v30  ;;  %v2949_v55 = vld [vmem:[%s9322_s5 + $0x68] sm:$0xff]  ;;  %v2946_v23 = vld [vmem:[%s9322_s5 + $0x50] sm:$0xff]  ;;  %v5053_v30 = vcombine.low %v2937_v50, %v2941_v28 }
 0x342   : > { %v6178_v49 = vpop.eup %6177  ;;  %v8494_v24 = vpop.f32.mrf.mxu0  ;;  %v5062_v54 = vcombine.high %v2945_v29, %v2949_v55  ;;  %v5064_v56 = vcombine.high %v2946_v23, %v2950_v45  ;;  %v3022_v11 = vld [vmem:[%s9322_s5 + $0x2b0] sm:$0xff] }
 0x343   : > { %v8498_v59 = vpop.eup %6179  ;;  %v3106_v38 = vpack.c.bf16 %v6178_v49, %v6176_v48 }
 0x344   : > { %v8500_v0 = vpop.eup %6181  ;;  %v8502_v9 = vpop.f32.mrf.mxu0  ;;  %5485 = vmatpush3.bf16.msra.mxu0 %v3100_v13  ;;  %v9482_v13 = vcombine.low %v8131_v44, %v8136_v42  ;;  %v2958_v44 = vld [vmem:[%s9322_s5 + $0xb0] sm:$0xff] }
 0x345   : > { %v8504_v7 = vpop.eup %6183  ;;  %5486 = vmatprep.subr.bf16.mxu0 %v3107_v63  ;;  %v3115_v8 = vpack.c.bf16 %v8500_v0, %v8498_v59  ;;  %v3002_v59 = vld [vmem:[%s9322_s5 + $0x210] sm:$0xff] }
 0x346   : > { %v8508_v36 = vpop.eup %6185  ;;  %v8510_v43 = vpop.f32.mrf.mxu0  ;;  %v3006_v0 = vld [vmem:[%s9322_s5 + $0x230] sm:$0xff] }
 0x347   : > { %v6188_v37 = vpop.eup %6187  ;;  %4105 = vmatmul.mubr.bf16.gmra.mxu1 %v5163_v18  ;;  %v3114_v52 = vpack.c.bf16 %v8508_v36, %v8504_v7  ;;  %v2953_v18 = vld [vmem:[%s9322_s5 + $0x88] sm:$0xff]  ;;  %v3010_v36 = vld [vmem:[%s9322_s5 + $0x250] sm:$0xff] }
 0x348   : > { %v6190_v62 = vpop.eup %6189  ;;  %v8514_v61 = vpop.f32.mrf.mxu0  ;;  %5487 = vmatpush3.bf16.msra.mxu0 %v9480_v60  ;;  %4112 = vmatprep.mubr.bf16.mxu1 %v5172_v1  ;;  %v2957_v1 = vld [vmem:[%s9322_s5 + $0xa8] sm:$0xff] }
 0x349   : > { %v6192_v51 = vpop.eup %6191  ;;  %5488 = vmatprep.subr.bf16.mxu0 %v3106_v38  ;;  %v5061_v38 = vcombine.low %v2945_v29, %v2949_v55  ;;  %v3013_v7 = vld [vmem:[%s9322_s5 + $0x268] sm:$0xff] }
 0x34a   : > { %v6194_v25 = vpop.eup %6193  ;;  %v8525_v27 = vpop.f32.mrf.mxu0  ;;  %v3098_v40 = vpack.c.bf16 %v6188_v37, %v6192_v51  ;;  %v2954_v37 = vld [vmem:[%s9322_s5 + $0x90] sm:$0xff]  ;;  %v5070_v51 = vcombine.high %v2953_v18, %v2957_v1 }
 0x34b   : > { %v3105_v47 = vpack.c.bf16 %v6190_v62, %v6194_v25  ;;  %v6196_v20 = vpop.eup %6195  ;;  %v5063_v62 = vcombine.low %v2946_v23, %v2950_v45  ;;  %v5072_v50 = vcombine.high %v2954_v37, %v2958_v44  ;;  %v9483_v25 = vld [vmem:[#allocation58_spill] sm:$0xff]  ;;  %v5071_v55 = vcombine.low %v2954_v37, %v2958_v44 }
 0x34c   : > { %v8527_v22 = vpop.f32.mrf.mxu0  ;;  %5489 = vmatpush3.bf16.msra.mxu0 %v3098_v40  ;;  %v6198_v33 = vpop.eup %6197  ;;  %v2738_v40 = vadd.f32 %v8486_v5, %v9483_v25  ;;  %v2966_v5 = vld [vmem:[%s9322_s5 + $0xf0] sm:$0xff]  ;;  %v9486_v23 = vld [vmem:[#allocation62_spill] sm:$0xff] }
 0x34d   : > { %5490 = vmatprep.subr.bf16.mxu0 %v3105_v47  ;;  %v6200_v2 = vpop.eup %6199  ;;  %v3104_v39 = vpack.c.bf16 %v6196_v20, %v6198_v33  ;;  %v9484_v20 = vld [vmem:[#allocation29_spill] sm:$0xff]  ;;  %v2965_v33 = vld [vmem:[%s9322_s5 + $0xe8] sm:$0xff] }
 0x34e   : > { %v8529_v53 = vpop.f32.mrf.mxu0  ;;  %v6202_v4 = vpop.eup %6201  ;;  %6203 = vtanh.f32 %v2738_v40  ;;  %v9490_v25 = vld [vmem:[#allocation34_spill] sm:$0xff] }
 0x34f   : > { %4113 = vmatmul.mubr.bf16.gmra.mxu1 %v5171_v35  ;;  %v3096_v57 = vpack.c.bf16 %v6200_v2, %v6202_v4  ;;  %v2961_v35 = vld [vmem:[%s9322_s5 + $0xc8] sm:$0xff]  ;;  %v2962_v2 = vld [vmem:[%s9322_s5 + $0xd0] sm:$0xff]  ;;  %v5069_v4 = vcombine.low %v2953_v18, %v2957_v1 }
 0x350   : > { %v8531_v31 = vpop.f32.mrf.mxu0  ;;  %5491 = vmatpush3.bf16.msra.mxu0 %v9481_v16  ;;  %4153 = vmatprep.mubr.bf16.mxu1 %v5054_v6  ;;  %v2741_v6 = vadd.f32 %v8502_v9, %v9484_v20  ;;  %v9491_v1 = vld [vmem:[#allocation63_spill] sm:$0xff]  ;;  %v9493_v20 = vld [vmem:[#allocation44_spill] sm:$0xff] }
 0x351   : > { %5492 = vmatprep.subr.bf16.mxu0 %v3104_v39  ;;  %v9485_v39 = vld [vmem:[#allocation57_spill] sm:$0xff]  ;;  %v2730_v37 = vadd.f32 %v8494_v24, %v9491_v1  ;;  %v2969_v44 = vld [vmem:[%s9322_s5 + $0x108] sm:$0xff]  ;;  %v2974_v24 = vld [vmem:[%s9322_s5 + $0x130] sm:$0xff] }
 0x352   : > { %v8548_v21 = vpop.f32.mrf.mxu0  ;;  %6205 = vtanh.f32 %v2741_v6  ;;  %v2725_v6 = vadd.f32 %v8466_v46, %v9493_v20  ;;  %v9496_v46 = vld [vmem:[#allocation41_spill] sm:$0xff] }
 0x354   : > { %v8550_v48 = vpop.f32.mrf.mxu0  ;;  %5493 = vmatpush3.bf16.msra.mxu0 %v3096_v57  ;;  %v5078_v57 = vcombine.high %v2961_v35, %v2965_v33 }
 0x356   : > { %v8552_v49 = vpop.f32.mrf.mxu0 }
 0x357   : > { %4154 = vmatmul.mubr.bf16.vlgmr.msra.gmra.mxu1 %v5053_v30  ;;  %4315 = vmatmul.mubr.bf16.vlgmr.msra.gmra.mxu0 %v9482_v13  ;;  %v5080_v30 = vcombine.high %v2962_v2, %v2966_v5  ;;  %v9488_v13 = vld [vmem:[#allocation36_spill] sm:$0xff] }
 0x358   : > { %v5840_v63 = vpop.f32.mrf.mxu0  ;;  %4161 = vmatprep.mubr.bf16.mxu1 %v5062_v54  ;;  %4322 = vmatprep.mubr.bf16.mxu0 %v5064_v56  ;;  %v9487_v54 = vld [vmem:[#allocation27_spill] sm:$0xff] }
 0x35a   : > { %v2777_v42 = vpop.f32.mrf.mxu0 }
 0x35c   : > { %v5841_v60 = vpop.f32.mrf.mxu0 }
 0x35e   : > { %v2780_v28 = vpop.f32.mrf.mxu0 }
 0x35f   : > { %4162 = vmatmul.mubr.bf16.gmra.mxu1 %v5061_v38  ;;  %4323 = vmatmul.mubr.bf16.gmra.mxu0 %v5063_v62  ;;  %v2733_v38 = vadd.f32 %v8510_v43, %v9488_v13  ;;  %v9492_v43 = vld [vmem:[#allocation66_spill] sm:$0xff] }
 0x360   : > { %v5844_v47 = vpop.f32.mrf.mxu0  ;;  %4169 = vmatprep.mubr.bf16.mxu1 %v5070_v51  ;;  %4330 = vmatprep.mubr.bf16.mxu0 %v5072_v50  ;;  %v9489_v51 = vld [vmem:[#allocation42_spill] sm:$0xff]  ;;  %v2786_v40 = vadd.f32 %v5840_v63, %v9492_v43  ;;  %v2781_v63 = vadd.f32 %v2780_v28, %v8155_v15  ;;  %v9497_v15 = vld [vmem:[#allocation52_spill] sm:$0xff] }
 0x361   : > { %v2802_v16 = vadd.f32 %v5844_v47, %v9485_v39  ;;  %v2789_v50 = vadd.f32 %v5841_v60, %v9489_v51  ;;  %v2973_v60 = vld [vmem:[%s9322_s5 + $0x128] sm:$0xff]  ;;  %v2970_v47 = vld [vmem:[%s9322_s5 + $0x110] sm:$0xff]  ;;  %v5077_v39 = vcombine.low %v2961_v35, %v2965_v33 }
 0x362   : > { %v2793_v29 = vpop.f32.mrf.mxu0  ;;  %v9498_v28 = vld [vmem:[#allocation8_spill] sm:$0xff]  ;;  %v5087_v13 = vcombine.low %v2970_v47, %v2974_v24 }
 0x363   : > { %v2794_v9 = vadd.f32 %v2793_v29, %v9486_v23  ;;  %6207 = vtanh.f32 %v2802_v16  ;;  %v5079_v16 = vcombine.low %v2962_v2, %v2966_v5  ;;  %v2722_v29 = vadd.f32 %v8446_v12, %v8012_v10  ;;  %v9494_v23 = vld [vmem:[#allocation61_spill] sm:$0xff]  ;;  %v6204_v12 = vpop.eup %6203 }
 0x364   : > { %v5845_v45 = vpop.f32.mrf.mxu0  ;;  %v2714_v10 = vadd.f32 %v8456_v3, %v9497_v15  ;;  %v6206_v35 = vpop.eup %6205  ;;  %v9499_v3 = vld [vmem:[#allocation10_spill] sm:$0xff]  ;;  %v5085_v5 = vcombine.low %v2969_v44, %v2973_v60 }
 0x365   : > { %v2805_v56 = vadd.f32 %v5845_v45, %v9487_v54  ;;  %v9495_v45 = vld [vmem:[#allocation53_spill] sm:$0xff]  ;;  %v2765_v2 = vadd.f32 %v8552_v49, %v9499_v3  ;;  %v2982_v54 = vld [vmem:[%s9322_s5 + $0x170] sm:$0xff] }
 0x366   : > { %v2796_v62 = vpop.f32.mrf.mxu0  ;;  %v2998_v3 = vld [vmem:[%s9322_s5 + $0x1f0] sm:$0xff] }
 0x367   : > { %6209 = vtanh.f32 %v2805_v56  ;;  %v2797_v18 = vadd.f32 %v2796_v62, %v9490_v25  ;;  %4170 = vmatmul.mubr.bf16.gmra.mxu1 %v5069_v4  ;;  %4331 = vmatmul.mubr.bf16.gmra.mxu0 %v5071_v55  ;;  %v5086_v4 = vcombine.high %v2969_v44, %v2973_v60  ;;  %v5088_v55 = vcombine.high %v2970_v47, %v2974_v24  ;;  %v9500_v62 = vld [vmem:[#allocation7_spill] sm:$0xff]  ;;  %v9501_v44 = vld [vmem:[#allocation14_spill] sm:$0xff]  ;;  %v9502_v24 = vld [vmem:[#allocation33_spill] sm:$0xff] }
 0x368   : > { %6211 = vtanh.f32 %v2794_v9  ;;  %4177 = vmatprep.mubr.bf16.mxu1 %v5078_v57  ;;  %4338 = vmatprep.mubr.bf16.mxu0 %v5080_v30  ;;  %v2778_v9 = vadd.f32 %v2777_v42, %v9494_v23  ;;  %v2717_v57 = vadd.f32 %v8478_v58, %v9495_v45  ;;  %v2773_v30 = vadd.f32 %v8550_v48, %v9496_v46  ;;  %v2977_v58 = vld [vmem:[%s9322_s5 + $0x148] sm:$0xff] }
 0x369   : > { %6213 = vtanh.f32 %v2797_v18  ;;  %v2770_v42 = vadd.f32 %v8531_v31, %v9498_v28  ;;  %v2981_v48 = vld [vmem:[%s9322_s5 + $0x168] sm:$0xff]  ;;  %v2978_v31 = vld [vmem:[%s9322_s5 + $0x150] sm:$0xff]  ;;  %v2762_v51 = vadd.f32 %v8548_v21, %v9500_v62  ;;  %v3119_v18 = vpack.c.bf16 %v6206_v35, %v6204_v12 }
 0x36a   : > { %6215 = vtanh.f32 %v2733_v38  ;;  %v5094_v25 = vcombine.high %v2977_v58, %v2981_v48  ;;  %v5096_v1 = vcombine.high %v2978_v31, %v2982_v54  ;;  %v2757_v43 = vadd.f32 %v8527_v22, %v9501_v44  ;;  %v2985_v22 = vld [vmem:[%s9322_s5 + $0x188] sm:$0xff] }
 0x36b   : > { %6217 = vtanh.f32 %v2789_v50  ;;  %v2754_v21 = vadd.f32 %v8514_v61, %v9502_v24  ;;  %v5120_v44 = vcombine.high %v3002_v59, %v3006_v0 }
 0x36c   : > { %6219 = vtanh.f32 %v2730_v37 }
 0x36d   : > { %6221 = vtanh.f32 %v2786_v40 }
 0x36e   : > { %6223 = vtanh.f32 %v2725_v6 }
 0x36f   : > { %6225 = vtanh.f32 %v2781_v63  ;;  %4178 = vmatmul.mubr.bf16.gmra.mxu1 %v5077_v39  ;;  %4339 = vmatmul.mubr.bf16.gmra.mxu0 %v5079_v16  ;;  %v2989_v63 = vld [vmem:[%s9322_s5 + $0x1a8] sm:$0xff]  ;;  %v2749_v16 = vadd.f32 %v8529_v53, %v8397_v32 }
 0x370   : > { %6227 = vtanh.f32 %v2722_v29  ;;  %4185 = vmatprep.mubr.bf16.mxu1 %v5086_v4  ;;  %4346 = vmatprep.mubr.bf16.mxu0 %v5088_v55  ;;  %v6208_v33 = vpop.eup %6207  ;;  %v5093_v29 = vcombine.low %v2977_v58, %v2981_v48  ;;  %v2986_v4 = vld [vmem:[%s9322_s5 + $0x190] sm:$0xff]  ;;  %v5102_v32 = vcombine.high %v2985_v22, %v2989_v63  ;;  %v5101_v48 = vcombine.low %v2985_v22, %v2989_v63 }
 0x371   : > { %6229 = vtanh.f32 %v2778_v9  ;;  %v2990_v55 = vld [vmem:[%s9322_s5 + $0x1b0] sm:$0xff]  ;;  %v5095_v9 = vcombine.low %v2978_v31, %v2982_v54  ;;  %v5127_v63 = vcombine.low %v3010_v36, %v3014_v26 }
 0x372   : > { %6231 = vtanh.f32 %v2717_v57  ;;  %v2746_v57 = vadd.f32 %v8525_v27, %v8391_v34  ;;  %v2993_v34 = vld [vmem:[%s9322_s5 + $0x1c8] sm:$0xff] }
 0x373   : > { %6233 = vtanh.f32 %v2773_v30  ;;  %v5104_v30 = vcombine.high %v2986_v4, %v2990_v55  ;;  %v2997_v27 = vld [vmem:[%s9322_s5 + $0x1e8] sm:$0xff] }
 0x374   : > { %v6210_v56 = vpop.eup %6209  ;;  %6235 = vtanh.f32 %v2714_v10  ;;  %v5110_v31 = vcombine.high %v2993_v34, %v2997_v27 }
 0x375   : > { %v6212_v38 = vpop.eup %6211  ;;  %6237 = vtanh.f32 %v2770_v42  ;;  %v3127_v50 = vpack.c.bf16 %v6210_v56, %v6208_v33  ;;  %v2994_v33 = vld [vmem:[%s9322_s5 + $0x1d0] sm:$0xff] }
 0x376   : > { %v6214_v49 = vpop.eup %6213  ;;  %6239 = vtanh.f32 %v2765_v2  ;;  %v5112_v56 = vcombine.high %v2994_v33, %v2998_v3 }
 0x377   : > { %v6216_v37 = vpop.eup %6215  ;;  %4186 = vmatmul.mubr.bf16.gmra.mxu1 %v5085_v5  ;;  %5590 = vmatprep.subr.bf16.mxu1 %v3127_v50  ;;  %v3126_v40 = vpack.c.bf16 %v6214_v49, %v6212_v38  ;;  %6241 = vtanh.f32 %v2762_v51  ;;  %v5103_v5 = vcombine.low %v2986_v4, %v2990_v55  ;;  %v3001_v51 = vld [vmem:[%s9322_s5 + $0x208] sm:$0xff]  ;;  %v5109_v49 = vcombine.low %v2993_v34, %v2997_v27 }
 0x378   : > { %v6218_v60 = vpop.eup %6217  ;;  %5591 = vmatpush3.bf16.msra.mxu1 %v3119_v18  ;;  %4347 = vmatmul.mubr.bf16.gmra.mxu0 %v5087_v13  ;;  %6243 = vtanh.f32 %v2757_v43  ;;  %v3005_v50 = vld [vmem:[%s9322_s5 + $0x228] sm:$0xff]  ;;  %v5111_v18 = vcombine.low %v2994_v33, %v2998_v3  ;;  %v3038_v33 = vld [vmem:[%s9322_s5 + $0x330] sm:$0xff] }
 0x379   : > { %v6220_v47 = vpop.eup %6219  ;;  %5592 = vmatprep.subr.bf16.mxu1 %v3126_v40  ;;  %4193 = vmatprep.mubr.bf16.mxu1 %v5094_v25  ;;  %6245 = vtanh.f32 %v2754_v21  ;;  %v3009_v40 = vld [vmem:[%s9322_s5 + $0x248] sm:$0xff]  ;;  %v5117_v41 = vcombine.low %v3001_v51, %v3005_v50 }
 0x37a   : > { %v6222_v20 = vpop.eup %6221  ;;  %v3118_v6 = vpack.c.bf16 %v6216_v37, %v6220_v47  ;;  %4354 = vmatprep.mubr.bf16.mxu0 %v5096_v1  ;;  %6247 = vtanh.f32 %v2749_v16  ;;  %v5118_v1 = vcombine.high %v3001_v51, %v3005_v50  ;;  %v3017_v21 = vld [vmem:[%s9322_s5 + $0x288] sm:$0xff]  ;;  %v5125_v22 = vcombine.low %v3009_v40, %v3013_v7 }
 0x37b   : > { %v6224_v39 = vpop.eup %6223  ;;  %v3125_v61 = vpack.c.bf16 %v6218_v60, %v6222_v20  ;;  %6249 = vtanh.f32 %v2746_v57  ;;  %v5128_v60 = vcombine.high %v3010_v36, %v3014_v26  ;;  %v3021_v20 = vld [vmem:[%s9322_s5 + $0x2a8] sm:$0xff]  ;;  %v3026_v57 = vld [vmem:[%s9322_s5 + $0x2d0] sm:$0xff] }
 0x37c   : > { %v6226_v23 = vpop.eup %6225  ;;  %5593 = vmatpush3.bf16.msra.mxu1 %v3118_v6  ;;  %v3033_v34 = vld [vmem:[%s9322_s5 + $0x308] sm:$0xff] }
 0x37d   : > { %v6228_v45 = vpop.eup %6227  ;;  %5594 = vmatprep.subr.bf16.mxu1 %v3125_v61  ;;  %v5136_v61 = vcombine.high %v3018_v17, %v3022_v11  ;;  %v3037_v27 = vld [vmem:[%s9322_s5 + $0x328] sm:$0xff] }
 0x37e   : > { %v6230_v53 = vpop.eup %6229  ;;  %v3117_v46 = vpack.c.bf16 %v6224_v39, %v6228_v45  ;;  %v5134_v39 = vcombine.high %v3017_v21, %v3021_v20  ;;  %v3041_v51 = vld [vmem:[%s9322_s5 + $0x348] sm:$0xff] }
 0x37f   : > { %v6232_v15 = vpop.eup %6231  ;;  %4194 = vmatmul.mubr.bf16.gmra.mxu1 %v5093_v29  ;;  %v3124_v10 = vpack.c.bf16 %v6226_v23, %v6230_v53  ;;  %v3025_v23 = vld [vmem:[%s9322_s5 + $0x2c8] sm:$0xff] }
 0x380   : > { %v6234_v12 = vpop.eup %6233  ;;  %5595 = vmatpush3.bf16.msra.mxu1 %v3117_v46  ;;  %4355 = vmatmul.mubr.bf16.gmra.mxu0 %v5095_v9  ;;  %v3029_v9 = vld [vmem:[%s9322_s5 + $0x2e8] sm:$0xff]  ;;  %v5133_v46 = vcombine.low %v3017_v21, %v3021_v20 }
 0x381   : > { %v6236_v28 = vpop.eup %6235  ;;  %5596 = vmatprep.subr.bf16.mxu1 %v3124_v10  ;;  %4201 = vmatprep.mubr.bf16.mxu1 %v5102_v32  ;;  %v3030_v32 = vld [vmem:[%s9322_s5 + $0x2f0] sm:$0xff]  ;;  %v3045_v50 = vld [vmem:[%s9322_s5 + $0x368] sm:$0xff] }
 0x382   : > { %v6238_v42 = vpop.eup %6237  ;;  %v3116_v35 = vpack.c.bf16 %v6232_v15, %v6236_v28  ;;  %4362 = vmatprep.mubr.bf16.mxu0 %v5104_v30  ;;  %v5135_v30 = vcombine.low %v3018_v17, %v3022_v11  ;;  %v5142_v15 = vcombine.high %v3025_v23, %v3029_v9  ;;  %v3049_v36 = vld [vmem:[%s9322_s5 + $0x388] sm:$0xff] }
 0x383   : > { %v3123_v58 = vpack.c.bf16 %v6234_v12, %v6238_v42  ;;  %v6240_v2 = vpop.eup %6239  ;;  %v5144_v12 = vcombine.high %v3026_v57, %v3030_v32  ;;  %v3053_v26 = vld [vmem:[%s9322_s5 + $0x3a8] sm:$0xff] }
 0x384   : > { %5597 = vmatpush3.bf16.msra.mxu1 %v3116_v35  ;;  %v6242_v54 = vpop.eup %6241  ;;  %v5166_v21 = vcombine.high %v3049_v36, %v3053_v26 }
 0x385   : > { %5598 = vmatprep.subr.bf16.mxu1 %v3123_v58  ;;  %v3122_v13 = vpack.c.bf16 %v6240_v2, %v6242_v54  ;;  %v6244_v38 = vpop.eup %6243  ;;  %v5141_v2 = vcombine.low %v3025_v23, %v3029_v9  ;;  %v5165_v23 = vcombine.low %v3049_v36, %v3053_v26 }
 0x386   : > { %v6246_v62 = vpop.eup %6245 }
 0x387   : > { %4202 = vmatmul.mubr.bf16.gmra.mxu1 %v5101_v48  ;;  %v3121_v25 = vpack.c.bf16 %v6244_v38, %v6246_v62  ;;  %v3034_v48 = vld [vmem:[%s9322_s5 + $0x310] sm:$0xff] }
 0x388   : > { %5599 = vmatpush3.bf16.msra.mxu1 %v3115_v8  ;;  %4363 = vmatmul.mubr.bf16.gmra.mxu0 %v5103_v5  ;;  %v6248_v8 = vpop.eup %6247  ;;  %v5143_v5 = vcombine.low %v3026_v57, %v3030_v32 }
 0x389   : > { %5600 = vmatprep.subr.bf16.mxu1 %v3122_v13  ;;  %4209 = vmatprep.mubr.bf16.mxu1 %v5110_v31  ;;  %v6250_v37 = vpop.eup %6249  ;;  %v5150_v31 = vcombine.high %v3033_v34, %v3037_v27 }
 0x38a   : > { %4370 = vmatprep.mubr.bf16.mxu0 %v5112_v56  ;;  %v3120_v43 = vpack.c.bf16 %v6248_v8, %v6250_v37  ;;  %v5152_v56 = vcombine.high %v3034_v48, %v3038_v33  ;;  %v5149_v8 = vcombine.low %v3033_v34, %v3037_v27 }
 0x38c   : > { %5601 = vmatpush3.bf16.msra.mxu1 %v3114_v52  ;;  %v5126_v52 = vcombine.high %v3009_v40, %v3013_v7 }
 0x38d   : > { %5602 = vmatprep.subr.bf16.mxu1 %v3121_v25 }
 0x38f   : > { %4210 = vmatmul.mubr.bf16.gmra.mxu1 %v5109_v49  ;;  %v3042_v49 = vld [vmem:[%s9322_s5 + $0x350] sm:$0xff] }
 0x390   : > { %5603 = vmatpush3.bf16.msra.mxu1 %v3113_v19  ;;  %4371 = vmatmul.mubr.bf16.gmra.mxu0 %v5111_v18  ;;  %v5119_v19 = vcombine.low %v3002_v59, %v3006_v0  ;;  %v3046_v59 = vld [vmem:[%s9322_s5 + $0x370] sm:$0xff]  ;;  %v5151_v18 = vcombine.low %v3034_v48, %v3038_v33 }
 0x391   : > { %5604 = vmatprep.subr.bf16.mxu1 %v3120_v43  ;;  %4217 = vmatprep.mubr.bf16.mxu1 %v5118_v1  ;;  %v5158_v1 = vcombine.high %v3041_v51, %v3045_v50 }
 0x392   : > { %4378 = vmatprep.mubr.bf16.mxu0 %v5120_v44  ;;  %v5160_v44 = vcombine.high %v3042_v49, %v3046_v59 }
 0x394   : > { %5605 = vmatpush3.bf16.msra.mxu1 %v3112_v14 }
 0x397   : > { %v5270_v47 = vpop.f32.mrf.mxu1  ;;  %4218 = vmatmul.mubr.bf16.gmra.mxu1 %v5117_v41 }
 0x398   : > { %4379 = vmatmul.mubr.bf16.gmra.mxu0 %v5119_v19  ;;  %4225 = vmatprep.mubr.bf16.mxu1 %v5126_v52  ;;  %v3050_v19 = vld [vmem:[%s9322_s5 + $0x390] sm:$0xff] }
 0x399   : > { %v5271_v24 = vpop.f32.mrf.mxu1  ;;  %4386 = vmatprep.mubr.bf16.mxu0 %v5128_v60  ;;  %v3054_v52 = vld [vmem:[%s9322_s5 + $0x3b0] sm:$0xff] }
 0x39a   : > { %v8711_v6 = vadd.f32 %v5271_v24, %v5270_v47  ;;  %v5157_v47 = vcombine.low %v3041_v51, %v3045_v50  ;;  %v5159_v24 = vcombine.low %v3042_v49, %v3046_v59  ;;  %v5168_v17 = vcombine.high %v3050_v19, %v3054_v52 }
 0x39b   : > { %v5273_v14 = vpop.f32.mrf.mxu1  ;;  %v5167_v9 = vcombine.low %v3050_v19, %v3054_v52  ;;  %v2963_v52 = vld [vmem:[%s9322_s5 + $0xd8] sm:$0xff] }
 0x39d   : > { %v5274_v16 = vpop.f32.mrf.mxu1 }
 0x39e   : > { %v8719_v29 = vadd.f32 %v5274_v16, %v5273_v14 }
 0x39f   : > { %v5276_v4 = vpop.f32.mrf.mxu1  ;;  %4226 = vmatmul.mubr.bf16.gmra.mxu1 %v5125_v22 }
 0x3a0   : > { %4387 = vmatmul.mubr.bf16.gmra.mxu0 %v5127_v63  ;;  %4233 = vmatprep.mubr.bf16.mxu1 %v5134_v39  ;;  %v3057_v63 = vld [vmem:[%s9322_s5 + $0x3c8] sm:$0xff] }
 0x3a1   : > { %v5277_v55 = vpop.f32.mrf.mxu1  ;;  %4394 = vmatprep.mubr.bf16.mxu0 %v5136_v61  ;;  %v3061_v39 = vld [vmem:[%s9322_s5 + $0x3e8] sm:$0xff]  ;;  %v3058_v61 = vld [vmem:[%s9322_s5 + $0x3d0] sm:$0xff] }
 0x3a2   : > { %v8727_v45 = vadd.f32 %v5277_v55, %v5276_v4  ;;  %v3062_v4 = vld [vmem:[%s9322_s5 + $0x3f0] sm:$0xff]  ;;  %v5174_v57 = vcombine.high %v3057_v63, %v3061_v39  ;;  %v5173_v34 = vcombine.low %v3057_v63, %v3061_v39  ;;  %v2971_v39 = vld [vmem:[%s9322_s5 + $0x118] sm:$0xff] }
 0x3a3   : > { %v5279_v53 = vpop.f32.mrf.mxu1  ;;  %v5175_v27 = vcombine.low %v3058_v61, %v3062_v4 }
 0x3a5   : > { %v5280_v10 = vpop.f32.mrf.mxu1 }
 0x3a6   : > { %v8735_v28 = vadd.f32 %v5280_v10, %v5279_v53  ;;  %v5176_v53 = vcombine.high %v3058_v61, %v3062_v4  ;;  %v2939_v10 = vld [vmem:[%s9322_s5 + $0x18] sm:$0xff] }
 0x3a7   : > { %v5282_v42 = vpop.f32.mrf.mxu1  ;;  %4234 = vmatmul.mubr.bf16.gmra.mxu1 %v5133_v46  ;;  %v2975_v61 = vld [vmem:[%s9322_s5 + $0x138] sm:$0xff] }
 0x3a8   : > { %4395 = vmatmul.mubr.bf16.gmra.mxu0 %v5135_v30  ;;  %4241 = vmatprep.mubr.bf16.mxu1 %v5142_v15 }
 0x3a9   : > { %v5283_v35 = vpop.f32.mrf.mxu1  ;;  %4402 = vmatprep.mubr.bf16.mxu0 %v5144_v12  ;;  %v2943_v12 = vld [vmem:[%s9322_s5 + $0x38] sm:$0xff] }
 0x3aa   : > { %v8743_v58 = vadd.f32 %v5283_v35, %v5282_v42  ;;  %v5058_v48 = vcombine.high %v2939_v10, %v2943_v12 }
 0x3ab   : > { %v5285_v3 = vpop.f32.mrf.mxu1 }
 0x3ad   : > { %v5286_v54 = vpop.f32.mrf.mxu1 }
 0x3ae   : > { %v8751_v13 = vadd.f32 %v5286_v54, %v5285_v3  ;;  %v2951_v54 = vld [vmem:[%s9322_s5 + $0x78] sm:$0xff] }
 0x3af   : > { %v5288_v38 = vpop.f32.mrf.mxu1  ;;  %4242 = vmatmul.mubr.bf16.gmra.mxu1 %v5141_v2 }
 0x3b0   : > { %4403 = vmatmul.mubr.bf16.gmra.mxu0 %v5143_v5  ;;  %4249 = vmatprep.mubr.bf16.mxu1 %v5150_v31  ;;  %v2947_v31 = vld [vmem:[%s9322_s5 + $0x58] sm:$0xff] }
 0x3b1   : > { %v5289_v62 = vpop.f32.mrf.mxu1  ;;  %4410 = vmatprep.mubr.bf16.mxu0 %v5152_v56  ;;  %v5066_v51 = vcombine.high %v2947_v31, %v2951_v54 }
 0x3b2   : > { %v8759_v25 = vadd.f32 %v5289_v62, %v5288_v38  ;;  %v5057_v62 = vcombine.low %v2939_v10, %v2943_v12  ;;  %v2979_v10 = vld [vmem:[%s9322_s5 + $0x158] sm:$0xff] }
 0x3b3   : > { %v5291_v0 = vpop.f32.mrf.mxu1  ;;  %v2983_v12 = vld [vmem:[%s9322_s5 + $0x178] sm:$0xff] }
 0x3b5   : > { %v5292_v37 = vpop.f32.mrf.mxu1 }
 0x3b6   : > { %v8767_v43 = vadd.f32 %v5292_v37, %v5291_v0 }
 0x3b7   : > { %v5294_v40 = vpop.f32.mrf.mxu1  ;;  %4250 = vmatmul.mubr.bf16.gmra.mxu1 %v5149_v8  ;;  %v2955_v8 = vld [vmem:[%s9322_s5 + $0x98] sm:$0xff] }
 0x3b8   : > { %4411 = vmatmul.mubr.bf16.gmra.mxu0 %v5151_v18  ;;  %4257 = vmatprep.mubr.bf16.mxu1 %v5158_v1  ;;  %v2959_v18 = vld [vmem:[%s9322_s5 + $0xb8] sm:$0xff] }
 0x3b9   : > { %v5295_v7 = vpop.f32.mrf.mxu1  ;;  %4418 = vmatprep.mubr.bf16.mxu0 %v5160_v44  ;;  %v5065_v44 = vcombine.low %v2947_v31, %v2951_v54 }
 0x3ba   : > { %v8775_v41 = vadd.f32 %v5295_v7, %v5294_v40  ;;  %v5074_v40 = vcombine.high %v2955_v8, %v2959_v18 }
 0x3bb   : > { %v5297_v60 = vpop.f32.mrf.mxu1 }
 0x3bd   : > { %v5298_v20 = vpop.f32.mrf.mxu1 }
 0x3be   : > { %v8783_v11 = vadd.f32 %v5298_v20, %v5297_v60  ;;  %v2967_v60 = vld [vmem:[%s9322_s5 + $0xf8] sm:$0xff] }
 0x3bf   : > { %v5300_v14 = vpop.f32.mrf.mxu1  ;;  %4258 = vmatmul.mubr.bf16.gmra.mxu1 %v5157_v47  ;;  %v5082_v20 = vcombine.high %v2963_v52, %v2967_v60 }
 0x3c0   : > { %4419 = vmatmul.mubr.bf16.gmra.mxu0 %v5159_v24  ;;  %4265 = vmatprep.mubr.bf16.mxu1 %v5166_v21  ;;  %v5073_v21 = vcombine.low %v2955_v8, %v2959_v18 }
 0x3c1   : > { %v5301_v22 = vpop.f32.mrf.mxu1  ;;  %4426 = vmatprep.mubr.bf16.mxu0 %v5168_v17 }
 0x3c2   : > { %v8791_v16 = vadd.f32 %v5301_v22, %v5300_v14 }
 0x3c3   : > { %v5303_v55 = vpop.f32.mrf.mxu1 }
 0x3c5   : > { %v5304_v32 = vpop.f32.mrf.mxu1 }
 0x3c6   : > { %v8799_v46 = vadd.f32 %v5304_v32, %v5303_v55 }
 0x3c7   : > { %v5306_v30 = vpop.f32.mrf.mxu1  ;;  %4266 = vmatmul.mubr.bf16.gmra.mxu1 %v5165_v23  ;;  %v5081_v23 = vcombine.low %v2963_v52, %v2967_v60 }
 0x3c8   : > { %4427 = vmatmul.mubr.bf16.gmra.mxu0 %v5167_v9  ;;  %4273 = vmatprep.mubr.bf16.mxu1 %v5174_v57  ;;  %v8849_v9 = vpop.permute.xlu0 %3167  ;;  %v5090_v57 = vcombine.high %v2971_v39, %v2975_v61 }
 0x3c9   : > { %v5307_v15 = vpop.f32.mrf.mxu1  ;;  %4434 = vmatprep.mubr.bf16.mxu0 %v5176_v53 }
 0x3ca   : > { %v8807_v42 = vadd.f32 %v5307_v15, %v5306_v30 }
 0x3cb   : > { %v5309_v35 = vpop.f32.mrf.mxu1 }
 0x3cd   : > { %v5310_v33 = vpop.f32.mrf.mxu1 }
 0x3ce   : > { %v8809_v3 = vadd.f32 %v5310_v33, %v5309_v35  ;;  %v8859_v35 = vpop.permute.xlu0 %3177  ;;  %v5098_v33 = vcombine.high %v2979_v10, %v2983_v12 }
 0x3cf   : > { %v5312_v2 = vpop.f32.mrf.mxu1  ;;  %4274 = vmatmul.mubr.bf16.gmra.mxu1 %v5173_v34 }
 0x3d0   : > { %4435 = vmatmul.mubr.bf16.gmra.mxu0 %v5175_v27  ;;  %4475 = vmatprep.mubr.bf16.mxu1 %v5058_v48  ;;  %v5089_v48 = vcombine.low %v2971_v39, %v2975_v61  ;;  %v3003_v61 = vld [vmem:[%s9322_s5 + $0x218] sm:$0xff] }
 0x3d1   : > { %v5313_v5 = vpop.f32.mrf.mxu1 }
 0x3d2   : > { %v8817_v56 = vadd.f32 %v5313_v5, %v5312_v2  ;;  %v8865_v54 = vpop.permute.xlu0 %3187 }
 0x3d3   : > { %v5315_v38 = vpop.f32.mrf.mxu1 }
 0x3d5   : > { %v5316_v50 = vpop.f32.mrf.mxu1 }
 0x3d6   : > { %v8819_v49 = vadd.f32 %v5316_v50, %v5315_v38 }
 0x3d7   : > { %v5318_v59 = vpop.f32.mrf.mxu1  ;;  %4476 = vmatmul.mubr.bf16.vlgmr.msra.gmra.mxu1 %v5057_v62  ;;  %v2987_v62 = vld [vmem:[%s9322_s5 + $0x198] sm:$0xff] }
 0x3d8   : > { %4483 = vmatprep.mubr.bf16.mxu1 %v5066_v51  ;;  %v2991_v51 = vld [vmem:[%s9322_s5 + $0x1b8] sm:$0xff] }
 0x3d9   : > { %v5319_v0 = vpop.f32.mrf.mxu1  ;;  %v5106_v8 = vcombine.high %v2987_v62, %v2991_v51 }
 0x3da   : > { %v8827_v1 = vadd.f32 %v5319_v0, %v5318_v59  ;;  %v5097_v0 = vcombine.low %v2979_v10, %v2983_v12 }
 0x3db   : > { %v5321_v37 = vpop.f32.mrf.mxu1 }
 0x3dd   : > { %v5322_v7 = vpop.f32.mrf.mxu1 }
 0x3de   : > { %v8829_v36 = vadd.f32 %v5322_v7, %v5321_v37  ;;  %v8875_v37 = vpop.permute.xlu0 %3197 }
 0x3df   : > { %v5324_v26 = vpop.f32.mrf.mxu1  ;;  %4484 = vmatmul.mubr.bf16.gmra.mxu1 %v5065_v44 }
 0x3e0   : > { %4491 = vmatprep.mubr.bf16.mxu1 %v5074_v40 }
 0x3e1   : > { %v5325_v19 = vpop.f32.mrf.mxu1 }
 0x3e2   : > { %v8837_v47 = vadd.f32 %v5325_v19, %v5324_v26  ;;  %v2995_v26 = vld [vmem:[%s9322_s5 + $0x1d8] sm:$0xff] }
 0x3e3   : > { %v5327_v24 = vpop.f32.mrf.mxu1  ;;  %v2999_v19 = vld [vmem:[%s9322_s5 + $0x1f8] sm:$0xff] }
 0x3e5   : > { %v5328_v17 = vpop.f32.mrf.mxu1 }
 0x3e6   : > { %v8839_v14 = vadd.f32 %v5328_v17, %v5327_v24  ;;  %v5105_v24 = vcombine.low %v2987_v62, %v2991_v51 }
 0x3e7   : > { %v5330_v22 = vpop.f32.mrf.mxu1  ;;  %4492 = vmatmul.mubr.bf16.gmra.mxu1 %v5073_v21  ;;  %v8887_v21 = vpop.permute.xlu0 %3207 }
 0x3e8   : > { %4499 = vmatprep.mubr.bf16.mxu1 %v5082_v20  ;;  %v5114_v20 = vcombine.high %v2995_v26, %v2999_v19 }
 0x3e9   : > { %v5331_v63 = vpop.f32.mrf.mxu1 }
 0x3ea   : > { %v8847_v4 = vadd.f32 %v5331_v63, %v5330_v22 }
 0x3eb   : > { %v5333_v55 = vpop.f32.mrf.mxu1 }
 0x3ed   : > { %v5334_v32 = vpop.f32.mrf.mxu1 }
 0x3ee   : > { %v8851_v53 = vadd.f32 %v5334_v32, %v5333_v55  ;;  %v3007_v55 = vld [vmem:[%s9322_s5 + $0x238] sm:$0xff] }
 0x3ef   : > { %v5336_v30 = vpop.f32.mrf.mxu1  ;;  %4500 = vmatmul.mubr.bf16.gmra.mxu1 %v5081_v23  ;;  %v8897_v23 = vpop.permute.xlu0 %3217  ;;  %v5121_v51 = vcombine.low %v3003_v61, %v3007_v55 }
 0x3f0   : > { %4507 = vmatprep.mubr.bf16.mxu1 %v5090_v57 }
 0x3f1   : > { %v5337_v15 = vpop.f32.mrf.mxu1 }
 0x3f2   : > { %v8861_v34 = vadd.f32 %v5337_v15, %v5336_v30  ;;  %v5113_v30 = vcombine.low %v2995_v26, %v2999_v19  ;;  %v5122_v15 = vcombine.high %v3003_v61, %v3007_v55  ;;  %v3163_v26 = vpop.permute.xlu1 %3162 }
 0x3f3   : > { %v5339_v27 = vpop.f32.mrf.mxu1 }
 0x3f5   : > { %v5340_v2 = vpop.f32.mrf.mxu1 }
 0x3f6   : > { %v8863_v5 = vadd.f32 %v5340_v2, %v5339_v27  ;;  %v3011_v2 = vld [vmem:[%s9322_s5 + $0x258] sm:$0xff] }
 0x3f7   : > { %v5342_v31 = vpop.f32.mrf.mxu1  ;;  %4508 = vmatmul.mubr.bf16.gmra.mxu1 %v5089_v48  ;;  %v8903_v48 = vpop.permute.xlu0 %3227 }
 0x3f8   : > { %4515 = vmatprep.mubr.bf16.mxu1 %v5098_v33 }
 0x3f9   : > { %v5343_v38 = vpop.f32.mrf.mxu1 }
 0x3fa   : > { %v8873_v50 = vadd.f32 %v5343_v38, %v5342_v31  ;;  %v3015_v31 = vld [vmem:[%s9322_s5 + $0x278] sm:$0xff] }
 0x3fb   : > { %v5345_v59 = vpop.f32.mrf.mxu1 }
 0x3fd   : > { %v5346_v18 = vpop.f32.mrf.mxu1 }
 0x3fe   : > { %v8877_v44 = vadd.f32 %v5346_v18, %v5345_v59  ;;  %v5130_v59 = vcombine.high %v3011_v2, %v3015_v31 }
 0x3ff   : > { %v5348_v40 = vpop.f32.mrf.mxu1  ;;  %4516 = vmatmul.mubr.bf16.gmra.mxu1 %v5097_v0 }
 0x400   : > { %4523 = vmatprep.mubr.bf16.mxu1 %v5106_v8  ;;  %v8913_v8 = vpop.permute.xlu0 %3237 }
 0x401   : > { %v5349_v7 = vpop.f32.mrf.mxu1 }
 0x402   : > { %v8885_v52 = vadd.f32 %v5349_v7, %v5348_v40 }
 0x403   : > { %v5351_v60 = vpop.f32.mrf.mxu1 }
 0x405   : > { %v5352_v17 = vpop.f32.mrf.mxu1 }
 0x406   : > { %v8889_v22 = vadd.f32 %v5352_v17, %v5351_v60  ;;  %v3995_v17 = vadd.f32 %v8711_v6, %v3163_v26 }
 0x407   : > { %v5354_v63 = vpop.f32.mrf.mxu1  ;;  %4524 = vmatmul.mubr.bf16.gmra.mxu1 %v5105_v24  ;;  %v3019_v24 = vld [vmem:[%s9322_s5 + $0x298] sm:$0xff] }
 0x408   : > { %4531 = vmatprep.mubr.bf16.mxu1 %v5114_v20  ;;  %v3023_v20 = vld [vmem:[%s9322_s5 + $0x2b8] sm:$0xff] }
 0x409   : > { %v5355_v39 = vpop.f32.mrf.mxu1 }
 0x40a   : > { %v8899_v57 = vadd.f32 %v5355_v39, %v5354_v63 }
 0x40b   : > { %v5357_v32 = vpop.f32.mrf.mxu1 }
 0x40d   : > { %v5358_v10 = vpop.f32.mrf.mxu1 }
 0x40e   : > { %v8901_v12 = vadd.f32 %v5358_v10, %v5357_v32  ;;  %v5129_v32 = vcombine.low %v3011_v2, %v3015_v31  ;;  %v5138_v10 = vcombine.high %v3019_v24, %v3023_v20  ;;  %v3027_v31 = vld [vmem:[%s9322_s5 + $0x2d8] sm:$0xff] }
 0x40f   : > { %v5360_v27 = vpop.f32.mrf.mxu1  ;;  %4532 = vmatmul.mubr.bf16.gmra.mxu1 %v5113_v30  ;;  %v8926_v30 = vpop.permute.xlu0 %3247 }
 0x410   : > { %4539 = vmatprep.mubr.bf16.mxu1 %v5122_v15 }
 0x411   : > { %v5361_v33 = vpop.f32.mrf.mxu1 }
 0x412   : > { %v8911_v38 = vadd.f32 %v5361_v33, %v5360_v27  ;;  %v3998_v33 = vadd.f32 %v8719_v29, %v8849_v9  ;;  %v3031_v29 = vld [vmem:[%s9322_s5 + $0x2f8] sm:$0xff] }
 0x413   : > { %v5363_v62 = vpop.f32.mrf.mxu1  ;;  %v8942_v9 = vpop.permute.xlu0 %3257 }
 0x415   : > { %v5364_v0 = vpop.f32.mrf.mxu1 }
 0x416   : > { %v8915_v18 = vadd.f32 %v5364_v0, %v5363_v62 }
 0x417   : > { %v5382_v40 = vpop.f32.mrf.mxu1  ;;  %4540 = vmatmul.mubr.bf16.gmra.mxu1 %v5121_v51  ;;  %v5494_v7 = vpop.f32.mrf.mxu0 }
 0x418   : > { %4547 = vmatprep.mubr.bf16.mxu1 %v5130_v59 }
 0x419   : > { %v5383_v19 = vpop.f32.mrf.mxu1  ;;  %v5495_v60 = vpop.f32.mrf.mxu0 }
 0x41a   : > { %v5384_v63 = vadd.f32 %v5383_v19, %v5382_v40  ;;  %v5496_v39 = vadd.f32 %v5495_v60, %v5494_v7  ;;  %v3173_v40 = vpop.permute.xlu1 %3172 }
 0x41b   : > { %v5385_v61 = vpop.f32.mrf.mxu1  ;;  %v8924_v55 = vpop.f32.mrf.mxu0  ;;  %v4003_v7 = vadd.f32 %v8727_v45, %v3173_v40 }
 0x41c   : > { %v4156_v15 = vadd.f32 %v5384_v63, %v3995_v17  ;;  %v5137_v17 = vcombine.low %v3019_v24, %v3023_v20  ;;  %v3035_v24 = vld [vmem:[%s9322_s5 + $0x318] sm:$0xff] }
 0x41d   : > { %v5386_v27 = vpop.f32.mrf.mxu1  ;;  %v8932_v0 = vpop.f32.mrf.mxu0 }
 0x41e   : > { %v8930_v62 = vadd.f32 %v5496_v39, %v4156_v15  ;;  %v5387_v51 = vadd.f32 %v5386_v27, %v5385_v61  ;;  %v5146_v39 = vcombine.high %v3027_v31, %v3031_v29 }
 0x41f   : > { %v5388_v59 = vpop.f32.mrf.mxu1  ;;  %4548 = vmatmul.mubr.bf16.gmra.mxu1 %v5129_v32  ;;  %v8945_v19 = vpop.f32.mrf.mxu0  ;;  %v4006_v32 = vadd.f32 %v8735_v28, %v8859_v35  ;;  %v3039_v28 = vld [vmem:[%s9322_s5 + $0x338] sm:$0xff] }
 0x420   : > { %v8934_v6 = vadd.f32 %v5387_v51, %v3998_v33  ;;  %4555 = vmatprep.mubr.bf16.mxu1 %v5138_v10  ;;  %v8953_v33 = vpop.permute.xlu0 %4670  ;;  %v3183_v51 = vpop.permute.xlu1 %3182 }
 0x421   : > { %v5389_v2 = vpop.f32.mrf.mxu1  ;;  %v8951_v10 = vpop.f32.mrf.mxu0  ;;  %v4011_v35 = vadd.f32 %v8743_v58, %v3183_v51 }
 0x422   : > { %v5390_v26 = vadd.f32 %v5389_v2, %v5388_v59 }
 0x423   : > { %v5391_v60 = vpop.f32.mrf.mxu1  ;;  %v8964_v40 = vpop.f32.mrf.mxu0 }
 0x424   : > { %v8947_v63 = vadd.f32 %v5390_v26, %v4003_v7  ;;  %v5145_v7 = vcombine.low %v3027_v31, %v3031_v29  ;;  %v3043_v31 = vld [vmem:[%s9322_s5 + $0x358] sm:$0xff] }
 0x425   : > { %v5392_v61 = vpop.f32.mrf.mxu1  ;;  %v3047_v29 = vld [vmem:[%s9322_s5 + $0x378] sm:$0xff] }
 0x426   : > { %v5393_v15 = vadd.f32 %v5392_v61, %v5391_v60  ;;  %v5154_v60 = vcombine.high %v3035_v24, %v3039_v28  ;;  %v4014_v61 = vadd.f32 %v8751_v13, %v8865_v54 }
 0x427   : > { %v5394_v27 = vpop.f32.mrf.mxu1  ;;  %4556 = vmatmul.mubr.bf16.gmra.mxu1 %v5137_v17 }
 0x428   : > { %v8955_v45 = vadd.f32 %v5393_v15, %v4006_v32  ;;  %4563 = vmatprep.mubr.bf16.mxu1 %v5146_v39  ;;  %v8968_v39 = vpop.permute.xlu0 %4680  ;;  %v8972_v15 = vpop.f32.mrf.mxu0 }
 0x429   : > { %v5395_v59 = vpop.f32.mrf.mxu1 }
 0x42a   : > { %9503 = vst [vmem:[#allocation9_spill] sm:$0xff] %v8955_v45  ;;  %v5396_v20 = vadd.f32 %v5395_v59, %v5394_v27  ;;  %v3193_v27 = vpop.permute.xlu1 %3192  ;;  %v8983_v59 = vpop.f32.mrf.mxu0 }
 0x42b   : > { %v5397_v2 = vpop.f32.mrf.mxu1  ;;  %v4019_v13 = vadd.f32 %v8759_v25, %v3193_v27 }
 0x42c   : > { %v8966_v26 = vadd.f32 %v5396_v20, %v4011_v35  ;;  %v5153_v20 = vcombine.low %v3035_v24, %v3039_v28  ;;  %v3051_v24 = vld [vmem:[%s9322_s5 + $0x398] sm:$0xff] }
 0x42d   : > { %v5398_v17 = vpop.f32.mrf.mxu1  ;;  %v3055_v28 = vld [vmem:[%s9322_s5 + $0x3b8] sm:$0xff] }
 0x42e   : > { %9504 = vst [vmem:[#allocation31_spill] sm:$0xff] %v8966_v26  ;;  %v5399_v32 = vadd.f32 %v5398_v17, %v5397_v2  ;;  %v8985_v2 = vpop.permute.xlu0 %4690 }
 0x42f   : > { %v5400_v45 = vpop.f32.mrf.mxu1  ;;  %4564 = vmatmul.mubr.bf16.gmra.mxu1 %v5145_v7 }
 0x430   : > { %v8974_v58 = vadd.f32 %v5399_v32, %v4014_v61  ;;  %4571 = vmatprep.mubr.bf16.mxu1 %v5154_v60  ;;  %v5162_v60 = vcombine.high %v3043_v31, %v3047_v29  ;;  %v4022_v61 = vadd.f32 %v8767_v43, %v8875_v37 }
 0x431   : > { %v5401_v51 = vpop.f32.mrf.mxu1 }
 0x432   : > { %9505 = vst [vmem:[#allocation37_spill] sm:$0xff] %v8974_v58  ;;  %v5402_v54 = vadd.f32 %v5401_v51, %v5400_v45  ;;  %v8991_v58 = vpop.f32.mrf.mxu0  ;;  %v3203_v45 = vpop.permute.xlu1 %3202 }
 0x433   : > { %v5403_v35 = vpop.f32.mrf.mxu1  ;;  %v9001_v51 = vpop.permute.xlu0 %4700  ;;  %v4027_v43 = vadd.f32 %v8775_v41, %v3203_v45 }
 0x434   : > { %v8987_v7 = vadd.f32 %v5402_v54, %v4019_v13  ;;  %9508 = vst [vmem:[#allocation6_spill] sm:$0xff] %v9001_v51  ;;  %v9004_v13 = vpop.f32.mrf.mxu0 }
 0x435   : > { %v5404_v17 = vpop.f32.mrf.mxu1 }
 0x436   : > { %9506 = vst [vmem:[#allocation39_spill] sm:$0xff] %v8987_v7  ;;  %v5405_v32 = vadd.f32 %v5404_v17, %v5403_v35  ;;  %v5161_v35 = vcombine.low %v3043_v31, %v3047_v29  ;;  %v3059_v31 = vld [vmem:[%s9322_s5 + $0x3d8] sm:$0xff] }
 0x437   : > { %v5406_v26 = vpop.f32.mrf.mxu1  ;;  %4572 = vmatmul.mubr.bf16.gmra.mxu1 %v5153_v20  ;;  %v9012_v51 = vpop.permute.xlu0 %4710 }
 0x438   : > { %v8993_v25 = vadd.f32 %v5405_v32, %v4022_v61  ;;  %4579 = vmatprep.mubr.bf16.mxu1 %v5162_v60  ;;  %v5170_v60 = vcombine.high %v3051_v24, %v3055_v28  ;;  %v4030_v61 = vadd.f32 %v8783_v11, %v8887_v21  ;;  %9509 = vst [vmem:[#allocation43_spill] sm:$0xff] %v9012_v51  ;;  %v3063_v11 = vld [vmem:[%s9322_s5 + $0x3f8] sm:$0xff] }
 0x439   : > { %v5407_v27 = vpop.f32.mrf.mxu1 }
 0x43a   : > { %9507 = vst [vmem:[#allocation35_spill] sm:$0xff] %v8993_v25  ;;  %v5408_v37 = vadd.f32 %v5407_v27, %v5406_v26  ;;  %v9010_v25 = vpop.f32.mrf.mxu0  ;;  %v3213_v26 = vpop.permute.xlu1 %3212 }
 0x43b   : > { %v5409_v54 = vpop.f32.mrf.mxu1  ;;  %v4035_v21 = vadd.f32 %v8791_v16, %v3213_v26 }
 0x43c   : > { %v9006_v20 = vadd.f32 %v5408_v37, %v4027_v43  ;;  %v9023_v27 = vpop.f32.mrf.mxu0  ;;  %v5169_v37 = vcombine.low %v3051_v24, %v3055_v28 }
 0x43d   : > { %v5410_v17 = vpop.f32.mrf.mxu1 }
 0x43e   : > { %v5411_v32 = vadd.f32 %v5410_v17, %v5409_v54  ;;  %v9027_v17 = vpop.permute.xlu0 %4720  ;;  %v9031_v51 = vpop.f32.mrf.mxu0 }
 0x43f   : > { %v5412_v7 = vpop.f32.mrf.mxu1  ;;  %4580 = vmatmul.mubr.bf16.gmra.mxu1 %v5161_v35  ;;  %v5178_v35 = vcombine.high %v3059_v31, %v3063_v11  ;;  %9511 = vst [vmem:[#allocation16_spill] sm:$0xff] %v9027_v17 }
 0x440   : > { %v9014_v41 = vadd.f32 %v5411_v32, %v4030_v61  ;;  %4587 = vmatprep.mubr.bf16.mxu1 %v5170_v60  ;;  %v4038_v61 = vadd.f32 %v8799_v46, %v8897_v23 }
 0x441   : > { %v5413_v45 = vpop.f32.mrf.mxu1 }
 0x442   : > { %9510 = vst [vmem:[#allocation51_spill] sm:$0xff] %v9014_v41  ;;  %v5414_v29 = vadd.f32 %v5413_v45, %v5412_v7  ;;  %v3223_v7 = vpop.permute.xlu1 %3222  ;;  %v9036_v45 = vpop.f32.mrf.mxu0 }
 0x443   : > { %v5415_v43 = vpop.f32.mrf.mxu1  ;;  %v4043_v24 = vadd.f32 %v8807_v42, %v3223_v7  ;;  %v9038_v17 = vpop.permute.xlu0 %4730 }
 0x444   : > { %v9025_v54 = vadd.f32 %v5414_v29, %v4035_v21  ;;  %v5177_v29 = vcombine.low %v3059_v31, %v3063_v11  ;;  %9512 = vst [vmem:[#allocation15_spill] sm:$0xff] %v9038_v17 }
 0x445   : > { %v5416_v60 = vpop.f32.mrf.mxu1 }
 0x446   : > { %v5417_v32 = vadd.f32 %v5416_v60, %v5415_v43  ;;  %v4046_v43 = vadd.f32 %v8809_v3, %v8903_v48  ;;  %v9044_v60 = vpop.f32.mrf.mxu0  ;;  %v3233_v42 = vpop.permute.xlu1 %3232  ;;  %v4054_v48 = vadd.f32 %v8819_v49, %v8913_v8  ;;  %v4062_v49 = vadd.f32 %v8829_v36, %v8926_v30 }
 0x447   : > { %v5418_v41 = vpop.f32.mrf.mxu1  ;;  %4588 = vmatmul.mubr.bf16.gmra.mxu1 %v5169_v37  ;;  %v4051_v31 = vadd.f32 %v8817_v56, %v3233_v42  ;;  %v4070_v36 = vadd.f32 %v8839_v14, %v8942_v9 }
 0x448   : > { %v9033_v16 = vadd.f32 %v5417_v32, %v4038_v61  ;;  %4595 = vmatprep.mubr.bf16.mxu1 %v5178_v35  ;;  %v9048_v32 = vpop.permute.xlu0 %4740  ;;  %v9051_v7 = vpop.f32.mrf.mxu0 }
 0x449   : > { %v5419_v26 = vpop.f32.mrf.mxu1  ;;  %9513 = vst [vmem:[#allocation22_spill] sm:$0xff] %v9048_v32 }
 0x44a   : > { %v5420_v28 = vadd.f32 %v5419_v26, %v5418_v41 }
 0x44b   : > { %v5421_v21 = vpop.f32.mrf.mxu1 }
 0x44c   : > { %v9040_v46 = vadd.f32 %v5420_v28, %v4043_v24 }
 0x44d   : > { %v5422_v23 = vpop.f32.mrf.mxu1 }
 0x44e   : > { %v5423_v37 = vadd.f32 %v5422_v23, %v5421_v21  ;;  %v9057_v21 = vpop.f32.mrf.mxu0  ;;  %v3268_v23 = vpop.permute.xlu0 %3267 }
 0x44f   : > { %v5424_v35 = vpop.f32.mrf.mxu1  ;;  %4596 = vmatmul.mubr.bf16.gmra.mxu1 %v5177_v29  ;;  %v4078_v14 = vadd.f32 %v8851_v53, %v3268_v23 }
 0x450   : > { %v9046_v61 = vadd.f32 %v5423_v37, %v4046_v43  ;;  %v3243_v37 = vpop.permute.xlu1 %3242  ;;  %v9062_v42 = vpop.f32.mrf.mxu0 }
 0x451   : > { %v5425_v41 = vpop.f32.mrf.mxu1  ;;  %v4059_v56 = vadd.f32 %v8827_v1, %v3243_v37 }
 0x452   : > { %v5426_v11 = vadd.f32 %v5425_v41, %v5424_v35 }
 0x453   : > { %v5427_v26 = vpop.f32.mrf.mxu1 }
 0x454   : > { %v9053_v24 = vadd.f32 %v5426_v11, %v4051_v31 }
 0x455   : > { %v5428_v3 = vpop.f32.mrf.mxu1 }
 0x456   : > { %9514 = vst [vmem:[#allocation45_spill] sm:$0xff] %v9053_v24  ;;  %v5429_v28 = vadd.f32 %v5428_v3, %v5427_v26  ;;  %v3273_v24 = vpop.permute.xlu0 %3272  ;;  %v9068_v26 = vpop.f32.mrf.mxu0 }
 0x457   : > { %v5430_v29 = vpop.f32.mrf.mxu1  ;;  %v4083_v17 = vadd.f32 %v8861_v34, %v3273_v24 }
 0x458   : > { %v9059_v43 = vadd.f32 %v5429_v28, %v4054_v48  ;;  %v3253_v28 = vpop.permute.xlu1 %3252 }
 0x459   : > { %v5431_v32 = vpop.f32.mrf.mxu1  ;;  %v4067_v1 = vadd.f32 %v8837_v47, %v3253_v28 }
 0x45a   : > { %9515 = vst [vmem:[#allocation46_spill] sm:$0xff] %v9059_v43  ;;  %v5432_v35 = vadd.f32 %v5431_v32, %v5430_v29  ;;  %v9073_v29 = vpop.f32.mrf.mxu0 }
 0x45b   : > { %v5433_v41 = vpop.f32.mrf.mxu1 }
 0x45c   : > { %v9064_v31 = vadd.f32 %v5432_v35, %v4059_v56  ;;  %v3278_v56 = vpop.permute.xlu0 %3277 }
 0x45d   : > { %v5434_v11 = vpop.f32.mrf.mxu1  ;;  %v4086_v53 = vadd.f32 %v8863_v5, %v3278_v56 }
 0x45e   : > { %9516 = vst [vmem:[#allocation17_spill] sm:$0xff] %v9064_v31  ;;  %v5435_v8 = vadd.f32 %v5434_v11, %v5433_v41  ;;  %v9079_v41 = vpop.f32.mrf.mxu0 }
 0x45f   : > { %v5436_v3 = vpop.f32.mrf.mxu1 }
 0x460   : > { %v9070_v48 = vadd.f32 %v5435_v8, %v4062_v49  ;;  %v3263_v8 = vpop.permute.xlu1 %3262  ;;  %v3283_v47 = vpop.permute.xlu0 %3282 }
 0x461   : > { %v5437_v43 = vpop.f32.mrf.mxu1  ;;  %v9084_v28 = vpop.f32.mrf.mxu0 }
 0x462   : > { %9517 = vst [vmem:[#allocation18_spill] sm:$0xff] %v9070_v48  ;;  %v5438_v32 = vadd.f32 %v5437_v43, %v5436_v3  ;;  %v4075_v43 = vadd.f32 %v8847_v4, %v3263_v8 }
 0x463   : > { %v5439_v37 = vpop.f32.mrf.mxu1 }
 0x464   : > { %v9075_v35 = vadd.f32 %v5438_v32, %v4067_v1 }
 0x465   : > { %v5440_v31 = vpop.f32.mrf.mxu1 }
 0x466   : > { %9518 = vst [vmem:[#allocation47_spill] sm:$0xff] %v9075_v35  ;;  %v5441_v30 = vadd.f32 %v5440_v31, %v5439_v37  ;;  %v9089_v31 = vpop.f32.mrf.mxu0 }
 0x467   : > { %v5442_v11 = vpop.f32.mrf.mxu1 }
 0x468   : > { %v9081_v49 = vadd.f32 %v5441_v30, %v4070_v36  ;;  %v3288_v36 = vpop.permute.xlu0 %3287 }
 0x469   : > { %v5443_v48 = vpop.f32.mrf.mxu1 }
 0x46a   : > { %9519 = vst [vmem:[#allocation13_spill] sm:$0xff] %v9081_v49  ;;  %v5444_v3 = vadd.f32 %v5443_v48, %v5442_v11  ;;  %v9094_v48 = vpop.f32.mrf.mxu0 }
 0x46b   : > { %v5445_v1 = vpop.f32.mrf.mxu1 }
 0x46c   : > { %v9086_v32 = vadd.f32 %v5444_v3, %v4075_v43  ;;  %v3293_v3 = vpop.permute.xlu0 %3292 }
 0x46d   : > { %v5446_v35 = vpop.f32.mrf.mxu1 }
 0x46e   : > { %9520 = vst [vmem:[#allocation19_spill] sm:$0xff] %v9086_v32  ;;  %v5447_v9 = vadd.f32 %v5446_v35, %v5445_v1  ;;  %v9099_v35 = vpop.f32.mrf.mxu0 }
 0x46f   : > { %v5448_v37 = vpop.f32.mrf.mxu1 }
 0x470   : > { %v9091_v30 = vadd.f32 %v5447_v9, %v4078_v14  ;;  %v4091_v9 = vadd.f32 %v8873_v50, %v3283_v47  ;;  %v9104_v24 = vpop.f32.mrf.mxu0  ;;  %v4099_v50 = vadd.f32 %v8885_v52, %v3293_v3 }
 0x471   : > { %v5449_v49 = vpop.f32.mrf.mxu1 }
 0x472   : > { %v5450_v4 = vadd.f32 %v5449_v49, %v5448_v37  ;;  %v3298_v37 = vpop.permute.xlu0 %3297  ;;  %v9109_v56 = vpop.f32.mrf.mxu0 }
 0x473   : > { %v5451_v11 = vpop.f32.mrf.mxu1 }
 0x474   : > { %v9096_v8 = vadd.f32 %v5450_v4, %v4083_v17 }
 0x475   : > { %v5452_v43 = vpop.f32.mrf.mxu1 }
 0x476   : > { %9521 = vst [vmem:[#allocation28_spill] sm:$0xff] %v9096_v8  ;;  %v5453_v23 = vadd.f32 %v5452_v43, %v5451_v11  ;;  %v4094_v8 = vadd.f32 %v8877_v44, %v3288_v36 }
 0x477   : > { %v5454_v1 = vpop.f32.mrf.mxu1 }
 0x478   : > { %v9101_v32 = vadd.f32 %v5453_v23, %v4086_v53  ;;  %v3303_v23 = vpop.permute.xlu0 %3302 }
 0x479   : > { %v5455_v14 = vpop.f32.mrf.mxu1 }
 0x47a   : > { %9522 = vst [vmem:[#allocation48_spill] sm:$0xff] %v9101_v32  ;;  %v5456_v34 = vadd.f32 %v5455_v14, %v5454_v1  ;;  %v9114_v1 = vpop.f32.mrf.mxu0 }
 0x47b   : > { %v5457_v49 = vpop.f32.mrf.mxu1 }
 0x47c   : > { %v9106_v17 = vadd.f32 %v5456_v34, %v4091_v9  ;;  %v4102_v34 = vadd.f32 %v8889_v22, %v3298_v37  ;;  %v9119_v36 = vpop.f32.mrf.mxu0 }
 0x47d   : > { %v5458_v4 = vpop.f32.mrf.mxu1 }
 0x47e   : > { %v5459_v5 = vadd.f32 %v5458_v4, %v5457_v49  ;;  %v3308_v4 = vpop.permute.xlu0 %3307  ;;  %v9124_v3 = vpop.f32.mrf.mxu0 }
 0x47f   : > { %v5460_v11 = vpop.f32.mrf.mxu1  ;;  %v4110_v22 = vadd.f32 %v8901_v12, %v3308_v4 }
 0x480   : > { %v9111_v43 = vadd.f32 %v5459_v5, %v4094_v8 }
 0x481   : > { %v5461_v53 = vpop.f32.mrf.mxu1 }
 0x482   : > { %9523 = vst [vmem:[#allocation20_spill] sm:$0xff] %v9111_v43  ;;  %v5462_v47 = vadd.f32 %v5461_v53, %v5460_v11  ;;  %v4107_v43 = vadd.f32 %v8899_v57, %v3303_v23 }
 0x483   : > { %v5463_v14 = vpop.f32.mrf.mxu1 }
 0x484   : > { %v9116_v32 = vadd.f32 %v5462_v47, %v4099_v50  ;;  %v3313_v47 = vpop.permute.xlu0 %3312 }
 0x485   : > { %v5464_v9 = vpop.f32.mrf.mxu1 }
 0x486   : > { %9524 = vst [vmem:[#allocation49_spill] sm:$0xff] %v9116_v32  ;;  %v5465_v44 = vadd.f32 %v5464_v9, %v5463_v14  ;;  %v9129_v14 = vpop.f32.mrf.mxu0 }
 0x487   : > { %v5466_v49 = vpop.f32.mrf.mxu1 }
 0x488   : > { %v9121_v8 = vadd.f32 %v5465_v44, %v4102_v34  ;;  %v4115_v44 = vadd.f32 %v8911_v38, %v3313_v47  ;;  %v9134_v23 = vpop.f32.mrf.mxu0  ;;  %v5499_v38 = vadd.f32 %v8932_v0, %v8924_v55 }
 0x489   : > { %v5467_v5 = vpop.f32.mrf.mxu1 }
 0x48a   : > { %v5468_v52 = vadd.f32 %v5467_v5, %v5466_v49  ;;  %v9139_v4 = vpop.f32.mrf.mxu0 }
 0x48b   : > { %v5469_v11 = vpop.f32.mrf.mxu1 }
 0x48c   : > { %v9126_v53 = vadd.f32 %v5468_v52, %v4107_v43  ;;  %v3318_v43 = vpop.permute.xlu0 %3317 }
 0x48d   : > { %v5470_v50 = vpop.f32.mrf.mxu1 }
 0x48e   : > { %9525 = vst [vmem:[#allocation12_spill] sm:$0xff] %v9126_v53  ;;  %v5471_v37 = vadd.f32 %v5470_v50, %v5469_v11  ;;  %v4118_v53 = vadd.f32 %v8915_v18, %v3318_v43  ;;  %v4320_v18 = vadd.f32 %v5499_v38, %v8934_v6 }
 0x48f   : > { %v5472_v9 = vpop.f32.mrf.mxu1 }
 0x490   : > { %v9131_v32 = vadd.f32 %v5471_v37, %v4110_v22  ;;  %v4676_v37 = vpop.permute.xlu1 %4675 }
 0x491   : > { %v5473_v34 = vpop.f32.mrf.mxu1 }
 0x492   : > { %9526 = vst [vmem:[#allocation25_spill] sm:$0xff] %v9131_v32  ;;  %v5474_v57 = vadd.f32 %v5473_v34, %v5472_v9  ;;  %v9145_v9 = vpop.f32.mrf.mxu0 }
 0x493   : > { %v5475_v49 = vpop.f32.mrf.mxu1 }
 0x494   : > { %v9136_v5 = vadd.f32 %v5474_v57, %v4115_v44 }
 0x495   : > { %v5476_v52 = vpop.f32.mrf.mxu1 }
 0x496   : > { %9527 = vst [vmem:[#allocation65_spill] sm:$0xff] %v9136_v5  ;;  %v5477_v12 = vadd.f32 %v5476_v52, %v5475_v49  ;;  %v5502_v49 = vadd.f32 %v8951_v10, %v8945_v19 }
 0x497   : > { %v5606_v11 = vpop.f32.mrf.mxu1 }
 0x498   : > { %v9141_v50 = vadd.f32 %v5477_v12, %v4118_v53  ;;  %v9151_v53 = vpop.f32.mrf.mxu0  ;;  %v4686_v12 = vpop.permute.xlu1 %4685  ;;  %v4325_v0 = vadd.f32 %v5502_v49, %v8947_v63 }
 0x499   : > { %v5607_v22 = vpop.f32.mrf.mxu1 }
 0x49a   : > { %9528 = vst [vmem:[#allocation40_spill] sm:$0xff] %v9141_v50  ;;  %v5608_v47 = vadd.f32 %v5607_v22, %v5606_v11  ;;  %v5505_v11 = vadd.f32 %v8972_v15, %v8964_v40 }
 0x49b   : > { %v5609_v34 = vpop.f32.mrf.mxu1 }
 0x49c   : > { %v4478_v44 = vadd.f32 %v5608_v47, %v8930_v62  ;;  %v9156_v47 = vpop.f32.mrf.mxu0 }
 0x49d   : > { %v5610_v57 = vpop.f32.mrf.mxu1 }
 0x49e   : > { %v5611_v43 = vadd.f32 %v5610_v57, %v5609_v34  ;;  %v4604_v50 = vmax.f32 %v4478_v44, 0.0  ;;  %v5508_v34 = vadd.f32 %v8991_v58, %v8983_v59  ;;  %v4696_v57 = vpop.permute.xlu1 %4695  ;;  %v9162_v40 = vpop.f32.mrf.mxu0 }
 0x49f   : > { %v5612_v52 = vpop.f32.mrf.mxu1 }
 0x4a0   : > { %v4481_v5 = vadd.f32 %v5611_v43, %v4320_v18  ;;  %v4828_v19 = vmul.f32 %v8953_v33, %v4604_v50  ;;  %v9529_v18 = vld [vmem:[#allocation9_spill] sm:$0xff] }
 0x4a1   : > { %v5613_v55 = vpop.f32.mrf.mxu1  ;;  %v4328_v43 = vadd.f32 %v5505_v11, %v9529_v18 }
 0x4a2   : > { %v4605_v62 = vmax.f32 %v4481_v5, 0.0  ;;  %v5614_v22 = vadd.f32 %v5613_v55, %v5612_v52  ;;  %v9530_v55 = vld [vmem:[#allocation31_spill] sm:$0xff] }
 0x4a3   : > { %v5615_v6 = vpop.f32.mrf.mxu1  ;;  %v4333_v33 = vadd.f32 %v5508_v34, %v9530_v55 }
 0x4a4   : > { %v4829_v10 = vmul.f32 %v4676_v37, %v4605_v62  ;;  %v4486_v38 = vadd.f32 %v5614_v22, %v4325_v0  ;;  %v5511_v37 = vadd.f32 %v9010_v25, %v9004_v13  ;;  %v9168_v62 = vpop.f32.mrf.mxu0  ;;  %v4706_v22 = vpop.permute.xlu1 %4705 }
 0x4a5   : > { %v5616_v44 = vpop.f32.mrf.mxu1 }
 0x4a6   : > { %v4860_v63 = vadd.f32 %v4829_v10, %v4828_v19  ;;  %v4606_v49 = vmax.f32 %v4486_v38, 0.0  ;;  %v5617_v32 = vadd.f32 %v5616_v44, %v5615_v6  ;;  %v5514_v10 = vadd.f32 %v9031_v51, %v9023_v27 }
 0x4a7   : > { %v5618_v15 = vpop.f32.mrf.mxu1 }
 0x4a8   : > { %v4830_v5 = vmul.f32 %v8968_v39, %v4606_v49  ;;  %v4489_v52 = vadd.f32 %v5617_v32, %v4328_v43  ;;  %v9531_v32 = vld [vmem:[#allocation37_spill] sm:$0xff]  ;;  %v9173_v43 = vpop.f32.mrf.mxu0  ;;  %v9532_v49 = vld [vmem:[#allocation39_spill] sm:$0xff] }
 0x4a9   : > { %v5619_v50 = vpop.f32.mrf.mxu1  ;;  %v4336_v38 = vadd.f32 %v5511_v37, %v9531_v32  ;;  %v9534_v32 = vld [vmem:[#allocation6_spill] sm:$0xff] }
 0x4aa   : > { %v4861_v58 = vadd.f32 %v4860_v63, %v4830_v5  ;;  %v4607_v59 = vmax.f32 %v4489_v52, 0.0  ;;  %v5620_v0 = vadd.f32 %v5619_v50, %v5618_v15  ;;  %v4341_v15 = vadd.f32 %v5514_v10, %v9532_v49 }
 0x4ab   : > { %v5621_v11 = vpop.f32.mrf.mxu1  ;;  %v5517_v52 = vadd.f32 %v9044_v60, %v9036_v45 }
 0x4ac   : > { %v4831_v6 = vmul.f32 %v4686_v12, %v4607_v59  ;;  %v4494_v19 = vadd.f32 %v5620_v0, %v4333_v33  ;;  %v4716_v12 = vpop.permute.xlu1 %4715  ;;  %v9179_v33 = vpop.f32.mrf.mxu0  ;;  %v5520_v59 = vadd.f32 %v9057_v21, %v9051_v7  ;;  %v9533_v0 = vld [vmem:[#allocation35_spill] sm:$0xff] }
 0x4ad   : > { %v5622_v39 = vpop.f32.mrf.mxu1 }
 0x4ae   : > { %v4862_v34 = vadd.f32 %v4861_v58, %v4831_v6  ;;  %v4608_v44 = vmax.f32 %v4494_v19, 0.0  ;;  %v5623_v18 = vadd.f32 %v5622_v39, %v5621_v11  ;;  %v4344_v11 = vadd.f32 %v5517_v52, %v9533_v0  ;;  %v9184_v39 = vpop.f32.mrf.mxu0 }
 0x4af   : > { %v5624_v25 = vpop.f32.mrf.mxu1 }
 0x4b0   : > { %v4832_v13 = vmul.f32 %v8985_v2, %v4608_v44  ;;  %v4497_v63 = vadd.f32 %v5623_v18, %v4336_v38  ;;  %v4726_v60 = vpop.permute.xlu1 %4725  ;;  %v4349_v44 = vadd.f32 %v5520_v59, %v9006_v20  ;;  %v5523_v18 = vadd.f32 %v9068_v26, %v9062_v42  ;;  %v9536_v26 = vld [vmem:[#allocation43_spill] sm:$0xff] }
 0x4b1   : > { %v5625_v5 = vpop.f32.mrf.mxu1 }
 0x4b2   : > { %v4863_v51 = vadd.f32 %v4862_v34, %v4832_v13  ;;  %v4609_v27 = vmax.f32 %v4497_v63, 0.0  ;;  %v5626_v55 = vadd.f32 %v5625_v5, %v5624_v25  ;;  %v9190_v13 = vpop.f32.mrf.mxu0  ;;  %v5526_v5 = vadd.f32 %v9079_v41, %v9073_v29 }
 0x4b3   : > { %v5627_v50 = vpop.f32.mrf.mxu1 }
 0x4b4   : > { %v4833_v37 = vmul.f32 %v4696_v57, %v4609_v27  ;;  %v4502_v58 = vadd.f32 %v5626_v55, %v4341_v15  ;;  %v9535_v27 = vld [vmem:[#allocation51_spill] sm:$0xff]  ;;  %v4357_v0 = vadd.f32 %v5526_v5, %v9025_v54  ;;  %v5535_v5 = vadd.f32 %v9109_v56, %v9104_v24 }
 0x4b5   : > { %v5628_v2 = vpop.f32.mrf.mxu1  ;;  %v4352_v55 = vadd.f32 %v5523_v18, %v9535_v27 }
 0x4b6   : > { %v4864_v6 = vadd.f32 %v4863_v51, %v4833_v37  ;;  %v4610_v19 = vmax.f32 %v4502_v58, 0.0  ;;  %v5629_v10 = vadd.f32 %v5628_v2, %v5627_v50  ;;  %v4736_v51 = vpop.permute.xlu1 %4735  ;;  %v9195_v58 = vpop.f32.mrf.mxu0 }
 0x4b7   : > { %v5630_v45 = vpop.f32.mrf.mxu1 }
 0x4b8   : > { %v4834_v38 = vmul.f32 %v9534_v32, %v4610_v19  ;;  %v4505_v34 = vadd.f32 %v5629_v10, %v4344_v11  ;;  %v5529_v11 = vadd.f32 %v9089_v31, %v9084_v28  ;;  %v9201_v19 = vpop.f32.mrf.mxu0 }
 0x4b9   : > { %v5631_v57 = vpop.f32.mrf.mxu1 }
 0x4ba   : > { %v4865_v7 = vadd.f32 %v4864_v6, %v4834_v38  ;;  %v4611_v21 = vmax.f32 %v4505_v34, 0.0  ;;  %v5632_v25 = vadd.f32 %v5631_v57, %v5630_v45  ;;  %v9203_v45 = vpop.permute.xlu1 %4745  ;;  %v5532_v34 = vadd.f32 %v9099_v35, %v9094_v48  ;;  %v9208_v28 = vpop.f32.mrf.mxu0 }
 0x4bb   : > { %v5633_v63 = vpop.f32.mrf.mxu1  ;;  %v4360_v54 = vadd.f32 %v5529_v11, %v9033_v16 }
 0x4bc   : > { %v4835_v49 = vmul.f32 %v4706_v22, %v4611_v21  ;;  %v4510_v15 = vadd.f32 %v5632_v25, %v4349_v44  ;;  %v9537_v21 = vld [vmem:[#allocation16_spill] sm:$0xff]  ;;  %v9214_v16 = vpop.f32.mrf.mxu0 }
 0x4bd   : > { %v5634_v52 = vpop.f32.mrf.mxu1 }
 0x4be   : > { %v4866_v20 = vadd.f32 %v4865_v7, %v4835_v49  ;;  %v4612_v50 = vmax.f32 %v4510_v15, 0.0  ;;  %v5635_v37 = vadd.f32 %v5634_v52, %v5633_v63  ;;  %v4365_v49 = vadd.f32 %v5532_v34, %v9040_v46 }
 0x4bf   : > { %v5636_v42 = vpop.f32.mrf.mxu1 }
 0x4c0   : > { %v4836_v59 = vmul.f32 %v9536_v26, %v4612_v50  ;;  %v4513_v2 = vadd.f32 %v5635_v37, %v4352_v55  ;;  %v5538_v50 = vadd.f32 %v9119_v36, %v9114_v1 }
 0x4c1   : > { %v5637_v22 = vpop.f32.mrf.mxu1 }
 0x4c2   : > { %v4867_v29 = vadd.f32 %v4866_v20, %v4836_v59  ;;  %v4613_v41 = vmax.f32 %v4513_v2, 0.0  ;;  %v5638_v6 = vadd.f32 %v5637_v22, %v5636_v42  ;;  %v4368_v42 = vadd.f32 %v5535_v5, %v9046_v61  ;;  %v9219_v2 = vpop.f32.mrf.mxu0  ;;  %v9542_v5 = vld [vmem:[#allocation17_spill] sm:$0xff] }
 0x4c3   : > { %v5639_v10 = vpop.f32.mrf.mxu1 }
 0x4c4   : > { %v4837_v32 = vmul.f32 %v4716_v12, %v4613_v41  ;;  %v4518_v38 = vadd.f32 %v5638_v6, %v4357_v0  ;;  %v4751_v12 = vpop.permute.xlu1 %4750  ;;  %v9538_v0 = vld [vmem:[#allocation15_spill] sm:$0xff]  ;;  %v5541_v6 = vadd.f32 %v9129_v14, %v9124_v3  ;;  %v9225_v61 = vpop.f32.mrf.mxu0  ;;  %v9541_v14 = vld [vmem:[#allocation22_spill] sm:$0xff] }
 0x4c5   : > { %v5640_v44 = vpop.f32.mrf.mxu1 }
 0x4c6   : > { %v4868_v57 = vadd.f32 %v4867_v29, %v4837_v32  ;;  %v4614_v18 = vmax.f32 %v4518_v38, 0.0  ;;  %v5641_v7 = vadd.f32 %v5640_v44, %v5639_v10  ;;  %v9539_v29 = vld [vmem:[#allocation45_spill] sm:$0xff]  ;;  %v5544_v44 = vadd.f32 %v9139_v4, %v9134_v23 }
 0x4c7   : > { %v5642_v31 = vpop.f32.mrf.mxu1  ;;  %v4373_v41 = vadd.f32 %v5538_v50, %v9539_v29 }
 0x4c8   : > { %v4838_v25 = vmul.f32 %v9537_v21, %v4614_v18  ;;  %v4521_v63 = vadd.f32 %v5641_v7, %v4360_v54  ;;  %v4756_v56 = vpop.permute.xlu1 %4755  ;;  %v9540_v18 = vld [vmem:[#allocation46_spill] sm:$0xff] }
 0x4c9   : > { %v5643_v15 = vpop.f32.mrf.mxu1  ;;  %v4376_v7 = vadd.f32 %v5541_v6, %v9540_v18 }
 0x4ca   : > { %v4869_v48 = vadd.f32 %v4868_v57, %v4838_v25  ;;  %v4615_v35 = vmax.f32 %v4521_v63, 0.0  ;;  %v5644_v52 = vadd.f32 %v5643_v15, %v5642_v31  ;;  %v9230_v63 = vpop.f32.mrf.mxu0 }
 0x4cb   : > { %v5645_v27 = vpop.f32.mrf.mxu1 }
 0x4cc   : > { %v4839_v55 = vmul.f32 %v4726_v60, %v4615_v35  ;;  %v4526_v20 = vadd.f32 %v5644_v52, %v4365_v49  ;;  %v4761_v57 = vpop.permute.xlu1 %4760  ;;  %v5547_v35 = vadd.f32 %v9151_v53, %v9145_v9 }
 0x4cd   : > { %v5646_v37 = vpop.f32.mrf.mxu1 }
 0x4ce   : > { %v4870_v46 = vadd.f32 %v4869_v48, %v4839_v55  ;;  %v4616_v26 = vmax.f32 %v4526_v20, 0.0  ;;  %v5647_v59 = vadd.f32 %v5646_v37, %v5645_v27  ;;  %v4381_v48 = vadd.f32 %v5544_v44, %v9542_v5  ;;  %v9236_v27 = vpop.f32.mrf.mxu0 }
 0x4cf   : > { %v5648_v24 = vpop.f32.mrf.mxu1  ;;  %v5556_v44 = vadd.f32 %v9184_v39, %v9179_v33 }
 0x4d0   : > { %v4840_v22 = vmul.f32 %v9538_v0, %v4616_v26  ;;  %v4529_v11 = vadd.f32 %v5647_v59, %v4368_v42  ;;  %v4766_v20 = vpop.permute.xlu1 %4765  ;;  %v5550_v42 = vadd.f32 %v9162_v40, %v9156_v47  ;;  %v9543_v26 = vld [vmem:[#allocation18_spill] sm:$0xff]  ;;  %v9242_v9 = vpop.f32.mrf.mxu0 }
 0x4d1   : > { %v5649_v60 = vpop.f32.mrf.mxu1  ;;  %v4384_v59 = vadd.f32 %v5547_v35, %v9543_v26 }
 0x4d2   : > { %v4871_v1 = vadd.f32 %v4870_v46, %v4840_v22  ;;  %v4617_v36 = vmax.f32 %v4529_v11, 0.0  ;;  %v5650_v10 = vadd.f32 %v5649_v60, %v5648_v24 }
 0x4d3   : > { %v5651_v32 = vpop.f32.mrf.mxu1 }
 0x4d4   : > { %v4841_v38 = vmul.f32 %v4736_v51, %v4617_v36  ;;  %v4534_v34 = vadd.f32 %v5650_v10, %v4373_v41  ;;  %v9544_v41 = vld [vmem:[#allocation47_spill] sm:$0xff]  ;;  %v9247_v10 = vpop.f32.mrf.mxu0 }
 0x4d5   : > { %v5652_v54 = vpop.f32.mrf.mxu1  ;;  %v4389_v60 = vadd.f32 %v5550_v42, %v9544_v41 }
 0x4d6   : > { %v4872_v31 = vadd.f32 %v4871_v1, %v4841_v38  ;;  %v4618_v21 = vmax.f32 %v4534_v34, 0.0  ;;  %v5653_v25 = vadd.f32 %v5652_v54, %v5651_v32  ;;  %v4771_v1 = vpop.permute.xlu1 %4770  ;;  %v9545_v54 = vld [vmem:[#allocation13_spill] sm:$0xff] }
 0x4d7   : > { %v5654_v3 = vpop.f32.mrf.mxu1 }
 0x4d8   : > { %v4842_v49 = vmul.f32 %v9541_v14, %v4618_v21  ;;  %v4537_v15 = vadd.f32 %v5653_v25, %v4376_v7  ;;  %v5573_v25 = vpop.f32.mrf.mxu0 }
 0x4d9   : > { %v5655_v51 = vpop.f32.mrf.mxu1 }
 0x4da   : > { %v4873_v23 = vadd.f32 %v4872_v31, %v4842_v49  ;;  %v4619_v4 = vmax.f32 %v4537_v15, 0.0  ;;  %v5656_v52 = vadd.f32 %v5655_v51, %v5654_v3  ;;  %v9546_v49 = vld [vmem:[#allocation19_spill] sm:$0xff]  ;;  %v5575_v39 = vpop.f32.mrf.mxu0 }
 0x4db   : > { %v5657_v55 = vpop.f32.mrf.mxu1  ;;  %v4397_v15 = vadd.f32 %v5556_v44, %v9546_v49  ;;  %v9549_v49 = vld [vmem:[#allocation20_spill] sm:$0xff] }
 0x4dc   : > { %v4843_v50 = vmul.f32 %v9203_v45, %v4619_v4  ;;  %v4542_v37 = vadd.f32 %v5656_v52, %v4381_v48  ;;  %v5553_v45 = vadd.f32 %v9173_v43, %v9168_v62  ;;  %v4776_v62 = vpop.permute.xlu1 %4775  ;;  %v5562_v52 = vadd.f32 %v9208_v28, %v9201_v19  ;;  %v5576_v26 = vpop.f32.mrf.mxu0 }
 0x4dd   : > { %v5658_v46 = vpop.f32.mrf.mxu1 }
 0x4de   : > { %v4874_v24 = vadd.f32 %v4873_v23, %v4843_v50  ;;  %v4620_v0 = vmax.f32 %v4542_v37, 0.0  ;;  %v5659_v22 = vadd.f32 %v5658_v46, %v5657_v55  ;;  %v4392_v18 = vadd.f32 %v5553_v45, %v9545_v54  ;;  %v5578_v28 = vpop.f32.mrf.mxu0 }
 0x4df   : > { %v5660_v53 = vpop.f32.mrf.mxu1 }
 0x4e0   : > { %v4844_v11 = vmul.f32 %v4751_v12, %v4620_v0  ;;  %v4545_v29 = vadd.f32 %v5659_v22, %v4384_v59  ;;  %v4781_v50 = vpop.permute.xlu1 %4780 }
 0x4e1   : > { %v5661_v6 = vpop.f32.mrf.mxu1 }
 0x4e2   : > { %v4875_v36 = vadd.f32 %v4874_v24, %v4844_v11  ;;  %v4621_v47 = vmax.f32 %v4545_v29, 0.0  ;;  %v5662_v40 = vadd.f32 %v5661_v6, %v5660_v53  ;;  %v9547_v24 = vld [vmem:[#allocation28_spill] sm:$0xff]  ;;  %v5568_v6 = vadd.f32 %v9230_v63, %v9225_v61 }
 0x4e3   : > { %v5663_v32 = vpop.f32.mrf.mxu1  ;;  %v4405_v0 = vadd.f32 %v5562_v52, %v9547_v24  ;;  %v5577_v52 = vadd.f32 %v5576_v26, %v5575_v39  ;;  %v9551_v39 = vld [vmem:[#allocation12_spill] sm:$0xff] }
 0x4e4   : > { %v4845_v38 = vmul.f32 %v4756_v56, %v4621_v47  ;;  %v4550_v34 = vadd.f32 %v5662_v40, %v4389_v60  ;;  %v5559_v56 = vadd.f32 %v9195_v58, %v9190_v13  ;;  %v4786_v41 = vpop.permute.xlu1 %4785  ;;  %v4413_v44 = vadd.f32 %v5568_v6, %v9106_v17 }
 0x4e5   : > { %v5664_v12 = vpop.f32.mrf.mxu1 }
 0x4e6   : > { %v4876_v7 = vadd.f32 %v4875_v36, %v4845_v38  ;;  %v4622_v31 = vmax.f32 %v4550_v34, 0.0  ;;  %v5665_v21 = vadd.f32 %v5664_v12, %v5663_v32  ;;  %v5579_v38 = vpop.f32.mrf.mxu0 }
 0x4e7   : > { %v5666_v3 = vpop.f32.mrf.mxu1 }
 0x4e8   : > { %v4846_v43 = vmul.f32 %v4761_v57, %v4622_v31  ;;  %v4553_v14 = vadd.f32 %v5665_v21, %v4392_v18  ;;  %v4400_v57 = vadd.f32 %v5559_v56, %v9091_v30  ;;  %v4791_v54 = vpop.permute.xlu1 %4790  ;;  %v5571_v18 = vadd.f32 %v9242_v9, %v9236_v27  ;;  %v5581_v63 = vpop.f32.mrf.mxu0  ;;  %v9550_v9 = vld [vmem:[#allocation49_spill] sm:$0xff] }
 0x4e9   : > { %v5667_v5 = vpop.f32.mrf.mxu1 }
 0x4ea   : > { %v4877_v48 = vadd.f32 %v4876_v7, %v4846_v43  ;;  %v4623_v51 = vmax.f32 %v4553_v14, 0.0  ;;  %v5668_v33 = vadd.f32 %v5667_v5, %v5666_v3  ;;  %v5574_v43 = vadd.f32 %v5573_v25, %v9247_v10 }
 0x4eb   : > { %v5669_v35 = vpop.f32.mrf.mxu1 }
 0x4ec   : > { %v4847_v23 = vmul.f32 %v4766_v20, %v4623_v51  ;;  %v4558_v4 = vadd.f32 %v5668_v33, %v4397_v15  ;;  %v5565_v20 = vadd.f32 %v9219_v2, %v9214_v16  ;;  %v4416_v15 = vadd.f32 %v5571_v18, %v9549_v49  ;;  %v4796_v33 = vpop.permute.xlu1 %4795 }
 0x4ed   : > { %v5670_v55 = vpop.f32.mrf.mxu1 }
 0x4ee   : > { %v4878_v37 = vadd.f32 %v4877_v48, %v4847_v23  ;;  %v4624_v42 = vmax.f32 %v4558_v4, 0.0  ;;  %v5671_v46 = vadd.f32 %v5670_v55, %v5669_v35  ;;  %v5582_v48 = vpop.f32.mrf.mxu0  ;;  %v4421_v23 = vadd.f32 %v5574_v43, %v9550_v9 }
 0x4ef   : > { %v5672_v59 = vpop.f32.mrf.mxu1 }
 0x4f0   : > { %v4848_v13 = vmul.f32 %v4771_v1, %v4624_v42  ;;  %v4561_v58 = vadd.f32 %v5671_v46, %v4400_v57  ;;  %v9548_v1 = vld [vmem:[#allocation48_spill] sm:$0xff]  ;;  %v5580_v46 = vadd.f32 %v5579_v38, %v5578_v28  ;;  %v9552_v38 = vld [vmem:[#allocation25_spill] sm:$0xff] }
 0x4f1   : > { %v5673_v22 = vpop.f32.mrf.mxu1  ;;  %v4408_v36 = vadd.f32 %v5565_v20, %v9548_v1 }
 0x4f2   : > { %v4879_v53 = vadd.f32 %v4878_v37, %v4848_v13  ;;  %v4625_v11 = vmax.f32 %v4561_v58, 0.0  ;;  %v5674_v19 = vadd.f32 %v5673_v22, %v5672_v59  ;;  %v5584_v37 = vpop.f32.mrf.mxu0  ;;  %v4801_v13 = vpop.permute.xlu1 %4800  ;;  %v4424_v58 = vadd.f32 %v5577_v52, %v9121_v8 }
 0x4f3   : > { %v5675_v29 = vpop.f32.mrf.mxu1  ;;  %v4429_v26 = vadd.f32 %v5580_v46, %v9551_v39 }
 0x4f4   : > { %v4849_v30 = vmul.f32 %v4776_v62, %v4625_v11  ;;  %v4566_v60 = vadd.f32 %v5674_v19, %v4405_v0  ;;  %v5585_v20 = vpop.f32.mrf.mxu0 }
 0x4f5   : > { %v5676_v45 = vpop.f32.mrf.mxu1  ;;  %v5586_v8 = vadd.f32 %v5585_v20, %v5584_v37 }
 0x4f6   : > { %v4880_v47 = vadd.f32 %v4879_v53, %v4849_v30  ;;  %v4626_v40 = vmax.f32 %v4566_v60, 0.0  ;;  %v5677_v32 = vadd.f32 %v5676_v45, %v5675_v29  ;;  %v5583_v30 = vadd.f32 %v5582_v48, %v5581_v63  ;;  %v5587_v28 = vpop.f32.mrf.mxu0 }
 0x4f7   : > { %v5678_v34 = vpop.f32.mrf.mxu1 }
 0x4f8   : > { %v4850_v16 = vmul.f32 %v4781_v50, %v4626_v40  ;;  %v4569_v2 = vadd.f32 %v5677_v32, %v4408_v36  ;;  %v4811_v32 = vpop.permute.xlu1 %4810 }
 0x4f9   : > { %v5679_v12 = vpop.f32.mrf.mxu1 }
 0x4fa   : > { %v4881_v7 = vadd.f32 %v4880_v47, %v4850_v16  ;;  %v4627_v31 = vmax.f32 %v4569_v2, 0.0  ;;  %v5680_v61 = vadd.f32 %v5679_v12, %v5678_v34  ;;  %v4432_v34 = vadd.f32 %v5583_v30, %v9552_v38  ;;  %v5588_v12 = vpop.f32.mrf.mxu0 }
 0x4fb   : > { %v5681_v21 = vpop.f32.mrf.mxu1 }
 0x4fc   : > { %v4851_v3 = vmul.f32 %v4786_v41, %v4627_v31  ;;  %v4574_v62 = vadd.f32 %v5680_v61, %v4413_v44  ;;  %v4806_v41 = vpop.permute.xlu0 %4805  ;;  %v9553_v31 = vld [vmem:[#allocation65_spill] sm:$0xff] }
 0x4fd   : > { %v5682_v14 = vpop.f32.mrf.mxu1  ;;  %v4437_v61 = vadd.f32 %v5586_v8, %v9553_v31 }
 0x4fe   : > { %v4882_v5 = vadd.f32 %v4881_v7, %v4851_v3  ;;  %v4628_v56 = vmax.f32 %v4574_v62, 0.0  ;;  %v5683_v17 = vadd.f32 %v5682_v14, %v5681_v21  ;;  %v5589_v21 = vadd.f32 %v5588_v12, %v5587_v28 }
 0x4ff   : > { %v5684_v51 = vpop.f32.mrf.mxu1 }
 0x500   : > { %v4852_v35 = vmul.f32 %v4791_v54, %v4628_v56  ;;  %v4577_v27 = vadd.f32 %v5683_v17, %v4416_v15  ;;  %v4816_v14 = vpop.permute.xlu0 %4815  ;;  %v9554_v17 = vld [vmem:[#allocation40_spill] sm:$0xff] }
 0x501   : > { %v5685_v4 = vpop.f32.mrf.mxu1  ;;  %v4440_v48 = vadd.f32 %v5589_v21, %v9554_v17 }
 0x502   : > { %v4883_v55 = vadd.f32 %v4882_v5, %v4852_v35  ;;  %v4629_v50 = vmax.f32 %v4577_v27, 0.0  ;;  %v5686_v57 = vadd.f32 %v5685_v4, %v5684_v51  ;;  %v4821_v27 = vpop.permute.xlu1 %4820 }
 0x503   : > { %v5687_v10 = vpop.f32.mrf.mxu1 }
 0x504   : > { %v4853_v25 = vmul.f32 %v4796_v33, %v4629_v50  ;;  %v4582_v42 = vadd.f32 %v5686_v57, %v4421_v23 }
 0x505   : > { %v5688_v59 = vpop.f32.mrf.mxu1 }
 0x506   : > { %v4884_v24 = vadd.f32 %v4883_v55, %v4853_v25  ;;  %v4630_v0 = vmax.f32 %v4582_v42, 0.0  ;;  %v5689_v22 = vadd.f32 %v5688_v59, %v5687_v10  ;;  %v4826_v55 = vpop.permute.xlu0 %4825  ;;  %v4901_v46 = vpop.permute.xlu1 %4900 }
 0x507   : > { %v5690_v53 = vpop.f32.mrf.mxu1 }
 0x508   : > { %v4854_v11 = vmul.f32 %v4801_v13, %v4630_v0  ;;  %v4585_v19 = vadd.f32 %v5689_v22, %v4424_v58  ;;  %v9555_v13 = vld [vmem:[#allocation11_spill] sm:$0xff] }
 0x509   : > { %v5691_v29 = vpop.f32.mrf.mxu1  ;;  %v9556_v58 = vsub.s32 0, %v9555_v13 }
 0x50a   : > { %v4885_v60 = vadd.f32 %v4884_v24, %v4854_v11  ;;  %v4631_v6 = vmax.f32 %v4585_v19, 0.0  ;;  %v5692_v45 = vadd.f32 %v5691_v29, %v5690_v53 }
 0x50b   : > { %v5693_v1 = vpop.f32.mrf.mxu1  ;;  %v4906_v24 = vrot.slane %v4901_v46, %v9556_v58 }
 0x50c   : > { %v4855_v36 = vmul.f32 %v4806_v41, %v4631_v6  ;;  %v4590_v47 = vadd.f32 %v5692_v45, %v4429_v26 }
 0x50d   : > { %v5694_v40 = vpop.f32.mrf.mxu1 }
 0x50e   : > { %v4886_v16 = vadd.f32 %v4885_v60, %v4855_v36  ;;  %v4632_v2 = vmax.f32 %v4590_v47, 0.0  ;;  %v5695_v44 = vadd.f32 %v5694_v40, %v5693_v1 }
 0x50f   : > { %v5696_v54 = vpop.f32.mrf.mxu1 }
 0x510   : > { %v4856_v18 = vmul.f32 %v4811_v32, %v4632_v2  ;;  %v4593_v7 = vadd.f32 %v5695_v44, %v4432_v34 }
 0x511   : > { %v5697_v63 = vpop.f32.mrf.mxu1 }
 0x512   : > { %v4887_v3 = vadd.f32 %v4886_v16, %v4856_v18  ;;  %v4633_v62 = vmax.f32 %v4593_v7, 0.0  ;;  %v5698_v43 = vadd.f32 %v5697_v63, %v5696_v54 }
 0x513   : > { %v5699_v49 = vpop.f32.mrf.mxu1 }
 0x514   : > { %v4857_v15 = vmul.f32 %v4816_v14, %v4633_v62  ;;  %v4598_v5 = vadd.f32 %v5698_v43, %v4437_v61 }
 0x515   : > { %v5700_v56 = vpop.f32.mrf.mxu1 }
 0x516   : > { %v4888_v51 = vadd.f32 %v4887_v3, %v4857_v15  ;;  %v4634_v33 = vmax.f32 %v4598_v5, 0.0  ;;  %v5701_v35 = vadd.f32 %v5700_v56, %v5699_v49 }
 0x518   : > { %v4858_v9 = vmul.f32 %v4821_v27, %v4634_v33  ;;  %v4601_v23 = vadd.f32 %v5701_v35, %v4440_v48 }
 0x51a   : > { %v4889_v4 = vadd.f32 %v4888_v51, %v4858_v9  ;;  %v4635_v52 = vmax.f32 %v4601_v23, 0.0 }
 0x51c   : > { %v4859_v50 = vmul.f32 %v4826_v55, %v4635_v52 }
 0x51e   : > { %v4890_v57 = vadd.f32 %v4889_v4, %v4859_v50 }
 0x520   : > { %v4891_v37 = vrot.slane %v4890_v57, 4 }
 0x522   : > { %v4892_v10 = vadd.f32 %v4891_v37, %v4890_v57 }
 0x524   : > { %v4893_v25 = vrot.slane %v4892_v10, 2 }
 0x526   : > { %v4894_v42 = vadd.f32 %v4893_v25, %v4892_v10 }
 0x528   : > { %v4895_v59 = vrot.slane %v4894_v42, 1 }
 0x52a   : > { %v4896_v0 = vadd.f32 %v4895_v59, %v4894_v42 }
 0x52c   : > { %v4907_v22 = vadd.f32 %v4906_v24, %v4896_v0 }
 0x52e   : > { %v4908_v20 = vsub.f32 0.0, %v4907_v22 }
 0x530   : > { %v4909_v53 = vmul.f32 1.442695, %v4908_v20 }
 0x532   : > { %6251 = vpow2.f32 %v4909_v53 }
 0x53f   : > { %v6252_v11 = vpop.eup %6251 }
 0x540   : > { %v4911_v19 = vadd.f32 1.0, %v6252_v11 }
 0x542   : > { %6253 = vrcp.f32 %v4911_v19 }
 0x54f   : > { %v6254_v39 = vpop.eup %6253 }
 0x550   : > { %4913 = vst [vmem:[%s324_s29] sm:$0x1] %v6254_v39 }
 0x551   : > { %6268 = shalt.err (!%p6265_p3)
}
 0x552   : > { %s6269_s25 = scalar_lea.hbm %s9282_s17, 16  ;;  %s6273_s28 = scalar_lea.hbm %s9326_s9, 32 }
 0x553   : > { %p6270_p4 = scmp.ne.s32.totalorder %s9282_s17, %s6269_s25  ;;  %p6274_p9 = scmp.lt.s32.totalorder %s9282_s17, %s9326_s9 }
 0x554   : > { %p6275_p10 = scmp.lt.s32.totalorder %s6273_s28, %s6269_s25 }
 0x555   : > { %p6271_p7 = pnand %p6270_p4, %p6414_p5 }
 0x556   : > { %p6276_p11 = por %p6275_p10, %p6274_p9 }
 0x557   : > { %p6272_p8 = pneg %p6271_p7 }
 0x559   : > { %p6277_p12 = pnand %p6276_p11, %p6272_p8 }
 0x55b   : > { %6280 = shalt.err (!%p6277_p12)
}
 0x55c   : > { %5846 = dma.vmem_to_hbm [thread:$0]  (%p6414_p5), %s4928_s30, 16, %s9282_s17, %s4915_s18  }
 0x55d PF: > { %p5852_p13 = scmp.ge.s32.totalorder %s6315_s14, 2  ;;  %s4939_s15 = sand.u32 1, %s6303_s11  }
 0x55e   : > { %s4940_s22 = scalar_lea.sflag [#allocation4], %s4939_s15 }
 0x55f   : > { %p5849_p0 = pnand %p5852_p13, %p6418_p6 }
 0x561   : > { %p5850_p1 = pneg %p5849_p0 }
 0x563   : > { %6298 = dma.done.wait (%p5850_p1), %s4940_s22, 16  }
 0x564   : > { %6300 = vsyncadd (%p5850_p1), %s4940_s22, 4294967280  ;;  %p21_p2 = scmp.ge.s32.totalorder %s6401_s16, 4   ;;  %s9557_s11 = smov %s6307_s12 }
 0x565   : > { %s9558_s12 = smov %s6311_s13  ;;  %s9559_s13 = smov %s6412_s19 }
 0x566   : > { %s9560_s14 = smov %s6401_s16  ;;  %23 = sbr.rel (!%p21_p2) target bundleno = 6 (0x6), region = 91 }
 0x56b   :  { %4944 = vsyncpa [#allocation4], 1 }
 0x56c   :  { %4946 = vsyncpa [#allocation4 + $0x1], 1 }

</bundles_post_ra>
